<compile_context>
chip_gen: v5e
topology: v5e:2x2
jax: 0.10.0
libtpu: 0.0.40
codegen_flags: <defaults>
</compile_context>

<pallas_src>
import jax
import jax.numpy as jnp
import numpy as np
from jax.experimental import pallas as pl
from jax.experimental.pallas import tpu as pltpu


def _round_up(x, m):
    return (x + m - 1) // m * m


# ----------------------------------------------------------------------------
# Fused PostRes kernel (one grid step = one batch element)
# ----------------------------------------------------------------------------
def _make_postres_kernel(Ci8, Co8, D, H, W):
    K = 3
    K3 = K ** 3
    Dp, Hp, Wp = D + 2, H + 2, W + 2
    Lp = Dp * Hp * Wp                         # padded flat volume length
    p_min = Hp * Wp + Wp + 1                  # padded-flat index of output (0,0,0)
    w_len = (D - 1) * Hp * Wp + (H - 1) * Wp + W   # exact interior-output span
    w_out = D * Hp * Wp                       # span needed for cheap un-pad
    w_pad = _round_up(w_out, 128)             # 128-aligned lane window
    max_off = 2 * Hp * Wp + 2 * Wp + 2        # largest tap offset
    Lp_pad = _round_up(max_off + w_pad, 128)  # flat length: no OOB tap reads
    ring_hi = Lp_pad - (p_min + w_pad)        # hpad ring above the window
    offs = [kd * Hp * Wp + kh * Wp + kw
            for kd in range(K) for kh in range(K) for kw in range(K)]

    def kernel(x_ref, mask_ref, w1_ref, b1_ref, w2_ref, b2_ref,
               out_ref, col_ref, hpad_ref):
        # ---- conv1: im2col (27 lane-shifted bf16 taps along sublanes) + one
        #      MXU contraction of depth K^3*Ci8 (BN1 scale folded into w1).
        for t, off in enumerate(offs):
            col_ref[pl.ds(t * Ci8, Ci8), :] = x_ref[:, pl.ds(off, w_pad)]
        acc1 = jnp.dot(w1_ref[...], col_ref[pl.ds(0, K3 * Ci8), :],
                       preferred_element_type=jnp.float32)
        y1 = jnp.maximum(acc1 + b1_ref[...], 0.0) * mask_ref[...]  # zero pad ring

        # stash the centre tap (== x interior window) for the fused shortcut
        # before the conv2 column build reuses this scratch.
        col_ref[pl.ds(K3 * Co8, Ci8), :] = col_ref[pl.ds(13 * Ci8, Ci8), :]

        # ---- conv1 output as a padded flat volume (conv2's input), bf16.
        #      Only the ring outside the window needs zeroing each step.
        hpad_ref[:, pl.ds(0, p_min)] = jnp.zeros((Co8, p_min), jnp.bfloat16)
        hpad_ref[:, pl.ds(p_min + w_pad, ring_hi)] = jnp.zeros(
            (Co8, ring_hi), jnp.bfloat16)
        hpad_ref[:, pl.ds(p_min, w_pad)] = y1.astype(jnp.bfloat16)

        # ---- conv2 + shortcut fused: 27 hpad taps + Ci8 rows of x_win,
        #      ONE contraction of depth K^3*Co8 + Ci8 (BN2/BNs scales folded).
        for t, off in enumerate(offs):
            col_ref[pl.ds(t * Co8, Co8), :] = hpad_ref[:, pl.ds(off, w_pad)]
        acc2 = jnp.dot(w2_ref[...], col_ref[pl.ds(0, K3 * Co8 + Ci8), :],
                       preferred_element_type=jnp.float32)

        # ---- bias + final relu, lane-dense full-block store
        out_ref[...] = jnp.maximum(acc2 + b2_ref[...], 0.0).astype(out_ref.dtype)

    meta = dict(K3=K3, Lp=Lp, Lp_pad=Lp_pad, p_min=p_min,
                w_len=w_len, w_out=w_out, w_pad=w_pad)
    return kernel, meta


# ----------------------------------------------------------------------------
# BN folding + forward wrapper (input/output in PyTorch NCDHW layout)
# ----------------------------------------------------------------------------
def _fold_bn(conv_bias, gamma, beta, mean, var, eps=1e-5):
    scale = gamma / jnp.sqrt(var + eps)
    bias = beta + (conv_bias - mean) * scale
    return scale, bias


def postres_forward(x_ncdhw, params):
    N, Cin, D, H, W = x_ncdhw.shape
    Cout = params["w1"].shape[-1]
    K = 3
    K3 = K ** 3
    has_shortcut = Cout != Cin           # stride==1 only (see TODO above)

    Ci8 = _round_up(Cin, 8)
    Co8 = _round_up(Cout, 8)
    kernel, m = _make_postres_kernel(Ci8, Co8, D, H, W)
    Lp, Lp_pad = m["Lp"], m["Lp_pad"]
    p_min, w_out, w_pad = m["p_min"], m["w_out"], m["w_pad"]
    Dp, Hp, Wp = D + 2, H + 2, W + 2

    # x: pad channels to Ci8, spatial halo of 1, flatten, lane-align, cast bf16
    xp = jnp.pad(x_ncdhw, ((0, 0), (0, Ci8 - Cin), (1, 1), (1, 1), (1, 1)))
    xp = xp.reshape(N, Ci8, Lp)
    xp = jnp.pad(xp, ((0, 0), (0, 0), (0, Lp_pad - Lp))).astype(jnp.bfloat16)

    # static interior mask over the lane window (zero outside the true volume)
    p = np.arange(w_pad) + p_min
    dpi = p // (Hp * Wp)
    hpi = (p % (Hp * Wp)) // Wp
    wpi = p % Wp
    interior = ((p < Lp) & (dpi >= 1) & (dpi <= D) & (hpi >= 1) & (hpi <= H)
                & (wpi >= 1) & (wpi <= W))
    mask = jnp.asarray(interior.astype(np.float32)).reshape(1, w_pad)

    # BN folded into per-channel (scale -> weights, bias -> epilogue)
    s1, b1 = _fold_bn(params["b1"], *params["bn1"])
    s2, b2 = _fold_bn(params["b2"], *params["bn2"])

    def pad_oc(v):                        # (Cout,) -> (Co8, 1) f32 column
        return jnp.pad(v, (0, Co8 - Cout)).reshape(Co8, 1).astype(jnp.float32)

    # conv1 weight: (K,K,K,Cin,Cout) -> (Co8, K^3*Ci8), BN1 scale folded, bf16
    w1t = jnp.transpose(params["w1"], (4, 0, 1, 2, 3)) * s1[:, None, None, None, None]
    w1t = jnp.pad(w1t, ((0, Co8 - Cout), (0, 0), (0, 0), (0, 0), (0, Ci8 - Cin)))
    w1f = w1t.reshape(Co8, K3 * Ci8).astype(jnp.bfloat16)

    # conv2 weight with BN2 scale folded + shortcut (scale folded) appended as
    # Ci8 extra contraction columns -> single augmented MXU contraction
    w2t = jnp.transpose(params["w2"], (4, 0, 1, 2, 3)) * s2[:, None, None, None, None]
    w2t = jnp.pad(w2t, ((0, Co8 - Cout), (0, 0), (0, 0), (0, 0), (0, Co8 - Cout)))
    w2f = w2t.reshape(Co8, K3 * Co8)
    if has_shortcut:
        ss, bs = _fold_bn(params["bs"], *params["bns"])
        wsf = jnp.transpose(params["ws"][0, 0, 0], (1, 0)) * ss[:, None]  # (Cout,Cin)
        wsf = jnp.pad(wsf, ((0, Co8 - Cout), (0, Ci8 - Cin)))
        bias2 = b2 + bs
    else:
        wsf = jnp.eye(Co8, Ci8, dtype=jnp.float32)       # identity residual
        bias2 = b2
    w2aug = jnp.concatenate([w2f, wsf], axis=1).astype(jnp.bfloat16)

    in_specs = [
        pl.BlockSpec((None, Ci8, Lp_pad), lambda n: (n, 0, 0)),   # padded-flat x
        pl.BlockSpec((1, w_pad), lambda n: (0, 0)),               # interior mask
        pl.BlockSpec((Co8, K3 * Ci8), lambda n: (0, 0)),          # w1 (scale folded)
        pl.BlockSpec((Co8, 1), lambda n: (0, 0)),                 # bias1
        pl.BlockSpec((Co8, K3 * Co8 + Ci8), lambda n: (0, 0)),    # w2 ++ shortcut
        pl.BlockSpec((Co8, 1), lambda n: (0, 0)),                 # bias2 (+bns)
    ]
    args = [xp, mask, w1f, pad_oc(b1), w2aug, pad_oc(bias2)]

    col_rows = max(K3 * Ci8, K3 * Co8 + Ci8)   # shared conv1/conv2 im2col scratch
    out_win = pl.pallas_call(
        kernel,
        out_shape=jax.ShapeDtypeStruct((N, Co8, w_pad), x_ncdhw.dtype),
        grid=(N,),
        in_specs=in_specs,
        out_specs=pl.BlockSpec((None, Co8, w_pad), lambda n: (n, 0, 0)),
        scratch_shapes=[
            pltpu.VMEM((col_rows, w_pad), jnp.bfloat16),   # shared im2col columns
            pltpu.VMEM((Co8, Lp_pad), jnp.bfloat16),       # padded conv1 output
        ],
        compiler_params=pltpu.CompilerParams(
            dimension_semantics=("parallel",)),
    )(*args)

    # un-pad: one strided slice + free reshape (no jnp.pad HBM round-trip);
    # lanes >= w_len and channels >= Cout are garbage and excluded here.
    out = out_win[:, :Cout, :w_out].reshape(N, Cout, D, Hp, Wp)[:, :, :, :H, :W]
    return out


# ----------------------------------------------------------------------------
# Deterministic synthetic parameters
# ----------------------------------------------------------------------------
def init_postres_params(key, n_in, n_out):
    ks = jax.random.split(key, 9)

    def conv_w(k, K, cin, cout):
        return jax.random.normal(k, (K, K, K, cin, cout), jnp.float32) * 0.1

    def bn(k, c):
        k1, k2, k3, k4 = jax.random.split(k, 4)
        gamma = 0.5 + jax.random.uniform(k1, (c,), jnp.float32)
        beta = jax.random.normal(k2, (c,), jnp.float32) * 0.1
        mean = jax.random.normal(k3, (c,), jnp.float32) * 0.05
        var = 0.5 + jax.random.uniform(k4, (c,), jnp.float32)
        return gamma, beta, mean, var

    p = {}
    p["w1"] = conv_w(ks[0], 3, n_in, n_out)
    p["b1"] = jax.random.normal(ks[1], (n_out,), jnp.float32) * 0.05
    p["bn1"] = bn(ks[2], n_out)
    p["w2"] = conv_w(ks[3], 3, n_out, n_out)
    p["b2"] = jax.random.normal(ks[4], (n_out,), jnp.float32) * 0.05
    p["bn2"] = bn(ks[5], n_out)
    p["ws"] = conv_w(ks[6], 1, n_in, n_out)
    p["bs"] = jax.random.normal(ks[7], (n_out,), jnp.float32) * 0.05
    p["bns"] = bn(ks[8], n_out)
    return p


# ----------------------------------------------------------------------------
# Pure-JAX reference (lax.conv_general_dilated) for verification
# ----------------------------------------------------------------------------
def _ref_conv(x, w, b, stride, pad):
    y = jax.lax.conv_general_dilated(
        x, w, (stride,) * 3, [(pad, pad)] * 3,
        dimension_numbers=("NDHWC", "DHWIO", "NDHWC"))
    return y + b


def _ref_bn(x, gamma, beta, mean, var, eps=1e-5):
    return (x - mean) / jnp.sqrt(var + eps) * gamma + beta


def postres_reference(x_ncdhw, params):
    x = jnp.transpose(x_ncdhw, (0, 2, 3, 4, 1))
    residual = _ref_bn(_ref_conv(x, params["ws"], params["bs"], 1, 0),
                       *params["bns"])
    out = jax.nn.relu(_ref_bn(_ref_conv(x, params["w1"], params["b1"], 1, 1),
                              *params["bn1"]))
    out = _ref_bn(_ref_conv(out, params["w2"], params["b2"], 1, 1),
                  *params["bn2"])
    out = jax.nn.relu(out + residual)
    return jnp.transpose(out, (0, 4, 1, 2, 3))


if __name__ == "__main__":
    # PostRes(n_in=4, n_out=8, stride=1): shortcut active since n_out != n_in.
    N, C_IN, C_OUT, D, H, W = 2, 4, 8, 8, 8, 8

    key = jax.random.PRNGKey(0)
    k_x, k_p = jax.random.split(key)
    x = jax.random.normal(k_x, (N, C_IN, D, H, W), jnp.float32)  # NCDHW
    params = init_postres_params(k_p, C_IN, C_OUT)

    out = jax.jit(postres_forward)(x, params)
    out = jax.block_until_ready(out)

    ref = postres_reference(x, params)
    # bf16 MXU operands (f32 accumulation) -> relaxed tolerance vs f32 reference
    np.testing.assert_allclose(np.asarray(out), np.asarray(ref),
                               rtol=5e-2, atol=5e-2)

    assert out.shape == (N, C_OUT, D, H, W)
    print("KERNEL_OK")
</pallas_src>

<mosaic_0001>
module attributes {stable_mosaic.version = 11 : i64} {
  func.func @kernel(%arg0: i32, %arg1: memref<1x8x1152xbf16, #tpu.memory_space<vmem>>, %arg2: memref<1x896xf32, #tpu.memory_space<vmem>>, %arg3: memref<8x216xbf16, #tpu.memory_space<vmem>>, %arg4: memref<8x1xf32, #tpu.memory_space<vmem>>, %arg5: memref<8x224xbf16, #tpu.memory_space<vmem>>, %arg6: memref<8x1xf32, #tpu.memory_space<vmem>>, %arg7: memref<1x8x896xf32, #tpu.memory_space<vmem>>, %arg8: memref<224x896xbf16, #tpu.memory_space<vmem>>, %arg9: memref<8x1152xbf16, #tpu.memory_space<vmem>>) attributes {dimension_semantics = [#tpu.dimension_semantics<parallel>], iteration_bounds = array<i64: 2>, scalar_prefetch = 0 : i64, scratch_operands = 2 : i64, tpu.core_type = #tpu.core_type<tc>, window_params = [{transform_indices = @transform_0, window_bounds = array<i64: 1, 8, 1152>}, {pipeline_mode = #tpu.pipeline_mode<synchronous>, transform_indices = @transform_1, window_bounds = array<i64: 1, 896>}, {pipeline_mode = #tpu.pipeline_mode<synchronous>, transform_indices = @transform_2, window_bounds = array<i64: 8, 216>}, {pipeline_mode = #tpu.pipeline_mode<synchronous>, transform_indices = @transform_3, window_bounds = array<i64: 8, 1>}, {pipeline_mode = #tpu.pipeline_mode<synchronous>, transform_indices = @transform_4, window_bounds = array<i64: 8, 224>}, {pipeline_mode = #tpu.pipeline_mode<synchronous>, transform_indices = @transform_5, window_bounds = array<i64: 8, 1>}, {transform_indices = @transform_6, window_bounds = array<i64: 1, 8, 896>}]} {
    %c0 = arith.constant 0 : index
    %c0_0 = arith.constant 0 : index
    %c0_1 = arith.constant 0 : index
    %0 = vector.load %arg1[%c0, %c0_0, %c0_1] : memref<1x8x1152xbf16, #tpu.memory_space<vmem>>, vector<1x8x896xbf16>
    %1 = vector.shape_cast %0 : vector<1x8x896xbf16> to vector<8x896xbf16>
    %c0_2 = arith.constant 0 : index
    %c0_3 = arith.constant 0 : index
    %2 = vector.load %arg8[%c0_2, %c0_3] : memref<224x896xbf16, #tpu.memory_space<vmem>>, vector<8x896xbf16>
    tpu.vector_store %arg8[%c0_2, %c0_3], %1 {strides = array<i32>} : memref<224x896xbf16, #tpu.memory_space<vmem>>, vector<8x896xbf16>,
    %c0_4 = arith.constant 0 : index
    %c0_5 = arith.constant 0 : index
    %c1 = arith.constant 1 : index
    %3 = vector.load %arg1[%c0_4, %c0_5, %c1] : memref<1x8x1152xbf16, #tpu.memory_space<vmem>>, vector<1x8x896xbf16>
    %4 = vector.shape_cast %3 : vector<1x8x896xbf16> to vector<8x896xbf16>
    %c8 = arith.constant 8 : index
    %c0_6 = arith.constant 0 : index
    %5 = vector.load %arg8[%c8, %c0_6] : memref<224x896xbf16, #tpu.memory_space<vmem>>, vector<8x896xbf16>
    tpu.vector_store %arg8[%c8, %c0_6], %4 {strides = array<i32>} : memref<224x896xbf16, #tpu.memory_space<vmem>>, vector<8x896xbf16>,
    %c0_7 = arith.constant 0 : index
    %c0_8 = arith.constant 0 : index
    %c2 = arith.constant 2 : index
    %6 = vector.load %arg1[%c0_7, %c0_8, %c2] : memref<1x8x1152xbf16, #tpu.memory_space<vmem>>, vector<1x8x896xbf16>
    %7 = vector.shape_cast %6 : vector<1x8x896xbf16> to vector<8x896xbf16>
    %c16 = arith.constant 16 : index
    %c0_9 = arith.constant 0 : index
    %8 = vector.load %arg8[%c16, %c0_9] : memref<224x896xbf16, #tpu.memory_space<vmem>>, vector<8x896xbf16>
    tpu.vector_store %arg8[%c16, %c0_9], %7 {strides = array<i32>} : memref<224x896xbf16, #tpu.memory_space<vmem>>, vector<8x896xbf16>,
    %c0_10 = arith.constant 0 : index
    %c0_11 = arith.constant 0 : index
    %c10 = arith.constant 10 : index
    %9 = vector.load %arg1[%c0_10, %c0_11, %c10] : memref<1x8x1152xbf16, #tpu.memory_space<vmem>>, vector<1x8x896xbf16>
    %10 = vector.shape_cast %9 : vector<1x8x896xbf16> to vector<8x896xbf16>
    %c24 = arith.constant 24 : index
    %c0_12 = arith.constant 0 : index
    %11 = vector.load %arg8[%c24, %c0_12] : memref<224x896xbf16, #tpu.memory_space<vmem>>, vector<8x896xbf16>
    tpu.vector_store %arg8[%c24, %c0_12], %10 {strides = array<i32>} : memref<224x896xbf16, #tpu.memory_space<vmem>>, vector<8x896xbf16>,
    %c0_13 = arith.constant 0 : index
    %c0_14 = arith.constant 0 : index
    %c11 = arith.constant 11 : index
    %12 = vector.load %arg1[%c0_13, %c0_14, %c11] : memref<1x8x1152xbf16, #tpu.memory_space<vmem>>, vector<1x8x896xbf16>
    %13 = vector.shape_cast %12 : vector<1x8x896xbf16> to vector<8x896xbf16>
    %c32 = arith.constant 32 : index
    %c0_15 = arith.constant 0 : index
    %14 = vector.load %arg8[%c32, %c0_15] : memref<224x896xbf16, #tpu.memory_space<vmem>>, vector<8x896xbf16>
    tpu.vector_store %arg8[%c32, %c0_15], %13 {strides = array<i32>} : memref<224x896xbf16, #tpu.memory_space<vmem>>, vector<8x896xbf16>,
    %c0_16 = arith.constant 0 : index
    %c0_17 = arith.constant 0 : index
    %c12 = arith.constant 12 : index
    %15 = vector.load %arg1[%c0_16, %c0_17, %c12] : memref<1x8x1152xbf16, #tpu.memory_space<vmem>>, vector<1x8x896xbf16>
    %16 = vector.shape_cast %15 : vector<1x8x896xbf16> to vector<8x896xbf16>
    %c40 = arith.constant 40 : index
    %c0_18 = arith.constant 0 : index
    %17 = vector.load %arg8[%c40, %c0_18] : memref<224x896xbf16, #tpu.memory_space<vmem>>, vector<8x896xbf16>
    tpu.vector_store %arg8[%c40, %c0_18], %16 {strides = array<i32>} : memref<224x896xbf16, #tpu.memory_space<vmem>>, vector<8x896xbf16>,
    %c0_19 = arith.constant 0 : index
    %c0_20 = arith.constant 0 : index
    %c20 = arith.constant 20 : index
    %18 = vector.load %arg1[%c0_19, %c0_20, %c20] : memref<1x8x1152xbf16, #tpu.memory_space<vmem>>, vector<1x8x896xbf16>
    %19 = vector.shape_cast %18 : vector<1x8x896xbf16> to vector<8x896xbf16>
    %c48 = arith.constant 48 : index
    %c0_21 = arith.constant 0 : index
    %20 = vector.load %arg8[%c48, %c0_21] : memref<224x896xbf16, #tpu.memory_space<vmem>>, vector<8x896xbf16>
    tpu.vector_store %arg8[%c48, %c0_21], %19 {strides = array<i32>} : memref<224x896xbf16, #tpu.memory_space<vmem>>, vector<8x896xbf16>,
    %c0_22 = arith.constant 0 : index
    %c0_23 = arith.constant 0 : index
    %c21 = arith.constant 21 : index
    %21 = vector.load %arg1[%c0_22, %c0_23, %c21] : memref<1x8x1152xbf16, #tpu.memory_space<vmem>>, vector<1x8x896xbf16>
    %22 = vector.shape_cast %21 : vector<1x8x896xbf16> to vector<8x896xbf16>
    %c56 = arith.constant 56 : index
    %c0_24 = arith.constant 0 : index
    %23 = vector.load %arg8[%c56, %c0_24] : memref<224x896xbf16, #tpu.memory_space<vmem>>, vector<8x896xbf16>
    tpu.vector_store %arg8[%c56, %c0_24], %22 {strides = array<i32>} : memref<224x896xbf16, #tpu.memory_space<vmem>>, vector<8x896xbf16>,
    %c0_25 = arith.constant 0 : index
    %c0_26 = arith.constant 0 : index
    %c22 = arith.constant 22 : index
    %24 = vector.load %arg1[%c0_25, %c0_26, %c22] : memref<1x8x1152xbf16, #tpu.memory_space<vmem>>, vector<1x8x896xbf16>
    %25 = vector.shape_cast %24 : vector<1x8x896xbf16> to vector<8x896xbf16>
    %c64 = arith.constant 64 : index
    %c0_27 = arith.constant 0 : index
    %26 = vector.load %arg8[%c64, %c0_27] : memref<224x896xbf16, #tpu.memory_space<vmem>>, vector<8x896xbf16>
    tpu.vector_store %arg8[%c64, %c0_27], %25 {strides = array<i32>} : memref<224x896xbf16, #tpu.memory_space<vmem>>, vector<8x896xbf16>,
    %c0_28 = arith.constant 0 : index
    %c0_29 = arith.constant 0 : index
    %c100 = arith.constant 100 : index
    %27 = vector.load %arg1[%c0_28, %c0_29, %c100] : memref<1x8x1152xbf16, #tpu.memory_space<vmem>>, vector<1x8x896xbf16>
    %28 = vector.shape_cast %27 : vector<1x8x896xbf16> to vector<8x896xbf16>
    %c72 = arith.constant 72 : index
    %c0_30 = arith.constant 0 : index
    %29 = vector.load %arg8[%c72, %c0_30] : memref<224x896xbf16, #tpu.memory_space<vmem>>, vector<8x896xbf16>
    tpu.vector_store %arg8[%c72, %c0_30], %28 {strides = array<i32>} : memref<224x896xbf16, #tpu.memory_space<vmem>>, vector<8x896xbf16>,
    %c0_31 = arith.constant 0 : index
    %c0_32 = arith.constant 0 : index
    %c101 = arith.constant 101 : index
    %30 = vector.load %arg1[%c0_31, %c0_32, %c101] : memref<1x8x1152xbf16, #tpu.memory_space<vmem>>, vector<1x8x896xbf16>
    %31 = vector.shape_cast %30 : vector<1x8x896xbf16> to vector<8x896xbf16>
    %c80 = arith.constant 80 : index
    %c0_33 = arith.constant 0 : index
    %32 = vector.load %arg8[%c80, %c0_33] : memref<224x896xbf16, #tpu.memory_space<vmem>>, vector<8x896xbf16>
    tpu.vector_store %arg8[%c80, %c0_33], %31 {strides = array<i32>} : memref<224x896xbf16, #tpu.memory_space<vmem>>, vector<8x896xbf16>,
    %c0_34 = arith.constant 0 : index
    %c0_35 = arith.constant 0 : index
    %c102 = arith.constant 102 : index
    %33 = vector.load %arg1[%c0_34, %c0_35, %c102] : memref<1x8x1152xbf16, #tpu.memory_space<vmem>>, vector<1x8x896xbf16>
    %34 = vector.shape_cast %33 : vector<1x8x896xbf16> to vector<8x896xbf16>
    %c88 = arith.constant 88 : index
    %c0_36 = arith.constant 0 : index
    %35 = vector.load %arg8[%c88, %c0_36] : memref<224x896xbf16, #tpu.memory_space<vmem>>, vector<8x896xbf16>
    tpu.vector_store %arg8[%c88, %c0_36], %34 {strides = array<i32>} : memref<224x896xbf16, #tpu.memory_space<vmem>>, vector<8x896xbf16>,
    %c0_37 = arith.constant 0 : index
    %c0_38 = arith.constant 0 : index
    %c110 = arith.constant 110 : index
    %36 = vector.load %arg1[%c0_37, %c0_38, %c110] : memref<1x8x1152xbf16, #tpu.memory_space<vmem>>, vector<1x8x896xbf16>
    %37 = vector.shape_cast %36 : vector<1x8x896xbf16> to vector<8x896xbf16>
    %c96 = arith.constant 96 : index
    %c0_39 = arith.constant 0 : index
    %38 = vector.load %arg8[%c96, %c0_39] : memref<224x896xbf16, #tpu.memory_space<vmem>>, vector<8x896xbf16>
    tpu.vector_store %arg8[%c96, %c0_39], %37 {strides = array<i32>} : memref<224x896xbf16, #tpu.memory_space<vmem>>, vector<8x896xbf16>,
    %c0_40 = arith.constant 0 : index
    %c0_41 = arith.constant 0 : index
    %c111 = arith.constant 111 : index
    %39 = vector.load %arg1[%c0_40, %c0_41, %c111] : memref<1x8x1152xbf16, #tpu.memory_space<vmem>>, vector<1x8x896xbf16>
    %40 = vector.shape_cast %39 : vector<1x8x896xbf16> to vector<8x896xbf16>
    %c104 = arith.constant 104 : index
    %c0_42 = arith.constant 0 : index
    %41 = vector.load %arg8[%c104, %c0_42] : memref<224x896xbf16, #tpu.memory_space<vmem>>, vector<8x896xbf16>
    tpu.vector_store %arg8[%c104, %c0_42], %40 {strides = array<i32>} : memref<224x896xbf16, #tpu.memory_space<vmem>>, vector<8x896xbf16>,
    %c0_43 = arith.constant 0 : index
    %c0_44 = arith.constant 0 : index
    %c112 = arith.constant 112 : index
    %42 = vector.load %arg1[%c0_43, %c0_44, %c112] : memref<1x8x1152xbf16, #tpu.memory_space<vmem>>, vector<1x8x896xbf16>
    %43 = vector.shape_cast %42 : vector<1x8x896xbf16> to vector<8x896xbf16>
    %c112_45 = arith.constant 112 : index
    %c0_46 = arith.constant 0 : index
    %44 = vector.load %arg8[%c112_45, %c0_46] : memref<224x896xbf16, #tpu.memory_space<vmem>>, vector<8x896xbf16>
    tpu.vector_store %arg8[%c112_45, %c0_46], %43 {strides = array<i32>} : memref<224x896xbf16, #tpu.memory_space<vmem>>, vector<8x896xbf16>,
    %c0_47 = arith.constant 0 : index
    %c0_48 = arith.constant 0 : index
    %c120 = arith.constant 120 : index
    %45 = vector.load %arg1[%c0_47, %c0_48, %c120] : memref<1x8x1152xbf16, #tpu.memory_space<vmem>>, vector<1x8x896xbf16>
    %46 = vector.shape_cast %45 : vector<1x8x896xbf16> to vector<8x896xbf16>
    %c120_49 = arith.constant 120 : index
    %c0_50 = arith.constant 0 : index
    %47 = vector.load %arg8[%c120_49, %c0_50] : memref<224x896xbf16, #tpu.memory_space<vmem>>, vector<8x896xbf16>
    tpu.vector_store %arg8[%c120_49, %c0_50], %46 {strides = array<i32>} : memref<224x896xbf16, #tpu.memory_space<vmem>>, vector<8x896xbf16>,
    %c0_51 = arith.constant 0 : index
    %c0_52 = arith.constant 0 : index
    %c121 = arith.constant 121 : index
    %48 = vector.load %arg1[%c0_51, %c0_52, %c121] : memref<1x8x1152xbf16, #tpu.memory_space<vmem>>, vector<1x8x896xbf16>
    %49 = vector.shape_cast %48 : vector<1x8x896xbf16> to vector<8x896xbf16>
    %c128 = arith.constant 128 : index
    %c0_53 = arith.constant 0 : index
    %50 = vector.load %arg8[%c128, %c0_53] : memref<224x896xbf16, #tpu.memory_space<vmem>>, vector<8x896xbf16>
    tpu.vector_store %arg8[%c128, %c0_53], %49 {strides = array<i32>} : memref<224x896xbf16, #tpu.memory_space<vmem>>, vector<8x896xbf16>,
    %c0_54 = arith.constant 0 : index
    %c0_55 = arith.constant 0 : index
    %c122 = arith.constant 122 : index
    %51 = vector.load %arg1[%c0_54, %c0_55, %c122] : memref<1x8x1152xbf16, #tpu.memory_space<vmem>>, vector<1x8x896xbf16>
    %52 = vector.shape_cast %51 : vector<1x8x896xbf16> to vector<8x896xbf16>
    %c136 = arith.constant 136 : index
    %c0_56 = arith.constant 0 : index
    %53 = vector.load %arg8[%c136, %c0_56] : memref<224x896xbf16, #tpu.memory_space<vmem>>, vector<8x896xbf16>
    tpu.vector_store %arg8[%c136, %c0_56], %52 {strides = array<i32>} : memref<224x896xbf16, #tpu.memory_space<vmem>>, vector<8x896xbf16>,
    %c0_57 = arith.constant 0 : index
    %c0_58 = arith.constant 0 : index
    %c200 = arith.constant 200 : index
    %54 = vector.load %arg1[%c0_57, %c0_58, %c200] : memref<1x8x1152xbf16, #tpu.memory_space<vmem>>, vector<1x8x896xbf16>
    %55 = vector.shape_cast %54 : vector<1x8x896xbf16> to vector<8x896xbf16>
    %c144 = arith.constant 144 : index
    %c0_59 = arith.constant 0 : index
    %56 = vector.load %arg8[%c144, %c0_59] : memref<224x896xbf16, #tpu.memory_space<vmem>>, vector<8x896xbf16>
    tpu.vector_store %arg8[%c144, %c0_59], %55 {strides = array<i32>} : memref<224x896xbf16, #tpu.memory_space<vmem>>, vector<8x896xbf16>,
    %c0_60 = arith.constant 0 : index
    %c0_61 = arith.constant 0 : index
    %c201 = arith.constant 201 : index
    %57 = vector.load %arg1[%c0_60, %c0_61, %c201] : memref<1x8x1152xbf16, #tpu.memory_space<vmem>>, vector<1x8x896xbf16>
    %58 = vector.shape_cast %57 : vector<1x8x896xbf16> to vector<8x896xbf16>
    %c152 = arith.constant 152 : index
    %c0_62 = arith.constant 0 : index
    %59 = vector.load %arg8[%c152, %c0_62] : memref<224x896xbf16, #tpu.memory_space<vmem>>, vector<8x896xbf16>
    tpu.vector_store %arg8[%c152, %c0_62], %58 {strides = array<i32>} : memref<224x896xbf16, #tpu.memory_space<vmem>>, vector<8x896xbf16>,
    %c0_63 = arith.constant 0 : index
    %c0_64 = arith.constant 0 : index
    %c202 = arith.constant 202 : index
    %60 = vector.load %arg1[%c0_63, %c0_64, %c202] : memref<1x8x1152xbf16, #tpu.memory_space<vmem>>, vector<1x8x896xbf16>
    %61 = vector.shape_cast %60 : vector<1x8x896xbf16> to vector<8x896xbf16>
    %c160 = arith.constant 160 : index
    %c0_65 = arith.constant 0 : index
    %62 = vector.load %arg8[%c160, %c0_65] : memref<224x896xbf16, #tpu.memory_space<vmem>>, vector<8x896xbf16>
    tpu.vector_store %arg8[%c160, %c0_65], %61 {strides = array<i32>} : memref<224x896xbf16, #tpu.memory_space<vmem>>, vector<8x896xbf16>,
    %c0_66 = arith.constant 0 : index
    %c0_67 = arith.constant 0 : index
    %c210 = arith.constant 210 : index
    %63 = vector.load %arg1[%c0_66, %c0_67, %c210] : memref<1x8x1152xbf16, #tpu.memory_space<vmem>>, vector<1x8x896xbf16>
    %64 = vector.shape_cast %63 : vector<1x8x896xbf16> to vector<8x896xbf16>
    %c168 = arith.constant 168 : index
    %c0_68 = arith.constant 0 : index
    %65 = vector.load %arg8[%c168, %c0_68] : memref<224x896xbf16, #tpu.memory_space<vmem>>, vector<8x896xbf16>
    tpu.vector_store %arg8[%c168, %c0_68], %64 {strides = array<i32>} : memref<224x896xbf16, #tpu.memory_space<vmem>>, vector<8x896xbf16>,
    %c0_69 = arith.constant 0 : index
    %c0_70 = arith.constant 0 : index
    %c211 = arith.constant 211 : index
    %66 = vector.load %arg1[%c0_69, %c0_70, %c211] : memref<1x8x1152xbf16, #tpu.memory_space<vmem>>, vector<1x8x896xbf16>
    %67 = vector.shape_cast %66 : vector<1x8x896xbf16> to vector<8x896xbf16>
    %c176 = arith.constant 176 : index
    %c0_71 = arith.constant 0 : index
    %68 = vector.load %arg8[%c176, %c0_71] : memref<224x896xbf16, #tpu.memory_space<vmem>>, vector<8x896xbf16>
    tpu.vector_store %arg8[%c176, %c0_71], %67 {strides = array<i32>} : memref<224x896xbf16, #tpu.memory_space<vmem>>, vector<8x896xbf16>,
    %c0_72 = arith.constant 0 : index
    %c0_73 = arith.constant 0 : index
    %c212 = arith.constant 212 : index
    %69 = vector.load %arg1[%c0_72, %c0_73, %c212] : memref<1x8x1152xbf16, #tpu.memory_space<vmem>>, vector<1x8x896xbf16>
    %70 = vector.shape_cast %69 : vector<1x8x896xbf16> to vector<8x896xbf16>
    %c184 = arith.constant 184 : index
    %c0_74 = arith.constant 0 : index
    %71 = vector.load %arg8[%c184, %c0_74] : memref<224x896xbf16, #tpu.memory_space<vmem>>, vector<8x896xbf16>
    tpu.vector_store %arg8[%c184, %c0_74], %70 {strides = array<i32>} : memref<224x896xbf16, #tpu.memory_space<vmem>>, vector<8x896xbf16>,
    %c0_75 = arith.constant 0 : index
    %c0_76 = arith.constant 0 : index
    %c220 = arith.constant 220 : index
    %72 = vector.load %arg1[%c0_75, %c0_76, %c220] : memref<1x8x1152xbf16, #tpu.memory_space<vmem>>, vector<1x8x896xbf16>
    %73 = vector.shape_cast %72 : vector<1x8x896xbf16> to vector<8x896xbf16>
    %c192 = arith.constant 192 : index
    %c0_77 = arith.constant 0 : index
    %74 = vector.load %arg8[%c192, %c0_77] : memref<224x896xbf16, #tpu.memory_space<vmem>>, vector<8x896xbf16>
    tpu.vector_store %arg8[%c192, %c0_77], %73 {strides = array<i32>} : memref<224x896xbf16, #tpu.memory_space<vmem>>, vector<8x896xbf16>,
    %c0_78 = arith.constant 0 : index
    %c0_79 = arith.constant 0 : index
    %c221 = arith.constant 221 : index
    %75 = vector.load %arg1[%c0_78, %c0_79, %c221] : memref<1x8x1152xbf16, #tpu.memory_space<vmem>>, vector<1x8x896xbf16>
    %76 = vector.shape_cast %75 : vector<1x8x896xbf16> to vector<8x896xbf16>
    %c200_80 = arith.constant 200 : index
    %c0_81 = arith.constant 0 : index
    %77 = vector.load %arg8[%c200_80, %c0_81] : memref<224x896xbf16, #tpu.memory_space<vmem>>, vector<8x896xbf16>
    tpu.vector_store %arg8[%c200_80, %c0_81], %76 {strides = array<i32>} : memref<224x896xbf16, #tpu.memory_space<vmem>>, vector<8x896xbf16>,
    %c0_82 = arith.constant 0 : index
    %c0_83 = arith.constant 0 : index
    %c222 = arith.constant 222 : index
    %78 = vector.load %arg1[%c0_82, %c0_83, %c222] : memref<1x8x1152xbf16, #tpu.memory_space<vmem>>, vector<1x8x896xbf16>
    %79 = vector.shape_cast %78 : vector<1x8x896xbf16> to vector<8x896xbf16>
    %c208 = arith.constant 208 : index
    %c0_84 = arith.constant 0 : index
    %80 = vector.load %arg8[%c208, %c0_84] : memref<224x896xbf16, #tpu.memory_space<vmem>>, vector<8x896xbf16>
    tpu.vector_store %arg8[%c208, %c0_84], %79 {strides = array<i32>} : memref<224x896xbf16, #tpu.memory_space<vmem>>, vector<8x896xbf16>,
    %c0_85 = arith.constant 0 : index
    %c0_86 = arith.constant 0 : index
    %81 = vector.load %arg3[%c0_85, %c0_86] : memref<8x216xbf16, #tpu.memory_space<vmem>>, vector<8x216xbf16>
    %c0_87 = arith.constant 0 : index
    %c0_88 = arith.constant 0 : index
    %82 = vector.load %arg8[%c0_87, %c0_88] : memref<224x896xbf16, #tpu.memory_space<vmem>>, vector<216x896xbf16>
    %cst = arith.constant dense<0.000000e+00> : vector<8x896xf32>
    %83 = tpu.matmul %81, %82, %cst {dimension_numbers = #tpu.dot_dimension_numbers<[1], [0], [0], [1], [0, 0, 1, 1], [], []>} : vector<8x216xbf16>, vector<216x896xbf16>, vector<8x896xf32> -> vector<8x896xf32>
    %c0_89 = arith.constant 0 : index
    %c0_90 = arith.constant 0 : index
    %84 = vector.load %arg4[%c0_89, %c0_90] : memref<8x1xf32, #tpu.memory_space<vmem>>, vector<8x1xf32>
    %85 = vector.broadcast %84 : vector<8x1xf32> to vector<8x896xf32>
    %86 = arith.addf %83, %85 : vector<8x896xf32>
    %cst_91 = arith.constant 0.000000e+00 : f32
    %87 = vector.broadcast %cst_91 : f32 to vector<8x896xf32>
    %88 = arith.maximumf %86, %87 : vector<8x896xf32>
    %c0_92 = arith.constant 0 : index
    %c0_93 = arith.constant 0 : index
    %89 = vector.load %arg2[%c0_92, %c0_93] : memref<1x896xf32, #tpu.memory_space<vmem>>, vector<1x896xf32>
    %90 = vector.broadcast %89 : vector<1x896xf32> to vector<8x896xf32>
    %91 = arith.mulf %88, %90 : vector<8x896xf32>
    %c104_94 = arith.constant 104 : index
    %c0_95 = arith.constant 0 : index
    %92 = vector.load %arg8[%c104_94, %c0_95] : memref<224x896xbf16, #tpu.memory_space<vmem>>, vector<8x896xbf16>
    %c216 = arith.constant 216 : index
    %c0_96 = arith.constant 0 : index
    %93 = vector.load %arg8[%c216, %c0_96] : memref<224x896xbf16, #tpu.memory_space<vmem>>, vector<8x896xbf16>
    tpu.vector_store %arg8[%c216, %c0_96], %92 {strides = array<i32>} : memref<224x896xbf16, #tpu.memory_space<vmem>>, vector<8x896xbf16>,
    %cst_97 = arith.constant 0.000000e+00 : bf16
    %94 = vector.broadcast %cst_97 : bf16 to vector<8x111xbf16>
    %c0_98 = arith.constant 0 : index
    %c0_99 = arith.constant 0 : index
    %95 = vector.load %arg9[%c0_98, %c0_99] : memref<8x1152xbf16, #tpu.memory_space<vmem>>, vector<8x111xbf16>
    tpu.vector_store %arg9[%c0_98, %c0_99], %94 {strides = array<i32>} : memref<8x1152xbf16, #tpu.memory_space<vmem>>, vector<8x111xbf16>,
    %cst_100 = arith.constant 0.000000e+00 : bf16
    %96 = vector.broadcast %cst_100 : bf16 to vector<8x145xbf16>
    %c0_101 = arith.constant 0 : index
    %c1007 = arith.constant 1007 : index
    %97 = vector.load %arg9[%c0_101, %c1007] : memref<8x1152xbf16, #tpu.memory_space<vmem>>, vector<8x145xbf16>
    tpu.vector_store %arg9[%c0_101, %c1007], %96 {strides = array<i32>} : memref<8x1152xbf16, #tpu.memory_space<vmem>>, vector<8x145xbf16>,
    %98 = arith.truncf %91 : vector<8x896xf32> to vector<8x896xbf16>
    %c0_102 = arith.constant 0 : index
    %c111_103 = arith.constant 111 : index
    %99 = vector.load %arg9[%c0_102, %c111_103] : memref<8x1152xbf16, #tpu.memory_space<vmem>>, vector<8x896xbf16>
    tpu.vector_store %arg9[%c0_102, %c111_103], %98 {strides = array<i32>} : memref<8x1152xbf16, #tpu.memory_space<vmem>>, vector<8x896xbf16>,
    %c0_104 = arith.constant 0 : index
    %c0_105 = arith.constant 0 : index
    %100 = vector.load %arg9[%c0_104, %c0_105] : memref<8x1152xbf16, #tpu.memory_space<vmem>>, vector<8x896xbf16>
    %c0_106 = arith.constant 0 : index
    %c0_107 = arith.constant 0 : index
    %101 = vector.load %arg8[%c0_106, %c0_107] : memref<224x896xbf16, #tpu.memory_space<vmem>>, vector<8x896xbf16>
    tpu.vector_store %arg8[%c0_106, %c0_107], %100 {strides = array<i32>} : memref<224x896xbf16, #tpu.memory_space<vmem>>, vector<8x896xbf16>,
    %c0_108 = arith.constant 0 : index
    %c1_109 = arith.constant 1 : index
    %102 = vector.load %arg9[%c0_108, %c1_109] : memref<8x1152xbf16, #tpu.memory_space<vmem>>, vector<8x896xbf16>
    %c8_110 = arith.constant 8 : index
    %c0_111 = arith.constant 0 : index
    %103 = vector.load %arg8[%c8_110, %c0_111] : memref<224x896xbf16, #tpu.memory_space<vmem>>, vector<8x896xbf16>
    tpu.vector_store %arg8[%c8_110, %c0_111], %102 {strides = array<i32>} : memref<224x896xbf16, #tpu.memory_space<vmem>>, vector<8x896xbf16>,
    %c0_112 = arith.constant 0 : index
    %c2_113 = arith.constant 2 : index
    %104 = vector.load %arg9[%c0_112, %c2_113] : memref<8x1152xbf16, #tpu.memory_space<vmem>>, vector<8x896xbf16>
    %c16_114 = arith.constant 16 : index
    %c0_115 = arith.constant 0 : index
    %105 = vector.load %arg8[%c16_114, %c0_115] : memref<224x896xbf16, #tpu.memory_space<vmem>>, vector<8x896xbf16>
    tpu.vector_store %arg8[%c16_114, %c0_115], %104 {strides = array<i32>} : memref<224x896xbf16, #tpu.memory_space<vmem>>, vector<8x896xbf16>,
    %c0_116 = arith.constant 0 : index
    %c10_117 = arith.constant 10 : index
    %106 = vector.load %arg9[%c0_116, %c10_117] : memref<8x1152xbf16, #tpu.memory_space<vmem>>, vector<8x896xbf16>
    %c24_118 = arith.constant 24 : index
    %c0_119 = arith.constant 0 : index
    %107 = vector.load %arg8[%c24_118, %c0_119] : memref<224x896xbf16, #tpu.memory_space<vmem>>, vector<8x896xbf16>
    tpu.vector_store %arg8[%c24_118, %c0_119], %106 {strides = array<i32>} : memref<224x896xbf16, #tpu.memory_space<vmem>>, vector<8x896xbf16>,
    %c0_120 = arith.constant 0 : index
    %c11_121 = arith.constant 11 : index
    %108 = vector.load %arg9[%c0_120, %c11_121] : memref<8x1152xbf16, #tpu.memory_space<vmem>>, vector<8x896xbf16>
    %c32_122 = arith.constant 32 : index
    %c0_123 = arith.constant 0 : index
    %109 = vector.load %arg8[%c32_122, %c0_123] : memref<224x896xbf16, #tpu.memory_space<vmem>>, vector<8x896xbf16>
    tpu.vector_store %arg8[%c32_122, %c0_123], %108 {strides = array<i32>} : memref<224x896xbf16, #tpu.memory_space<vmem>>, vector<8x896xbf16>,
    %c0_124 = arith.constant 0 : index
    %c12_125 = arith.constant 12 : index
    %110 = vector.load %arg9[%c0_124, %c12_125] : memref<8x1152xbf16, #tpu.memory_space<vmem>>, vector<8x896xbf16>
    %c40_126 = arith.constant 40 : index
    %c0_127 = arith.constant 0 : index
    %111 = vector.load %arg8[%c40_126, %c0_127] : memref<224x896xbf16, #tpu.memory_space<vmem>>, vector<8x896xbf16>
    tpu.vector_store %arg8[%c40_126, %c0_127], %110 {strides = array<i32>} : memref<224x896xbf16, #tpu.memory_space<vmem>>, vector<8x896xbf16>,
    %c0_128 = arith.constant 0 : index
    %c20_129 = arith.constant 20 : index
    %112 = vector.load %arg9[%c0_128, %c20_129] : memref<8x1152xbf16, #tpu.memory_space<vmem>>, vector<8x896xbf16>
    %c48_130 = arith.constant 48 : index
    %c0_131 = arith.constant 0 : index
    %113 = vector.load %arg8[%c48_130, %c0_131] : memref<224x896xbf16, #tpu.memory_space<vmem>>, vector<8x896xbf16>
    tpu.vector_store %arg8[%c48_130, %c0_131], %112 {strides = array<i32>} : memref<224x896xbf16, #tpu.memory_space<vmem>>, vector<8x896xbf16>,
    %c0_132 = arith.constant 0 : index
    %c21_133 = arith.constant 21 : index
    %114 = vector.load %arg9[%c0_132, %c21_133] : memref<8x1152xbf16, #tpu.memory_space<vmem>>, vector<8x896xbf16>
    %c56_134 = arith.constant 56 : index
    %c0_135 = arith.constant 0 : index
    %115 = vector.load %arg8[%c56_134, %c0_135] : memref<224x896xbf16, #tpu.memory_space<vmem>>, vector<8x896xbf16>
    tpu.vector_store %arg8[%c56_134, %c0_135], %114 {strides = array<i32>} : memref<224x896xbf16, #tpu.memory_space<vmem>>, vector<8x896xbf16>,
    %c0_136 = arith.constant 0 : index
    %c22_137 = arith.constant 22 : index
    %116 = vector.load %arg9[%c0_136, %c22_137] : memref<8x1152xbf16, #tpu.memory_space<vmem>>, vector<8x896xbf16>
    %c64_138 = arith.constant 64 : index
    %c0_139 = arith.constant 0 : index
    %117 = vector.load %arg8[%c64_138, %c0_139] : memref<224x896xbf16, #tpu.memory_space<vmem>>, vector<8x896xbf16>
    tpu.vector_store %arg8[%c64_138, %c0_139], %116 {strides = array<i32>} : memref<224x896xbf16, #tpu.memory_space<vmem>>, vector<8x896xbf16>,
    %c0_140 = arith.constant 0 : index
    %c100_141 = arith.constant 100 : index
    %118 = vector.load %arg9[%c0_140, %c100_141] : memref<8x1152xbf16, #tpu.memory_space<vmem>>, vector<8x896xbf16>
    %c72_142 = arith.constant 72 : index
    %c0_143 = arith.constant 0 : index
    %119 = vector.load %arg8[%c72_142, %c0_143] : memref<224x896xbf16, #tpu.memory_space<vmem>>, vector<8x896xbf16>
    tpu.vector_store %arg8[%c72_142, %c0_143], %118 {strides = array<i32>} : memref<224x896xbf16, #tpu.memory_space<vmem>>, vector<8x896xbf16>,
    %c0_144 = arith.constant 0 : index
    %c101_145 = arith.constant 101 : index
    %120 = vector.load %arg9[%c0_144, %c101_145] : memref<8x1152xbf16, #tpu.memory_space<vmem>>, vector<8x896xbf16>
    %c80_146 = arith.constant 80 : index
    %c0_147 = arith.constant 0 : index
    %121 = vector.load %arg8[%c80_146, %c0_147] : memref<224x896xbf16, #tpu.memory_space<vmem>>, vector<8x896xbf16>
    tpu.vector_store %arg8[%c80_146, %c0_147], %120 {strides = array<i32>} : memref<224x896xbf16, #tpu.memory_space<vmem>>, vector<8x896xbf16>,
    %c0_148 = arith.constant 0 : index
    %c102_149 = arith.constant 102 : index
    %122 = vector.load %arg9[%c0_148, %c102_149] : memref<8x1152xbf16, #tpu.memory_space<vmem>>, vector<8x896xbf16>
    %c88_150 = arith.constant 88 : index
    %c0_151 = arith.constant 0 : index
    %123 = vector.load %arg8[%c88_150, %c0_151] : memref<224x896xbf16, #tpu.memory_space<vmem>>, vector<8x896xbf16>
    tpu.vector_store %arg8[%c88_150, %c0_151], %122 {strides = array<i32>} : memref<224x896xbf16, #tpu.memory_space<vmem>>, vector<8x896xbf16>,
    %c0_152 = arith.constant 0 : index
    %c110_153 = arith.constant 110 : index
    %124 = vector.load %arg9[%c0_152, %c110_153] : memref<8x1152xbf16, #tpu.memory_space<vmem>>, vector<8x896xbf16>
    %c96_154 = arith.constant 96 : index
    %c0_155 = arith.constant 0 : index
    %125 = vector.load %arg8[%c96_154, %c0_155] : memref<224x896xbf16, #tpu.memory_space<vmem>>, vector<8x896xbf16>
    tpu.vector_store %arg8[%c96_154, %c0_155], %124 {strides = array<i32>} : memref<224x896xbf16, #tpu.memory_space<vmem>>, vector<8x896xbf16>,
    %c0_156 = arith.constant 0 : index
    %c111_157 = arith.constant 111 : index
    %126 = vector.load %arg9[%c0_156, %c111_157] : memref<8x1152xbf16, #tpu.memory_space<vmem>>, vector<8x896xbf16>
    %c104_158 = arith.constant 104 : index
    %c0_159 = arith.constant 0 : index
    %127 = vector.load %arg8[%c104_158, %c0_159] : memref<224x896xbf16, #tpu.memory_space<vmem>>, vector<8x896xbf16>
    tpu.vector_store %arg8[%c104_158, %c0_159], %126 {strides = array<i32>} : memref<224x896xbf16, #tpu.memory_space<vmem>>, vector<8x896xbf16>,
    %c0_160 = arith.constant 0 : index
    %c112_161 = arith.constant 112 : index
    %128 = vector.load %arg9[%c0_160, %c112_161] : memref<8x1152xbf16, #tpu.memory_space<vmem>>, vector<8x896xbf16>
    %c112_162 = arith.constant 112 : index
    %c0_163 = arith.constant 0 : index
    %129 = vector.load %arg8[%c112_162, %c0_163] : memref<224x896xbf16, #tpu.memory_space<vmem>>, vector<8x896xbf16>
    tpu.vector_store %arg8[%c112_162, %c0_163], %128 {strides = array<i32>} : memref<224x896xbf16, #tpu.memory_space<vmem>>, vector<8x896xbf16>,
    %c0_164 = arith.constant 0 : index
    %c120_165 = arith.constant 120 : index
    %130 = vector.load %arg9[%c0_164, %c120_165] : memref<8x1152xbf16, #tpu.memory_space<vmem>>, vector<8x896xbf16>
    %c120_166 = arith.constant 120 : index
    %c0_167 = arith.constant 0 : index
    %131 = vector.load %arg8[%c120_166, %c0_167] : memref<224x896xbf16, #tpu.memory_space<vmem>>, vector<8x896xbf16>
    tpu.vector_store %arg8[%c120_166, %c0_167], %130 {strides = array<i32>} : memref<224x896xbf16, #tpu.memory_space<vmem>>, vector<8x896xbf16>,
    %c0_168 = arith.constant 0 : index
    %c121_169 = arith.constant 121 : index
    %132 = vector.load %arg9[%c0_168, %c121_169] : memref<8x1152xbf16, #tpu.memory_space<vmem>>, vector<8x896xbf16>
    %c128_170 = arith.constant 128 : index
    %c0_171 = arith.constant 0 : index
    %133 = vector.load %arg8[%c128_170, %c0_171] : memref<224x896xbf16, #tpu.memory_space<vmem>>, vector<8x896xbf16>
    tpu.vector_store %arg8[%c128_170, %c0_171], %132 {strides = array<i32>} : memref<224x896xbf16, #tpu.memory_space<vmem>>, vector<8x896xbf16>,
    %c0_172 = arith.constant 0 : index
    %c122_173 = arith.constant 122 : index
    %134 = vector.load %arg9[%c0_172, %c122_173] : memref<8x1152xbf16, #tpu.memory_space<vmem>>, vector<8x896xbf16>
    %c136_174 = arith.constant 136 : index
    %c0_175 = arith.constant 0 : index
    %135 = vector.load %arg8[%c136_174, %c0_175] : memref<224x896xbf16, #tpu.memory_space<vmem>>, vector<8x896xbf16>
    tpu.vector_store %arg8[%c136_174, %c0_175], %134 {strides = array<i32>} : memref<224x896xbf16, #tpu.memory_space<vmem>>, vector<8x896xbf16>,
    %c0_176 = arith.constant 0 : index
    %c200_177 = arith.constant 200 : index
    %136 = vector.load %arg9[%c0_176, %c200_177] : memref<8x1152xbf16, #tpu.memory_space<vmem>>, vector<8x896xbf16>
    %c144_178 = arith.constant 144 : index
    %c0_179 = arith.constant 0 : index
    %137 = vector.load %arg8[%c144_178, %c0_179] : memref<224x896xbf16, #tpu.memory_space<vmem>>, vector<8x896xbf16>
    tpu.vector_store %arg8[%c144_178, %c0_179], %136 {strides = array<i32>} : memref<224x896xbf16, #tpu.memory_space<vmem>>, vector<8x896xbf16>,
    %c0_180 = arith.constant 0 : index
    %c201_181 = arith.constant 201 : index
    %138 = vector.load %arg9[%c0_180, %c201_181] : memref<8x1152xbf16, #tpu.memory_space<vmem>>, vector<8x896xbf16>
    %c152_182 = arith.constant 152 : index
    %c0_183 = arith.constant 0 : index
    %139 = vector.load %arg8[%c152_182, %c0_183] : memref<224x896xbf16, #tpu.memory_space<vmem>>, vector<8x896xbf16>
    tpu.vector_store %arg8[%c152_182, %c0_183], %138 {strides = array<i32>} : memref<224x896xbf16, #tpu.memory_space<vmem>>, vector<8x896xbf16>,
    %c0_184 = arith.constant 0 : index
    %c202_185 = arith.constant 202 : index
    %140 = vector.load %arg9[%c0_184, %c202_185] : memref<8x1152xbf16, #tpu.memory_space<vmem>>, vector<8x896xbf16>
    %c160_186 = arith.constant 160 : index
    %c0_187 = arith.constant 0 : index
    %141 = vector.load %arg8[%c160_186, %c0_187] : memref<224x896xbf16, #tpu.memory_space<vmem>>, vector<8x896xbf16>
    tpu.vector_store %arg8[%c160_186, %c0_187], %140 {strides = array<i32>} : memref<224x896xbf16, #tpu.memory_space<vmem>>, vector<8x896xbf16>,
    %c0_188 = arith.constant 0 : index
    %c210_189 = arith.constant 210 : index
    %142 = vector.load %arg9[%c0_188, %c210_189] : memref<8x1152xbf16, #tpu.memory_space<vmem>>, vector<8x896xbf16>
    %c168_190 = arith.constant 168 : index
    %c0_191 = arith.constant 0 : index
    %143 = vector.load %arg8[%c168_190, %c0_191] : memref<224x896xbf16, #tpu.memory_space<vmem>>, vector<8x896xbf16>
    tpu.vector_store %arg8[%c168_190, %c0_191], %142 {strides = array<i32>} : memref<224x896xbf16, #tpu.memory_space<vmem>>, vector<8x896xbf16>,
    %c0_192 = arith.constant 0 : index
    %c211_193 = arith.constant 211 : index
    %144 = vector.load %arg9[%c0_192, %c211_193] : memref<8x1152xbf16, #tpu.memory_space<vmem>>, vector<8x896xbf16>
    %c176_194 = arith.constant 176 : index
    %c0_195 = arith.constant 0 : index
    %145 = vector.load %arg8[%c176_194, %c0_195] : memref<224x896xbf16, #tpu.memory_space<vmem>>, vector<8x896xbf16>
    tpu.vector_store %arg8[%c176_194, %c0_195], %144 {strides = array<i32>} : memref<224x896xbf16, #tpu.memory_space<vmem>>, vector<8x896xbf16>,
    %c0_196 = arith.constant 0 : index
    %c212_197 = arith.constant 212 : index
    %146 = vector.load %arg9[%c0_196, %c212_197] : memref<8x1152xbf16, #tpu.memory_space<vmem>>, vector<8x896xbf16>
    %c184_198 = arith.constant 184 : index
    %c0_199 = arith.constant 0 : index
    %147 = vector.load %arg8[%c184_198, %c0_199] : memref<224x896xbf16, #tpu.memory_space<vmem>>, vector<8x896xbf16>
    tpu.vector_store %arg8[%c184_198, %c0_199], %146 {strides = array<i32>} : memref<224x896xbf16, #tpu.memory_space<vmem>>, vector<8x896xbf16>,
    %c0_200 = arith.constant 0 : index
    %c220_201 = arith.constant 220 : index
    %148 = vector.load %arg9[%c0_200, %c220_201] : memref<8x1152xbf16, #tpu.memory_space<vmem>>, vector<8x896xbf16>
    %c192_202 = arith.constant 192 : index
    %c0_203 = arith.constant 0 : index
    %149 = vector.load %arg8[%c192_202, %c0_203] : memref<224x896xbf16, #tpu.memory_space<vmem>>, vector<8x896xbf16>
    tpu.vector_store %arg8[%c192_202, %c0_203], %148 {strides = array<i32>} : memref<224x896xbf16, #tpu.memory_space<vmem>>, vector<8x896xbf16>,
    %c0_204 = arith.constant 0 : index
    %c221_205 = arith.constant 221 : index
    %150 = vector.load %arg9[%c0_204, %c221_205] : memref<8x1152xbf16, #tpu.memory_space<vmem>>, vector<8x896xbf16>
    %c200_206 = arith.constant 200 : index
    %c0_207 = arith.constant 0 : index
    %151 = vector.load %arg8[%c200_206, %c0_207] : memref<224x896xbf16, #tpu.memory_space<vmem>>, vector<8x896xbf16>
    tpu.vector_store %arg8[%c200_206, %c0_207], %150 {strides = array<i32>} : memref<224x896xbf16, #tpu.memory_space<vmem>>, vector<8x896xbf16>,
    %c0_208 = arith.constant 0 : index
    %c222_209 = arith.constant 222 : index
    %152 = vector.load %arg9[%c0_208, %c222_209] : memref<8x1152xbf16, #tpu.memory_space<vmem>>, vector<8x896xbf16>
    %c208_210 = arith.constant 208 : index
    %c0_211 = arith.constant 0 : index
    %153 = vector.load %arg8[%c208_210, %c0_211] : memref<224x896xbf16, #tpu.memory_space<vmem>>, vector<8x896xbf16>
    tpu.vector_store %arg8[%c208_210, %c0_211], %152 {strides = array<i32>} : memref<224x896xbf16, #tpu.memory_space<vmem>>, vector<8x896xbf16>,
    %c0_212 = arith.constant 0 : index
    %c0_213 = arith.constant 0 : index
    %154 = vector.load %arg5[%c0_212, %c0_213] : memref<8x224xbf16, #tpu.memory_space<vmem>>, vector<8x224xbf16>
    %c0_214 = arith.constant 0 : index
    %c0_215 = arith.constant 0 : index
    %155 = vector.load %arg8[%c0_214, %c0_215] : memref<224x896xbf16, #tpu.memory_space<vmem>>, vector<224x896xbf16>
    %cst_216 = arith.constant dense<0.000000e+00> : vector<8x896xf32>
    %156 = tpu.matmul %154, %155, %cst_216 {dimension_numbers = #tpu.dot_dimension_numbers<[1], [0], [0], [1], [0, 0, 1, 1], [], []>} : vector<8x224xbf16>, vector<224x896xbf16>, vector<8x896xf32> -> vector<8x896xf32>
    %c0_217 = arith.constant 0 : index
    %c0_218 = arith.constant 0 : index
    %157 = vector.load %arg6[%c0_217, %c0_218] : memref<8x1xf32, #tpu.memory_space<vmem>>, vector<8x1xf32>
    %158 = vector.broadcast %157 : vector<8x1xf32> to vector<8x896xf32>
    %159 = arith.addf %156, %158 : vector<8x896xf32>
    %cst_219 = arith.constant 0.000000e+00 : f32
    %160 = vector.broadcast %cst_219 : f32 to vector<8x896xf32>
    %161 = arith.maximumf %159, %160 : vector<8x896xf32>
    %c0_220 = arith.constant 0 : index
    %c0_221 = arith.constant 0 : index
    %c0_222 = arith.constant 0 : index
    %162 = vector.load %arg7[%c0_220, %c0_221, %c0_222] : memref<1x8x896xf32, #tpu.memory_space<vmem>>, vector<1x8x896xf32>
    %163 = vector.shape_cast %162 : vector<1x8x896xf32> to vector<8x896xf32>
    %164 = vector.shape_cast %161 : vector<8x896xf32> to vector<1x8x896xf32>
    tpu.vector_store %arg7[%c0_220, %c0_221, %c0_222], %164 {strides = array<i32>} : memref<1x8x896xf32, #tpu.memory_space<vmem>>, vector<1x8x896xf32>,
    return
  }
  func.func @transform_0(%arg0: i32) -> (i32, i32, i32) {
    %c0_i32 = arith.constant 0 : i32
    %c0_i32_0 = arith.constant 0 : i32
    %c0_i32_1 = arith.constant 0 : i32
    return %arg0, %c0_i32, %c0_i32_0 : i32, i32, i32
  }
  func.func @transform_1(%arg0: i32) -> (i32, i32) {
    %c0_i32 = arith.constant 0 : i32
    %c0_i32_0 = arith.constant 0 : i32
    %c0_i32_1 = arith.constant 0 : i32
    return %c0_i32, %c0_i32_0 : i32, i32
  }
  func.func @transform_2(%arg0: i32) -> (i32, i32) {
    %c0_i32 = arith.constant 0 : i32
    %c0_i32_0 = arith.constant 0 : i32
    %c0_i32_1 = arith.constant 0 : i32
    return %c0_i32, %c0_i32_0 : i32, i32
  }
  func.func @transform_3(%arg0: i32) -> (i32, i32) {
    %c0_i32 = arith.constant 0 : i32
    %c0_i32_0 = arith.constant 0 : i32
    %c0_i32_1 = arith.constant 0 : i32
    return %c0_i32, %c0_i32_0 : i32, i32
  }
  func.func @transform_4(%arg0: i32) -> (i32, i32) {
    %c0_i32 = arith.constant 0 : i32
    %c0_i32_0 = arith.constant 0 : i32
    %c0_i32_1 = arith.constant 0 : i32
    return %c0_i32, %c0_i32_0 : i32, i32
  }
  func.func @transform_5(%arg0: i32) -> (i32, i32) {
    %c0_i32 = arith.constant 0 : i32
    %c0_i32_0 = arith.constant 0 : i32
    %c0_i32_1 = arith.constant 0 : i32
    return %c0_i32, %c0_i32_0 : i32, i32
  }
  func.func @transform_6(%arg0: i32) -> (i32, i32, i32) {
    %c0_i32 = arith.constant 0 : i32
    %c0_i32_0 = arith.constant 0 : i32
    %c0_i32_1 = arith.constant 0 : i32
    return %arg0, %c0_i32, %c0_i32_0 : i32, i32, i32
  }
}

</mosaic_0001>

<bundles_post_ra>
// kernel: postres_forward.1
= control target key start
LH: loop header
LB: loop body
LE: loop exit
PB: predicated region body
PF: predicated region fallthrough
CT: control target
= control target key end

     0   :  { %s4976_s21 = smov 0   ;;  %s6754_s0 = inlined_call_operand.vmem [shape: bf16[2,8,1152], index: 0, kind: input, shape index: {}]   ;;  %s6755_s1 = inlined_call_operand.vmem [shape: f32[1,896], index: 1, kind: input, shape index: {}]   ;;  %s6756_s2 = inlined_call_operand.vmem [shape: bf16[8,216], index: 2, kind: input, shape index: {}]   ;;  %s6757_s3 = inlined_call_operand.vmem [shape: f32[8,1], index: 3, kind: input, shape index: {}]   ;;  %s6758_s4 = inlined_call_operand.vmem [shape: bf16[8,224], index: 4, kind: input, shape index: {}]   ;;  %s6759_s5 = inlined_call_operand.vmem [shape: f32[8,1], index: 5, kind: input, shape index: {}]   ;;  %s6760_s6 = inlined_call_operand.vmem [shape: f32[2,8,896], index: 6, kind: output, shape index: {}]  }
   0x1 LB: > { %s3897_s22 = sadd.s32 4294967295, %s4911_s21   ;;  %p3901_p0 = scmp.ge.s32.totalorder %s4911_s21, 1  ;;  %s4911_s21 = sphi %s4976_s21, %s16_s21  }
   0x2   : > { %p212_p1 = scmp.lt.s32.totalorder %s4911_s21, 3 }
   0x4   : > { %p213_p2 = pnand %p3901_p0, %p212_p1 }
   0x5   : > { %p242_p3 = scmp.lt.s32.totalorder (!%p213_p2), %s3897_s22, 1  ;;  %s4913_s27 = smov (!%p213_p2), 126  }
   0x6   : > { %216 = sbr.rel (%p213_p2) target bundleno = 1175 (0x497), region = 44  ;;  %s6769_s28 = smov (!%p213_p2), 127  }
   0x7   : > { %s6767_s29 = smov (!%p213_p2), 118   ;;  %s6763_s30 = smov (!%p213_p2), 117  }
   0x8   : > { %s6765_s7 = smov (!%p213_p2), 116   ;;  %s6761_s8 = smov (!%p213_p2), 108  }
   0x9   : > { %s4919_s9 = smov (!%p213_p2), 16   ;;  %s4920_s10 = smov (!%p213_p2), 107  }
   0xa   : > { %s6794_s11 = smov (!%p213_p2), 8   ;;  %s4922_s12 = smov (!%p213_p2), 17  }
   0xb   : > { %s6914_s22 = smov (!%p242_p3, %s3897_s22), 1  ;;  %s4923_s13 = smov 18   ;;  %vm281_vm0 = vcmask 1043456   ;;  %vm6774_vm1 = vcmask 1031168   ;;  %vm6773_vm2 = vcmask 965632   ;;  %vm6776_vm3 = vcmask 1039360  }
   0xc   : > { %s4865_s23 = smul.u32 36, %s6914_s22  ;;  %s4924_s14 = smov 34   ;;  %vm6771_vm4 = vcmask 883712   ;;  %vm6775_vm5 = vcmask 957440   ;;  %vm6772_vm6 = vcmask 949248   ;;  %vm6812_vm7 = vcmask 875520  }
   0xd   : > { %s6796_s15 = smov 26   ;;  %s4926_s16 = smov 27   ;;  %vm6784_vm8 = vcmask 64512   ;;  %vm6789_vm9 = vcmask 130048   ;;  %vm6788_vm10 = vcmask 146432   ;;  %vm6783_vm11 = vcmask 277504  }
   0xe   : > { %s4990_s26 = scalar_lea.vmem %s6754_s0, %s4865_s23  ;;  %s6800_s17 = smov 106   ;;  %vm6786_vm12 = vcmask 138240   ;;  %vm607_vm13 = vcmask 220160   ;;  %vm535_vm14 = vcmask 867328   ;;  %vm643_vm15 = vcmask 211968  }
   0xf   : > { %v4993_v0 = vld [vmem:[%s4990_s26] sm:$0xff]  ;;  %v4996_v1 = vld [vmem:[%s4990_s26 + $0x10] sm:$0xff]  ;;  %v5005_v2 = vld [vmem:[%s4990_s26 + $0x8] sm:$0xff]  ;;  %s4928_s18 = smov 36   ;;  %s6806_s19 = smov 28  }
  0x10   : > { %306 = vrot.lane.b32.xlu2 %v4993_v0, %s4913_s27  ;;  %273 = vrot.lane.b32.xlu1 %v4996_v1, %s6769_s28  ;;  %v5008_v3 = vld [vmem:[%s4990_s26 + $0x18] sm:$0xff]  ;;  %v5071_v4 = vld [vmem:[%s4990_s26 + $0xc] sm:$0xff]  ;;  %s4930_s20 = smov 35   ;;  %s6780_s23 = smov 44  }
  0x11   : > { %269 = vrot.lane.b32.xlu0 %v4993_v0, %s6769_s28  ;;  %v5074_v5 = vld [vmem:[%s4990_s26 + $0x4] sm:$0xff]  ;;  %v256_v10 = vld [vmem:[%s4990_s26 + $0x18] sm:$0xf]  ;;  %v255_v13 = vld [vmem:[%s4990_s26 + $0x10] sm:$0xff]  ;;  %s4932_s24 = smov 45   ;;  %s6778_s25 = smov 54  }
  0x12   : > { %v253_v8 = vld [vmem:[%s4990_s26] sm:$0xff]  ;;  %v254_v12 = vld [vmem:[%s4990_s26 + $0x8] sm:$0xff]  ;;  %260 = vst [vmem:[#allocation2 + $0x18] sm:$0xf] %v256_v10  ;;  %v5152_v53 = vld [vmem:[%s4990_s26 + $0x14] sm:$0xff] }
  0x13   : > { %257 = vst [vmem:[#allocation2] sm:$0xff] %v253_v8 }
  0x14   : > { %258 = vst [vmem:[#allocation2 + $0x8] sm:$0xff] %v254_v12 }
  0x15   : > { %259 = vst [vmem:[#allocation2 + $0x10] sm:$0xff] %v255_v13 }
  0x18   : > { %308 = vrot.lane.b32.xlu2 %v5005_v2, %s4913_s27  ;;  %275 = vrot.lane.b32.xlu1 %v5008_v3, %s6769_s28 }
  0x19   : > { %271 = vrot.lane.b32.xlu0 %v5005_v2, %s6769_s28  ;;  %s6802_s28 = smov 6  }
  0x20   : > { %342 = vrot.lane.b32.xlu2 %v4993_v0, %s6767_s29  ;;  %312 = vrot.lane.b32.xlu1 %v5008_v3, %s4913_s27 }
  0x21   : > { %310 = vrot.lane.b32.xlu0 %v4996_v1, %s4913_s27 }
  0x28   : > { %348 = vrot.lane.b32.xlu2 %v5008_v3, %s6767_s29  ;;  %346 = vrot.lane.b32.xlu1 %v4996_v1, %s6767_s29 }
  0x29   : > { %344 = vrot.lane.b32.xlu0 %v5005_v2, %s6767_s29  ;;  %s6798_s29 = smov 7  }
  0x30   : > { %382 = vrot.lane.b32.xlu2 %v4996_v1, %s6763_s30  ;;  %380 = vrot.lane.b32.xlu1 %v5005_v2, %s6763_s30 }
  0x31   : > { %378 = vrot.lane.b32.xlu0 %v4993_v0, %s6763_s30 }
  0x38   : > { %416 = vrot.lane.b32.xlu2 %v5005_v2, %s6765_s7  ;;  %414 = vrot.lane.b32.xlu1 %v4993_v0, %s6765_s7 }
  0x39   : > { %384 = vrot.lane.b32.xlu0 %v5008_v3, %s6763_s30  ;;  %s6790_s30 = smov 56  }
  0x40   : > { %450 = vrot.lane.b32.xlu2 %v4993_v0, %s6761_s8  ;;  %420 = vrot.lane.b32.xlu1 %v5008_v3, %s6765_s7 }
  0x41   : > { %418 = vrot.lane.b32.xlu0 %v4996_v1, %s6765_s7  ;;  %s6792_s7 = smov 55  }
  0x48   : > { %456 = vrot.lane.b32.xlu2 %v5008_v3, %s6761_s8  ;;  %454 = vrot.lane.b32.xlu1 %v4996_v1, %s6761_s8 }
  0x49   : > { %452 = vrot.lane.b32.xlu0 %v5005_v2, %s6761_s8  ;;  %s6804_s8 = smov 46  }
  0x50   : > { %738 = vrot.lane.b32.xlu2 %v4993_v0, %s4919_s9  ;;  %488 = vrot.lane.b32.xlu1 %v5005_v2, %s4920_s10 }
  0x51   : > { %486 = vrot.lane.b32.xlu0 %v4993_v0, %s4920_s10 }
  0x58   : > { %776 = vrot.lane.b32.xlu2 %v5005_v2, %s6794_s11  ;;  %774 = vrot.lane.b32.xlu1 %v4993_v0, %s6794_s11 }
  0x59   : > { %740 = vrot.lane.b32.xlu0 %v5005_v2, %s4919_s9 }
  0x60   : > { %702 = vrot.lane.b32.xlu2 %v4993_v0, %s4922_s12  ;;  %668 = vrot.lane.b32.xlu1 %v5005_v2, %s4923_s13 }
  0x61   : > { %666 = vrot.lane.b32.xlu0 %v4993_v0, %s4923_s13 }
  0x68   : > { %1172 = vrot.lane.b32.xlu2 %v5071_v4, %s4924_s14  ;;  %1170 = vrot.lane.b32.xlu1 %v5074_v5, %s4924_s14 }
  0x69   : > { %704 = vrot.lane.b32.xlu0 %v5005_v2, %s4922_s12 }
  0x6a   : > { %v307_v6 = vpop.permute.xlu2 %306 }
  0x6b   : > { %v314_v7 = vrot.slane %v307_v6, 4 }
  0x70   : > { %630 = vrot.lane.b32.xlu2 %v4993_v0, %s6796_s15  ;;  %596 = vrot.lane.b32.xlu1 %v5005_v2, %s4926_s16 }
  0x71   : > { %594 = vrot.lane.b32.xlu0 %v4993_v0, %s4926_s16 }
  0x72   : > { %v5089_v9 = vpop.permute.xlu2 %308 }
  0x73   : > { %v315_v11 = vrot.slane %v5089_v9, 4 }
  0x75   : > { %v318_v14 = vsel %vm281_vm0, %v314_v7, %v315_v11 }
  0x76   : > { %v320_v15 = vsel %vm6774_vm1, %v307_v6, %v318_v14 }
  0x77   : > { %330 = vst [vmem:[#allocation2 + $0x38] sm:$0xff] %v320_v15 }
  0x78   : > { %524 = vrot.lane.b32.xlu2 %v5005_v2, %s6800_s17  ;;  %522 = vrot.lane.b32.xlu1 %v4993_v0, %s6800_s17 }
  0x79   : > { %632 = vrot.lane.b32.xlu0 %v5005_v2, %s6796_s15 }
  0x7a   : > { %v5103_v16 = vpop.permute.xlu2 %342 }
  0x7b   : > { %v350_v50 = vrot.slane %v5103_v16, 4 }
  0x80   : > { %1098 = vrot.lane.b32.xlu2 %v5074_v5, %s4928_s18  ;;  %560 = vrot.lane.b32.xlu1 %v5005_v2, %s6806_s19 }
  0x81   : > { %558 = vrot.lane.b32.xlu0 %v4993_v0, %s6806_s19 }
  0x82   : > { %v349_v17 = vpop.permute.xlu2 %348  ;;  %v274_v18 = vpop.permute.xlu1 %273 }
  0x83   : > { %v353_v19 = vrot.slane %v349_v17, 4  ;;  %v270_v20 = vpop.permute.xlu0 %269  ;;  %v279_v24 = vrot.slane %v274_v18, 4 }
  0x84   : > { %v277_v27 = vrot.slane %v270_v20, 4 }
  0x85   : > { %v361_v21 = vsel %vm6773_vm2, %v349_v17, %v353_v19 }
  0x86   : > { %369 = vst [vmem:[#allocation2 + $0x6c] sm:$0xf] %v361_v21 }
  0x88   : > { %1136 = vrot.lane.b32.xlu2 %v5071_v4, %s4930_s20  ;;  %1134 = vrot.lane.b32.xlu1 %v5074_v5, %s4930_s20 }
  0x89   : > { %1100 = vrot.lane.b32.xlu0 %v5071_v4, %s4928_s18 }
  0x8a   : > { %v5118_v22 = vpop.permute.xlu2 %382  ;;  %v276_v23 = vpop.permute.xlu1 %275 }
  0x8b   : > { %v280_v25 = vrot.slane %v276_v23, 4  ;;  %v272_v26 = vpop.permute.xlu0 %271  ;;  %v388_v59 = vrot.slane %v5118_v22, 4 }
  0x8c   : > { %v278_v28 = vrot.slane %v272_v26, 4 }
  0x8d   : > { %v287_v29 = vsel %vm281_vm0, %v279_v24, %v280_v25  ;;  %v289_v30 = vsel %vm6776_vm3, %v276_v23, %v280_v25 }
  0x8e   : > { %v288_v31 = vsel %vm6776_vm3, %v274_v18, %v287_v29  ;;  %297 = vst [vmem:[#allocation2 + $0x34] sm:$0xf] %v289_v30  ;;  %v282_v32 = vsel %vm281_vm0, %v277_v27, %v278_v28  ;;  %v285_v33 = vsel %vm281_vm0, %v278_v28, %v279_v24 }
  0x8f   : > { %296 = vst [vmem:[#allocation2 + $0x2c] sm:$0xff] %v288_v31  ;;  %v284_v34 = vsel %vm6776_vm3, %v270_v20, %v282_v32  ;;  %v286_v35 = vsel %vm6776_vm3, %v272_v26, %v285_v33  ;;  %vm1075_vm3 = vcmask 359424  }
  0x90   : > { %294 = vst [vmem:[#allocation2 + $0x1c] sm:$0xff] %v284_v34  ;;  %1062 = vrot.lane.b32.xlu2 %v5074_v5, %s6780_s23  ;;  %1028 = vrot.lane.b32.xlu1 %v5071_v4, %s4932_s24 }
  0x91   : > { %295 = vst [vmem:[#allocation2 + $0x24] sm:$0xff] %v286_v35  ;;  %1026 = vrot.lane.b32.xlu0 %v5074_v5, %s4932_s24 }
  0x92   : > { %v5133_v36 = vpop.permute.xlu2 %416  ;;  %v313_v37 = vpop.permute.xlu1 %312 }
  0x93   : > { %v317_v38 = vrot.slane %v313_v37, 4  ;;  %v311_v39 = vpop.permute.xlu0 %310  ;;  %v423_v13 = vrot.slane %v5133_v36, 4 }
  0x94   : > { %v316_v40 = vrot.slane %v311_v39, 4 }
  0x95   : > { %v325_v41 = vsel %vm6774_vm1, %v313_v37, %v317_v38 }
  0x96   : > { %333 = vst [vmem:[#allocation2 + $0x50] sm:$0xf] %v325_v41  ;;  %v321_v42 = vsel %vm281_vm0, %v315_v11, %v316_v40  ;;  %v323_v43 = vsel %vm281_vm0, %v316_v40, %v317_v38 }
  0x97   : > { %v322_v44 = vsel %vm6774_vm1, %v5089_v9, %v321_v42  ;;  %v324_v45 = vsel %vm6774_vm1, %v311_v39, %v323_v43  ;;  %vm1039_vm1 = vcmask 367616  }
  0x98   : > { %331 = vst [vmem:[#allocation2 + $0x40] sm:$0xff] %v322_v44  ;;  %956 = vrot.lane.b32.xlu2 %v5071_v4, %s6778_s25  ;;  %954 = vrot.lane.b32.xlu1 %v5074_v5, %s6778_s25 }
  0x99   : > { %332 = vst [vmem:[#allocation2 + $0x48] sm:$0xff] %v324_v45  ;;  %1064 = vrot.lane.b32.xlu0 %v5071_v4, %s6780_s23 }
  0x9a   : > { %v5147_v46 = vpop.permute.xlu2 %450  ;;  %v347_v47 = vpop.permute.xlu1 %346 }
  0x9b   : > { %v352_v48 = vrot.slane %v347_v47, 4  ;;  %v345_v49 = vpop.permute.xlu0 %344 }
  0x9c   : > { %v351_v51 = vrot.slane %v345_v49, 4 }
  0x9d   : > { %v359_v52 = vsel %vm281_vm0, %v352_v48, %v353_v19 }
  0x9e   : > { %v360_v54 = vsel %vm6773_vm2, %v347_v47, %v359_v52  ;;  %v354_v55 = vsel %vm281_vm0, %v350_v50, %v351_v51  ;;  %v357_v56 = vsel %vm281_vm0, %v351_v51, %v352_v48 }
  0x9f   : > { %368 = vst [vmem:[#allocation2 + $0x64] sm:$0xff] %v360_v54  ;;  %v356_v57 = vsel %vm6773_vm2, %v5103_v16, %v354_v55  ;;  %v358_v58 = vsel %vm6773_vm2, %v345_v49, %v357_v56  ;;  %vm1111_vm2 = vcmask 293888  }
  0xa0   : > { %366 = vst [vmem:[#allocation2 + $0x54] sm:$0xff] %v356_v57  ;;  %1174 = vrot.lane.b32.xlu2 %v5152_v53, %s4924_s14  ;;  %992 = vrot.lane.b32.xlu1 %v5071_v4, %s6804_s8 }
  0xa1   : > { %367 = vst [vmem:[#allocation2 + $0x5c] sm:$0xff] %v358_v58  ;;  %990 = vrot.lane.b32.xlu0 %v5074_v5, %s6804_s8 }
  0xa2   : > { %v5167_v60 = vpop.permute.xlu2 %456  ;;  %v381_v61 = vpop.permute.xlu1 %380 }
  0xa3   : > { %v461_v62 = vrot.slane %v5167_v60, 4  ;;  %v387_v63 = vrot.slane %v381_v61, 4  ;;  %v379_v6 = vpop.permute.xlu0 %378 }
  0xa4   : > { %v386_v7 = vrot.slane %v379_v6, 4 }
  0xa5   : > { %v469_v8 = vsel %vm6771_vm4, %v5167_v60, %v461_v62  ;;  %v393_v9 = vsel %vm281_vm0, %v387_v63, %v388_v59 }
  0xa6   : > { %477 = vst [vmem:[#allocation2 + $0xc0] sm:$0xf] %v469_v8  ;;  %v394_v10 = vsel %vm6775_vm5, %v381_v61, %v393_v9  ;;  %v390_v11 = vsel %vm281_vm0, %v386_v7, %v387_v63 }
  0xa7   : > { %403 = vst [vmem:[#allocation2 + $0x78] sm:$0xff] %v394_v10  ;;  %v392_v12 = vsel %vm6775_vm5, %v379_v6, %v390_v11 }
  0xa8   : > { %402 = vst [vmem:[#allocation2 + $0x70] sm:$0xff] %v392_v12  ;;  %882 = vrot.lane.b32.xlu2 %v5074_v5, %s6790_s30  ;;  %778 = vrot.lane.b32.xlu1 %v4996_v1, %s6794_s11 }
  0xa9   : > { %742 = vrot.lane.b32.xlu0 %v4996_v1, %s4919_s9 }
  0xaa   : > { %v5183_v14 = vpop.permute.xlu2 %738  ;;  %v415_v15 = vpop.permute.xlu1 %414 }
  0xab   : > { %v422_v16 = vrot.slane %v415_v15, 4  ;;  %v385_v17 = vpop.permute.xlu0 %384  ;;  %v746_v55 = vrot.slane %v5183_v14, 4 }
  0xac   : > { %v389_v18 = vrot.slane %v385_v17, 4 }
  0xad   : > { %v426_v19 = vsel %vm281_vm0, %v422_v16, %v423_v13 }
  0xae   : > { %v428_v20 = vsel %vm6772_vm6, %v415_v15, %v426_v19  ;;  %v395_v21 = vsel %vm281_vm0, %v388_v59, %v389_v18  ;;  %v397_v23 = vsel %vm6775_vm5, %v385_v17, %v389_v18 }
  0xaf   : > { %438 = vst [vmem:[#allocation2 + $0x8c] sm:$0xff] %v428_v20  ;;  %v396_v24 = vsel %vm6775_vm5, %v5118_v22, %v395_v21  ;;  %vm6777_vm5 = vcmask 441344  }
  0xb0   : > { %404 = vst [vmem:[#allocation2 + $0x80] sm:$0xff] %v396_v24  ;;  %920 = vrot.lane.b32.xlu2 %v5071_v4, %s6792_s7  ;;  %918 = vrot.lane.b32.xlu1 %v5074_v5, %s6792_s7 }
  0xb1   : > { %405 = vst [vmem:[#allocation2 + $0x88] sm:$0xf] %v397_v23  ;;  %884 = vrot.lane.b32.xlu0 %v5071_v4, %s6790_s30 }
  0xb2   : > { %v5197_v25 = vpop.permute.xlu2 %776  ;;  %v421_v26 = vpop.permute.xlu1 %420 }
  0xb3   : > { %v425_v27 = vrot.slane %v421_v26, 4  ;;  %v419_v28 = vpop.permute.xlu0 %418 }
  0xb4   : > { %v424_v29 = vrot.slane %v419_v28, 4 }
  0xb5   : > { %v433_v22 = vsel %vm6772_vm6, %v421_v26, %v425_v27 }
  0xb6   : > { %441 = vst [vmem:[#allocation2 + $0xa4] sm:$0xf] %v433_v22  ;;  %v429_v30 = vsel %vm281_vm0, %v423_v13, %v424_v29  ;;  %v431_v31 = vsel %vm281_vm0, %v424_v29, %v425_v27 }
  0xb7   : > { %v430_v5 = vsel %vm6772_vm6, %v5133_v36, %v429_v30  ;;  %v432_v32 = vsel %vm6772_vm6, %v419_v28, %v431_v31  ;;  %v458_v36 = vrot.slane %v5147_v46, 4  ;;  %vm1147_vm6 = vcmask 285696  }
  0xb8   : > { %439 = vst [vmem:[#allocation2 + $0x94] sm:$0xff] %v430_v5  ;;  %810 = vrot.lane.b32.xlu2 %v4993_v0, %s6798_s29  ;;  %706 = vrot.lane.b32.xlu1 %v4996_v1, %s4922_s12 }
  0xb9   : > { %440 = vst [vmem:[#allocation2 + $0x9c] sm:$0xff] %v432_v32  ;;  %670 = vrot.lane.b32.xlu0 %v4996_v1, %s4923_s13 }
  0xba   : > { %v5211_v4 = vpop.permute.xlu2 %702  ;;  %v455_v33 = vpop.permute.xlu1 %454 }
  0xbb   : > { %v460_v34 = vrot.slane %v455_v33, 4  ;;  %v453_v35 = vpop.permute.xlu0 %452  ;;  %v710_v21 = vrot.slane %v5211_v4, 4 }
  0xbc   : > { %v459_v37 = vrot.slane %v453_v35, 4 }
  0xbd   : > { %v467_v38 = vsel %vm281_vm0, %v460_v34, %v461_v62 }
  0xbe   : > { %v468_v39 = vsel %vm6771_vm4, %v455_v33, %v467_v38  ;;  %v462_v40 = vsel %vm281_vm0, %v458_v36, %v459_v37  ;;  %v465_v41 = vsel %vm281_vm0, %v459_v37, %v460_v34 }
  0xbf   : > { %476 = vst [vmem:[#allocation2 + $0xb8] sm:$0xff] %v468_v39  ;;  %v464_v42 = vsel %vm6771_vm4, %v5147_v46, %v462_v40  ;;  %v466_v43 = vsel %vm6771_vm4, %v453_v35, %v465_v41  ;;  %vm6787_vm4 = vcmask 228352  }
  0xc0   : > { %474 = vst [vmem:[#allocation2 + $0xa8] sm:$0xff] %v464_v42  ;;  %848 = vrot.lane.b32.xlu2 %v5005_v2, %s6802_s28  ;;  %846 = vrot.lane.b32.xlu1 %v4993_v0, %s6802_s28  ;;  %v783_v0 = vrot.slane %v5197_v25, 4 }
  0xc1   : > { %475 = vst [vmem:[#allocation2 + $0xb0] sm:$0xff] %v466_v43  ;;  %812 = vrot.lane.b32.xlu0 %v5005_v2, %s6798_s29 }
  0xc2   : > { %v5227_v44 = vpop.permute.xlu2 %1172  ;;  %v5229_v45 = vpop.permute.xlu1 %488 }
  0xc3   : > { %v495_v46 = vrot.slane %v5229_v45, 4  ;;  %v487_v47 = vpop.permute.xlu0 %486  ;;  %v1179_v16 = vrot.slane %v5227_v44, 4 }
  0xc4   : > { %v494_v48 = vrot.slane %v487_v47, 4 }
  0xc6   : > { %v498_v49 = vsel %vm281_vm0, %v494_v48, %v495_v46 }
  0xc7   : > { %v500_v50 = vsel %vm6812_vm7, %v487_v47, %v498_v49 }
  0xc8   : > { %510 = vst [vmem:[#allocation2 + $0xc4] sm:$0xff] %v500_v50  ;;  %598 = vrot.lane.b32.xlu2 %v4996_v1, %s4926_s16  ;;  %1138 = vrot.lane.b32.xlu1 %v5152_v53, %s4930_s20 }
  0xc9   : > { %1102 = vrot.lane.b32.xlu0 %v5152_v53, %s4928_s18 }
  0xca   : > { %v5243_v2 = vpop.permute.xlu2 %630  ;;  %v775_v51 = vpop.permute.xlu1 %774 }
  0xcb   : > { %v782_v52 = vrot.slane %v775_v51, 4  ;;  %v5245_v54 = vpop.permute.xlu0 %740 }
  0xcc   : > { %v747_v56 = vrot.slane %v5245_v54, 4 }
  0xcd   : > { %v786_v57 = vsel %vm281_vm0, %v782_v52, %v783_v0 }
  0xce   : > { %v788_v58 = vsel %vm6784_vm8, %v775_v51, %v786_v57  ;;  %v750_v59 = vsel %vm281_vm0, %v746_v55, %v747_v56  ;;  %v638_v57 = vrot.slane %v5243_v2, 4 }
  0xcf   : > { %798 = vst [vmem:[#allocation2 + $0x1a4] sm:$0xff] %v788_v58  ;;  %v752_v60 = vsel %vm6789_vm9, %v5183_v14, %v750_v59 }
  0xd0   : > { %762 = vst [vmem:[#allocation2 + $0x188] sm:$0xff] %v752_v60  ;;  %780 = vrot.lane.b32.xlu2 %v5008_v3, %s6794_s11  ;;  %744 = vrot.lane.b32.xlu1 %v5008_v3, %s4919_s9 }
  0xd1   : > { %634 = vrot.lane.b32.xlu0 %v4996_v1, %s6796_s15 }
  0xd2   : > { %v5264_v61 = vpop.permute.xlu2 %524  ;;  %v5266_v62 = vpop.permute.xlu1 %668 }
  0xd3   : > { %v675_v63 = vrot.slane %v5266_v62, 4  ;;  %v667_v6 = vpop.permute.xlu0 %666  ;;  %v531_v49 = vrot.slane %v5264_v61, 4 }
  0xd4   : > { %v674_v7 = vrot.slane %v667_v6, 4 }
  0xd6   : > { %v678_v8 = vsel %vm281_vm0, %v674_v7, %v675_v63  ;;  %v4728_v9 = vld [vmem:[#allocation2 + $0x1a0] sm:$0xf0]  ;;  %v4104_v10 = vld [vmem:[#allocation2 + $0x1a4] sm:$0xf0] }
  0xd7   : > { %v680_v11 = vsel %vm6788_vm10, %v667_v6, %v678_v8  ;;  %v4102_v12 = vld [vmem:[#allocation2 + $0x188] sm:$0xf]  ;;  %v4725_v13 = vld [vmem:[#allocation2 + $0x18c] sm:$0xf] }
  0xd8   : > { %690 = vst [vmem:[#allocation2 + $0x150] sm:$0xff] %v680_v11  ;;  %526 = vrot.lane.b32.xlu2 %v4996_v1, %s6800_s17  ;;  %1066 = vrot.lane.b32.xlu1 %v5152_v53, %s6780_s23  ;;  %v4103_v14 = vor.u32 %v4728_v9, %v4102_v12  ;;  %v4107_v15 = vor.u32 %v4725_v13, %v4104_v10 }
  0xd9   : > { %1030 = vrot.lane.b32.xlu0 %v5152_v53, %s4932_s24 }
  0xda   : > { %1831 = vmatpush.bf16.msra.mxu0 %v4103_v14  ;;  %1857 = vmatpush.bf16.msra.mxu2 %v4107_v15  ;;  %v5280_v17 = vpop.permute.xlu2 %1098  ;;  %v1171_v18 = vpop.permute.xlu1 %1170 }
  0xdb   : > { %v1178_v19 = vrot.slane %v1171_v18, 4  ;;  %v5282_v20 = vpop.permute.xlu0 %704 }
  0xdc   : > { %v711_v23 = vrot.slane %v5282_v20, 4 }
  0xdd   : > { %v1182_v24 = vsel %vm281_vm0, %v1178_v19, %v1179_v16 }
  0xde   : > { %v1184_v26 = vsel %vm6783_vm11, %v1171_v18, %v1182_v24  ;;  %v714_v27 = vsel %vm281_vm0, %v710_v21, %v711_v23 }
  0xdf   : > { %v716_v28 = vsel %vm6786_vm12, %v5211_v4, %v714_v27  ;;  %v1609_v29 = vunpack.c.l.b16 %v1184_v26  ;;  %v1610_v22 = vunpack.c.h.b16 %v1184_v26  ;;  %v4074_v38 = vld [vmem:[#allocation2 + $0x150] sm:$0xf]  ;;  %v4718_v39 = vld [vmem:[#allocation2 + $0x154] sm:$0xf] }
  0xe0   : > { %726 = vst [vmem:[#allocation2 + $0x16c] sm:$0xff] %v716_v28  ;;  %708 = vrot.lane.b32.xlu2 %v5008_v3, %s4922_s12  ;;  %672 = vrot.lane.b32.xlu1 %v5008_v3, %s4923_s13 }
  0xe1   : > { %562 = vrot.lane.b32.xlu0 %v4996_v1, %s6806_s19  ;;  %v1707_v30 = vpack.c.b16 %v1609_v29, %v1609_v29  ;;  %v1708_v31 = vpack.c.b16 %v1610_v22, %v1610_v22 }
  0xe2   : > { %v5301_v5 = vpop.permute.xlu2 %1136  ;;  %v5303_v32 = vpop.permute.xlu1 %596 }
  0xe3   : > { %v603_v4 = vrot.slane %v5303_v32, 4  ;;  %v595_v33 = vpop.permute.xlu0 %594  ;;  %v1811_v34 = vsel %vm281_vm0, %v1707_v30, 0  ;;  %v1814_v35 = vsel %vm281_vm0, %v1708_v31, 0  ;;  %v1143_v26 = vrot.slane %v5301_v5, 4 }
  0xe4   : > { %v602_v36 = vrot.slane %v595_v33, 4  ;;  %1846 = vmatpush.bf16.msra.mxu1 %v1811_v34  ;;  %1872 = vmatpush.bf16.msra.mxu3 %v1814_v35  ;;  %v1106_v30 = vrot.slane %v5280_v17, 4  ;;  %v5366_v34 = vld [vmem:[%s4990_s26 + $0x1c] sm:$0xff] }
  0xe6   : > { %v606_v37 = vsel %vm281_vm0, %v602_v36, %v603_v4 }
  0xe7   : > { %v608_v40 = vsel %vm607_vm13, %v595_v33, %v606_v37  ;;  %v4721_v41 = vld [vmem:[#allocation2 + $0x168] sm:$0xf0]  ;;  %v4076_v42 = vld [vmem:[#allocation2 + $0x16c] sm:$0xf0] }
  0xe8   : > { %v2043_v43 = vld [vmem:[#allocation2 + $0x16c] sm:$0xff]  ;;  %618 = vst [vmem:[#allocation2 + $0x118] sm:$0xff] %v608_v40  ;;  %490 = vrot.lane.b32.xlu2 %v4996_v1, %s4920_s10  ;;  %994 = vrot.lane.b32.xlu1 %v5152_v53, %s6804_s8  ;;  %v4075_v47 = vor.u32 %v4721_v41, %v4074_v38  ;;  %v4079_v48 = vor.u32 %v4718_v39, %v4076_v42 }
  0xe9   : > { %958 = vrot.lane.b32.xlu0 %v5152_v53, %s6778_s25  ;;  %2047 = vst [vmem:[#allocation2 + $0x2f4] sm:$0xff] %v2043_v43 }
  0xea   : > { %1832 = vmatpush.bf16.msra.mxu0 %v4075_v47  ;;  %1858 = vmatpush.bf16.msra.mxu2 %v4079_v48  ;;  %v5319_v50 = vpop.permute.xlu2 %1062  ;;  %v523_v51 = vpop.permute.xlu1 %522  ;;  %v4700_v47 = vld [vmem:[#allocation2 + $0xc0] sm:$0xf0]  ;;  %v3992_v48 = vld [vmem:[#allocation2 + $0xc4] sm:$0xf0] }
  0xeb   : > { %v530_v52 = vrot.slane %v523_v51, 4  ;;  %v5321_v55 = vpop.permute.xlu0 %632 }
  0xec   : > { %v639_v58 = vrot.slane %v5321_v55, 4 }
  0xed   : > { %v534_v59 = vsel %vm281_vm0, %v530_v52, %v531_v49 }
  0xee   : > { %v536_v60 = vsel %vm535_vm14, %v523_v51, %v534_v59  ;;  %v642_v6 = vsel %vm281_vm0, %v638_v57, %v639_v58  ;;  %v3990_v59 = vld [vmem:[#allocation2 + $0xa8] sm:$0xf] }
  0xef   : > { %546 = vst [vmem:[#allocation2 + $0xe0] sm:$0xff] %v536_v60  ;;  %v644_v7 = vsel %vm643_vm15, %v5243_v2, %v642_v6  ;;  %v4046_v13 = vld [vmem:[#allocation2 + $0x118] sm:$0xf]  ;;  %v4711_v18 = vld [vmem:[#allocation2 + $0x11c] sm:$0xf] }
  0xf0   : > { %654 = vst [vmem:[#allocation2 + $0x134] sm:$0xff] %v644_v7  ;;  %886 = vrot.lane.b32.xlu2 %v5152_v53, %s6790_s30  ;;  %636 = vrot.lane.b32.xlu1 %v5008_v3, %s6796_s15  ;;  %v4697_v60 = vld [vmem:[#allocation2 + $0xac] sm:$0xf]  ;;  %v3991_v7 = vor.u32 %v4700_v47, %v3990_v59  ;;  %v1070_v47 = vrot.slane %v5319_v50, 4 }
  0xf1   : > { %600 = vrot.lane.b32.xlu0 %v5008_v3, %s4926_s16 }
  0xf2   : > { %v5340_v8 = vpop.permute.xlu2 %956  ;;  %v5342_v9 = vpop.permute.xlu1 %560 }
  0xf3   : > { %v567_v10 = vrot.slane %v5342_v9, 4  ;;  %v559_v11 = vpop.permute.xlu0 %558 }
  0xf4   : > { %v566_v12 = vrot.slane %v559_v11, 4 }
  0xf6   : > { %v570_v2 = vsel %vm281_vm0, %v566_v12, %v567_v10  ;;  %v4018_v36 = vld [vmem:[#allocation2 + $0xe0] sm:$0xf]  ;;  %v4704_v37 = vld [vmem:[#allocation2 + $0xe4] sm:$0xf]  ;;  %v4693_v12 = vld [vmem:[#allocation2 + $0x88] sm:$0xf0] }
  0xf7   : > { %v572_v14 = vsel %vm6787_vm4, %v559_v11, %v570_v2  ;;  %v4714_v15 = vld [vmem:[#allocation2 + $0x130] sm:$0xf0]  ;;  %v4048_v19 = vld [vmem:[#allocation2 + $0x134] sm:$0xf0]  ;;  %v3995_v11 = vor.u32 %v4697_v60, %v3992_v48  ;;  %v3962_v2 = vld [vmem:[#allocation2 + $0x70] sm:$0xf] }
  0xf8   : > { %582 = vst [vmem:[#allocation2 + $0xfc] sm:$0xff] %v572_v14  ;;  %564 = vrot.lane.b32.xlu2 %v5008_v3, %s6806_s19  ;;  %528 = vrot.lane.b32.xlu1 %v5008_v3, %s6800_s17  ;;  %v4047_v21 = vor.u32 %v4714_v15, %v4046_v13  ;;  %v4051_v24 = vor.u32 %v4711_v18, %v4048_v19  ;;  %v3964_v15 = vld [vmem:[#allocation2 + $0x8c] sm:$0xf0] }
  0xf9   : > { %922 = vrot.lane.b32.xlu0 %v5152_v53, %s6792_s7 }
  0xfa   : > { %1833 = vmatpush.bf16.msra.mxu0 %v4047_v21  ;;  %1859 = vmatpush.bf16.msra.mxu2 %v4051_v24  ;;  %v5356_v27 = vpop.permute.xlu2 %1174  ;;  %v1135_v28 = vpop.permute.xlu1 %1134  ;;  %v3963_v21 = vor.u32 %v4693_v12, %v3962_v2  ;;  %v3908_v2 = vld [vmem:[#allocation2 + $0x1c] sm:$0xf0] }
  0xfb   : > { %v1142_v29 = vrot.slane %v1135_v28, 4  ;;  %v5358_v22 = vpop.permute.xlu0 %1100  ;;  %v1180_v43 = vrot.slane %v5356_v27, 4 }
  0xfc   : > { %v1107_v31 = vrot.slane %v5358_v22, 4 }
  0xfd   : > { %v1146_v33 = vsel %vm281_vm0, %v1142_v29, %v1143_v26 }
  0xfe   : > { %v1148_v53 = vsel %vm1147_vm6, %v1135_v28, %v1146_v33  ;;  %v1110_v35 = vsel %vm281_vm0, %v1106_v30, %v1107_v31  ;;  %v4690_v30 = vld [vmem:[#allocation2 + $0x74] sm:$0xf] }
  0xff   : > { %1158 = vst [vmem:[#allocation2 + $0x2bc] sm:$0xff] %v1148_v53  ;;  %v1112_v38 = vsel %vm1111_vm2, %v5280_v17, %v1110_v35  ;;  %v4707_v39 = vld [vmem:[#allocation2 + $0xf8] sm:$0xf0]  ;;  %v4020_v40 = vld [vmem:[#allocation2 + $0xfc] sm:$0xf0]  ;;  %v963_v53 = vrot.slane %v5340_v8, 4  ;;  %v3967_v35 = vor.u32 %v4690_v30, %v3964_v15 }
 0x100   : > { %1122 = vst [vmem:[#allocation2 + $0x2a0] sm:$0xff] %v1112_v38  ;;  %1176 = vrot.lane.b32.xlu2 %v5366_v34, %s4924_s14  ;;  %850 = vrot.lane.b32.xlu1 %v4996_v1, %s6802_s28  ;;  %v4019_v41 = vor.u32 %v4707_v39, %v4018_v36  ;;  %v4023_v42 = vor.u32 %v4704_v37, %v4020_v40  ;;  %v4686_v36 = vld [vmem:[#allocation2 + $0x50] sm:$0xf0]  ;;  %v3936_v38 = vld [vmem:[#allocation2 + $0x54] sm:$0xf0] }
 0x101   : > { %814 = vrot.lane.b32.xlu0 %v4996_v1, %s6798_s29  ;;  %v1185_v1 = vsel %vm281_vm0, %v1179_v16, %v1180_v43 }
 0x102   : > { %1834 = vmatpush.bf16.msra.mxu0 %v4019_v41  ;;  %1860 = vmatpush.bf16.msra.mxu2 %v4023_v42  ;;  %v5381_v17 = vpop.permute.xlu2 %882  ;;  %v5383_v51 = vpop.permute.xlu1 %1028  ;;  %v5397_v29 = vsel %vm6783_vm11, %v5227_v44, %v1185_v1  ;;  %v3934_v41 = vld [vmem:[#allocation2 + $0x38] sm:$0xf]  ;;  %v4676_v1 = vld [vmem:[#allocation2 + $0x4] sm:$0xf]  ;;  %vm895_vm11 = vcmask 457728  }
 0x103   : > { %v1035_v52 = vrot.slane %v5383_v51, 4  ;;  %v1027_v57 = vpop.permute.xlu0 %1026  ;;  %v1612_v42 = vunpack.c.h.b16 %v5397_v29  ;;  %v3935_v48 = vor.u32 %v4686_v36, %v3934_v41 }
 0x104   : > { %v1034_v6 = vrot.slane %v1027_v57, 4 }
 0x106   : > { %v1038_v13 = vsel %vm281_vm0, %v1034_v6, %v1035_v52  ;;  %1835 = vmatpush.bf16.msra.mxu0 %v3991_v7  ;;  %1861 = vmatpush.bf16.msra.mxu2 %v3995_v11  ;;  %v4763_v14 = vld [vmem:[#allocation2 + $0x2b8] sm:$0xf0]  ;;  %v4244_v18 = vld [vmem:[#allocation2 + $0x2bc] sm:$0xf0] }
 0x107   : > { %v1040_v19 = vsel %vm1039_vm1, %v1027_v57, %v1038_v13  ;;  %v4242_v24 = vld [vmem:[#allocation2 + $0x2a0] sm:$0xf]  ;;  %v4760_v28 = vld [vmem:[#allocation2 + $0x2a4] sm:$0xf]  ;;  %v4683_v57 = vld [vmem:[#allocation2 + $0x3c] sm:$0xf] }
 0x108   : > { %1050 = vst [vmem:[#allocation2 + $0x268] sm:$0xff] %v1040_v19  ;;  %1140 = vrot.lane.b32.xlu2 %v5366_v34, %s4930_s20  ;;  %1104 = vrot.lane.b32.xlu1 %v5366_v34, %s4928_s18  ;;  %v4243_v16 = vor.u32 %v4763_v14, %v4242_v24  ;;  %v4247_v33 = vor.u32 %v4760_v28, %v4244_v18  ;;  %v3906_v6 = vld [vmem:[#allocation2] sm:$0xf]  ;;  %v4679_v7 = vld [vmem:[#allocation2 + $0x18] sm:$0xf0] }
 0x109   : > { %492 = vrot.lane.b32.xlu0 %v5008_v3, %s4920_s10  ;;  %v3939_v60 = vor.u32 %v4683_v57, %v3936_v38  ;;  %v1710_v14 = vpack.c.b16 %v1612_v42, %v1612_v42  ;;  %v3907_v15 = vor.u32 %v4679_v7, %v3906_v6  ;;  %v3911_v18 = vor.u32 %v4676_v1, %v3908_v2  ;;  %v841_v7 = vld [vmem:[%s4990_s26 + $0x18] sm:$0xff]  ;;  %s6826_s26 = smov 118  }
 0x10a   : > { %1836 = vmatpush.bf16.msra.mxu0 %v3963_v21  ;;  %1847 = vmatpush.bf16.msra.mxu1 %v4243_v16  ;;  %v5406_v44 = vpop.permute.xlu2 %920  ;;  %v955_v37 = vpop.permute.xlu1 %954 }
 0x10b   : > { %1862 = vmatpush.bf16.msra.mxu2 %v3967_v35  ;;  %1873 = vmatpush.bf16.msra.mxu3 %v4247_v33  ;;  %v962_v39 = vrot.slane %v955_v37, 4  ;;  %v5408_v40 = vpop.permute.xlu0 %1064  ;;  %v1820_v28 = vsel %vm281_vm0, %v1710_v14, 0 }
 0x10c   : > { %v1071_v3 = vrot.slane %v5408_v40, 4 }
 0x10d   : > { %v966_v59 = vsel %vm281_vm0, %v962_v39, %v963_v53 }
 0x10e   : > { %v968_v11 = vsel %vm6777_vm5, %v955_v37, %v966_v59  ;;  %v1074_v12 = vsel %vm281_vm0, %v1070_v47, %v1071_v3  ;;  %1837 = vmatpush.bf16.msra.mxu0 %v3935_v48  ;;  %vm6782_vm5 = vcmask 375808   ;;  %v5451_v59 = vld [vmem:[%s6756_s2] sm:$0xff] }
 0x10f   : > { %978 = vst [vmem:[#allocation2 + $0x230] sm:$0xff] %v968_v11  ;;  %v1076_v13 = vsel %vm1075_vm3, %v5319_v50, %v1074_v12  ;;  %1863 = vmatpush.bf16.msra.mxu2 %v3939_v60  ;;  %v4214_v33 = vld [vmem:[#allocation2 + $0x268] sm:$0xf]  ;;  %v4753_v37 = vld [vmem:[#allocation2 + $0x26c] sm:$0xf]  ;;  %v1314_v6 = vunpack.c.l.b16 %v5451_v59 }
 0x110   : > { %1086 = vst [vmem:[#allocation2 + $0x284] sm:$0xff] %v1076_v13  ;;  %960 = vrot.lane.b32.xlu2 %v5366_v34, %s6778_s25  ;;  %1068 = vrot.lane.b32.xlu1 %v5366_v34, %s6780_s23  ;;  %s4940_s23 = smov 111   ;;  %s6825_s25 = smov 127  }
 0x111   : > { %1032 = vrot.lane.b32.xlu0 %v5366_v34, %s4932_s24  ;;  %v5466_v13 = vpack.c.b16 %v1314_v6, %v1314_v6 }
 0x112   : > { %1838 = vmatpush.bf16.msra.mxu0 %v3907_v15  ;;  %v5428_v19 = vpop.permute.xlu2 %810  ;;  %v5430_v21 = vpop.permute.xlu1 %992 }
 0x113   : > { %1864 = vmatpush.bf16.msra.mxu2 %v3911_v18  ;;  %v999_v50 = vrot.slane %v5430_v21, 4  ;;  %v991_v24 = vpop.permute.xlu0 %990 }
 0x114   : > { %v998_v16 = vrot.slane %v991_v24, 4 }
 0x115   : > { %1839 = vmatmul.bf16.vlgmr.msra.gmra.mxu0 %v5466_v13 }
 0x116   : > { %v1002_v30 = vsel %vm281_vm0, %v998_v16, %v999_v50  ;;  %v4186_v1 = vld [vmem:[#allocation2 + $0x230] sm:$0xf]  ;;  %v4746_v2 = vld [vmem:[#allocation2 + $0x234] sm:$0xf]  ;;  %1865 = vmatmul.bf16.vlgmr.msra.gmra.mxu2 %v5466_v13 }
 0x117   : > { %1924 = vmatpush.bf16.msrb.mxu2 %v1820_v28  ;;  %v1004_v35 = vsel %vm6782_vm5, %v991_v24, %v1002_v30  ;;  %v4756_v36 = vld [vmem:[#allocation2 + $0x280] sm:$0xf0]  ;;  %v4216_v38 = vld [vmem:[#allocation2 + $0x284] sm:$0xf0]  ;;  %v927_v24 = vrot.slane %v5406_v44, 4  ;;  %vm6785_vm5 = vcmask 449536  }
 0x118   : > { %1014 = vst [vmem:[#allocation2 + $0x24c] sm:$0xff] %v1004_v35  ;;  %924 = vrot.lane.b32.xlu2 %v5366_v34, %s6792_s7  ;;  %888 = vrot.lane.b32.xlu1 %v5366_v34, %s6790_s30  ;;  %v4215_v39 = vor.u32 %v4756_v36, %v4214_v33  ;;  %v4219_v41 = vor.u32 %v4753_v37, %v4216_v38  ;;  %v890_v33 = vrot.slane %v5381_v17, 4  ;;  %s6827_s30 = smov 116   ;;  %s6828_s7 = smov 117  }
 0x119   : > { %996 = vrot.lane.b32.xlu0 %v5366_v34, %s6804_s8 }
 0x11a   : > { %1848 = vmatpush.bf16.msra.mxu1 %v4215_v39  ;;  %1874 = vmatpush.bf16.msra.mxu3 %v4219_v41  ;;  %v5444_v42 = vpop.permute.xlu2 %848  ;;  %v779_v47 = vpop.permute.xlu1 %778 }
 0x11b   : > { %v784_v48 = vrot.slane %v779_v47, 4  ;;  %v5446_v57 = vpop.permute.xlu0 %742 }
 0x11c   : > { %v748_v60 = vrot.slane %v5446_v57, 4 }
 0x11d   : > { %v789_v34 = vsel %vm281_vm0, %v783_v0, %v784_v48 }
 0x11e   : > { %v790_v11 = vsel %vm6784_vm8, %v5197_v25, %v789_v34  ;;  %v753_v12 = vsel %vm281_vm0, %v747_v56, %v748_v60 }
 0x11f   : > { %799 = vst [vmem:[#allocation2 + $0x1ac] sm:$0xff] %v790_v11  ;;  %v754_v14 = vsel %vm6789_vm9, %v5245_v54, %v753_v12  ;;  %v4749_v15 = vld [vmem:[#allocation2 + $0x248] sm:$0xf0]  ;;  %v4188_v0 = vld [vmem:[#allocation2 + $0x24c] sm:$0xf0] }
 0x120   : > { %763 = vst [vmem:[#allocation2 + $0x190] sm:$0xff] %v754_v14  ;;  %852 = vrot.lane.b32.xlu1 %v841_v7, %s6802_s28  ;;  %v4187_v25 = vor.u32 %v4749_v15, %v4186_v1  ;;  %v4191_v18 = vor.u32 %v4746_v2, %v4188_v0 }
 0x121   : > { %816 = vrot.lane.b32.xlu0 %v841_v7, %s6798_s29 }
 0x122   : > { %1849 = vmatpush.bf16.msra.mxu1 %v4187_v25  ;;  %1875 = vmatpush.bf16.msra.mxu3 %v4191_v18  ;;  %v5475_v56 = vpop.permute.xlu2 %598  ;;  %v919_v54 = vpop.permute.xlu1 %918 }
 0x123   : > { %v604_v28 = vrot.slane %v5475_v56, 4  ;;  %v926_v16 = vrot.slane %v919_v54, 4  ;;  %v5478_v30 = vpop.permute.xlu0 %884 }
 0x124   : > { %v891_v35 = vrot.slane %v5478_v30, 4 }
 0x125   : > { %v609_v36 = vsel %vm281_vm0, %v603_v4, %v604_v28  ;;  %v930_v37 = vsel %vm281_vm0, %v926_v16, %v927_v24 }
 0x126   : > { %v610_v38 = vsel %vm607_vm13, %v5303_v32, %v609_v36  ;;  %v932_v39 = vsel %vm6785_vm5, %v919_v54, %v930_v37  ;;  %v894_v41 = vsel %vm281_vm0, %v890_v33, %v891_v35  ;;  %v4112_v6 = vld [vmem:[#allocation2 + $0x1ac] sm:$0xf0]  ;;  %vm823_vm5 = vcmask 56320  }
 0x127   : > { %619 = vst [vmem:[#allocation2 + $0x120] sm:$0xff] %v610_v38  ;;  %v896_v34 = vsel %vm895_vm11, %v5381_v17, %v894_v41  ;;  %v4726_v7 = vld [vmem:[#allocation2 + $0x194] sm:$0xf] }
 0x128   : > { %942 = vst [vmem:[#allocation2 + $0x214] sm:$0xff] %v932_v39  ;;  %v4115_v4 = vor.u32 %v4726_v7, %v4112_v6  ;;  %v818_v6 = vrot.slane %v5428_v19, 4 }
 0x129   : > { %906 = vst [vmem:[#allocation2 + $0x1f8] sm:$0xff] %v896_v34 }
 0x12a   : > { %1909 = vmatpush.bf16.msrb.mxu0 %v4115_v4  ;;  %v781_v11 = vpop.permute.xlu2 %780  ;;  %v707_v12 = vpop.permute.xlu1 %706 }
 0x12b   : > { %v785_v1 = vrot.slane %v781_v11, 4  ;;  %v712_v32 = vrot.slane %v707_v12, 4  ;;  %v5498_v2 = vpop.permute.xlu0 %670 }
 0x12c   : > { %v676_v14 = vrot.slane %v5498_v2, 4 }
 0x12d   : > { %v791_v15 = vsel %vm281_vm0, %v784_v48, %v785_v1  ;;  %v793_v0 = vsel %vm6784_vm8, %v781_v11, %v785_v1  ;;  %v717_v17 = vsel %vm281_vm0, %v711_v23, %v712_v32 }
 0x12e   : > { %v792_v25 = vsel %vm6784_vm8, %v779_v47, %v791_v15  ;;  %801 = vst [vmem:[#allocation2 + $0x1bc] sm:$0xf] %v793_v0  ;;  %v718_v18 = vsel %vm6786_vm12, %v5282_v20, %v717_v17  ;;  %v681_v54 = vsel %vm281_vm0, %v675_v63, %v676_v14  ;;  %v855_v47 = vrot.slane %v5444_v42, 4 }
 0x12f   : > { %800 = vst [vmem:[#allocation2 + $0x1b4] sm:$0xff] %v792_v25  ;;  %v682_v48 = vsel %vm6788_vm10, %v5266_v62, %v681_v54  ;;  %v4742_v16 = vld [vmem:[#allocation2 + $0x210] sm:$0xf0]  ;;  %v4160_v33 = vld [vmem:[#allocation2 + $0x214] sm:$0xf0]  ;;  %vm859_vm8 = vcmask 48128  }
 0x130   : > { %727 = vst [vmem:[#allocation2 + $0x174] sm:$0xff] %v718_v18  ;;  %v4158_v23 = vld [vmem:[#allocation2 + $0x1f8] sm:$0xf]  ;;  %v4739_v36 = vld [vmem:[#allocation2 + $0x1fc] sm:$0xf] }
 0x131   : > { %691 = vst [vmem:[#allocation2 + $0x158] sm:$0xff] %v682_v48  ;;  %v4159_v37 = vor.u32 %v4742_v16, %v4158_v23  ;;  %v4163_v20 = vor.u32 %v4739_v36, %v4160_v33  ;;  %v1611_v23 = vunpack.c.l.b16 %v5397_v29 }
 0x132   : > { %v5517_v38 = vpop.permute.xlu2 %526  ;;  %v847_v39 = vpop.permute.xlu1 %846 }
 0x133   : > { %1850 = vmatpush.bf16.msra.mxu1 %v4159_v37  ;;  %1876 = vmatpush.bf16.msra.mxu3 %v4163_v20  ;;  %v532_v63 = vrot.slane %v5517_v38, 4  ;;  %v854_v41 = vrot.slane %v847_v39, 4  ;;  %v5520_v62 = vpop.permute.xlu0 %812 }
 0x134   : > { %v819_v34 = vrot.slane %v5520_v62, 4 }
 0x135   : > { %v537_v7 = vsel %vm281_vm0, %v531_v49, %v532_v63  ;;  %v858_v4 = vsel %vm281_vm0, %v854_v41, %v855_v47 }
 0x136   : > { %v538_v11 = vsel %vm535_vm14, %v5264_v61, %v537_v7  ;;  %v860_v1 = vsel %vm859_vm8, %v847_v39, %v858_v4  ;;  %v822_v15 = vsel %vm281_vm0, %v818_v6, %v819_v34  ;;  %v4729_v6 = vld [vmem:[#allocation2 + $0x1a8] sm:$0xf0]  ;;  %v1315_v7 = vunpack.c.h.b16 %v5451_v59 }
 0x137   : > { %547 = vst [vmem:[#allocation2 + $0xe8] sm:$0xff] %v538_v11  ;;  %v824_v0 = vsel %vm823_vm5, %v5428_v19, %v822_v15  ;;  %v4084_v17 = vld [vmem:[#allocation2 + $0x174] sm:$0xf0]  ;;  %v1709_v11 = vpack.c.b16 %v1611_v23, %v1611_v23 }
 0x138   : > { %v2044_v25 = vld [vmem:[#allocation2 + $0x174] sm:$0xff]  ;;  %870 = vst [vmem:[#allocation2 + $0x1dc] sm:$0xff] %v860_v1  ;;  %v4719_v49 = vld [vmem:[#allocation2 + $0x15c] sm:$0xf] }
 0x139   : > { %834 = vst [vmem:[#allocation2 + $0x1c0] sm:$0xff] %v824_v0  ;;  %v4087_v18 = vor.u32 %v4719_v49, %v4084_v17  ;;  %v5567_v49 = vpack.c.b16 %v1315_v7, %v1315_v7  ;;  %v4082_v59 = vld [vmem:[#allocation2 + $0x158] sm:$0xf] }
 0x13a   : > { %v709_v54 = vpop.permute.xlu2 %708  ;;  %v5540_v48 = vpop.permute.xlu1 %1138  ;;  %2048 = vst [vmem:[#allocation2 + $0x2fc] sm:$0xff] %v2044_v25 }
 0x13b   : > { %1910 = vmatpush.bf16.msrb.mxu0 %v4087_v18  ;;  %v713_v61 = vrot.slane %v709_v54, 4  ;;  %v1144_v16 = vrot.slane %v5540_v48, 4  ;;  %v5543_v33 = vpop.permute.xlu0 %1102  ;;  %v4722_v18 = vld [vmem:[#allocation2 + $0x170] sm:$0xf0] }
 0x13c   : > { %v1108_v19 = vrot.slane %v5543_v33, 4 }
 0x13d   : > { %v719_v36 = vsel %vm281_vm0, %v712_v32, %v713_v61  ;;  %v721_v37 = vsel %vm6786_vm12, %v709_v54, %v713_v61  ;;  %v1149_v20 = vsel %vm281_vm0, %v1143_v26, %v1144_v16  ;;  %v4110_v32 = vld [vmem:[#allocation2 + $0x190] sm:$0xf]  ;;  %v1817_v61 = vsel %vm281_vm0, %v1709_v11, 0 }
 0x13e   : > { %v720_v39 = vsel %vm6786_vm12, %v707_v12, %v719_v36  ;;  %729 = vst [vmem:[#allocation2 + $0x184] sm:$0xf] %v721_v37  ;;  %v1150_v41 = vsel %vm1147_vm6, %v5301_v5, %v1149_v20  ;;  %v1113_v29 = vsel %vm281_vm0, %v1107_v31, %v1108_v19  ;;  %v4111_v25 = vor.u32 %v4729_v6, %v4110_v32 }
 0x13f   : > { %728 = vst [vmem:[#allocation2 + $0x17c] sm:$0xff] %v720_v39  ;;  %v1114_v26 = vsel %vm1111_vm2, %v5358_v22, %v1113_v29  ;;  %v4735_v4 = vld [vmem:[#allocation2 + $0x1d8] sm:$0xf0]  ;;  %v4132_v12 = vld [vmem:[#allocation2 + $0x1dc] sm:$0xf0]  ;;  %vm1805_vm12 = vcmask 719872  }
 0x140   : > { %2049 = vst [vmem:[#allocation2 + $0x304] sm:$0xff] %v720_v39  ;;  %v4130_v1 = vld [vmem:[#allocation2 + $0x1c0] sm:$0xf]  ;;  %v4732_v5 = vld [vmem:[#allocation2 + $0x1c4] sm:$0xf] }
 0x141   : > { %1159 = vst [vmem:[#allocation2 + $0x2c4] sm:$0xff] %v1150_v41  ;;  %v4131_v15 = vor.u32 %v4735_v4, %v4130_v1  ;;  %v4135_v0 = vor.u32 %v4732_v5, %v4132_v12  ;;  %v4083_v41 = vor.u32 %v4722_v18, %v4082_v59 }
 0x142   : > { %1123 = vst [vmem:[#allocation2 + $0x2a8] sm:$0xff] %v1114_v26  ;;  %v5565_v17 = vpop.permute.xlu2 %490  ;;  %v745_v31 = vpop.permute.xlu1 %744 }
 0x143   : > { %1851 = vmatpush.bf16.msra.mxu1 %v4131_v15  ;;  %1877 = vmatpush.bf16.msra.mxu3 %v4135_v0  ;;  %v496_v22 = vrot.slane %v5565_v17, 4  ;;  %v749_v54 = vrot.slane %v745_v31, 4  ;;  %v5571_v23 = vpop.permute.xlu0 %634 }
 0x144   : > { %v640_v36 = vrot.slane %v5571_v23, 4 }
 0x145   : > { %v501_v37 = vsel %vm281_vm0, %v495_v46, %v496_v22  ;;  %v755_v20 = vsel %vm281_vm0, %v748_v60, %v749_v54  ;;  %v757_v39 = vsel %vm6789_vm9, %v745_v31, %v749_v54  ;;  %v2046_v15 = vld [vmem:[#allocation2 + $0x184] sm:$0xf]  ;;  %v4054_v54 = vld [vmem:[#allocation2 + $0x120] sm:$0xf] }
 0x146   : > { %v502_v29 = vsel %vm6812_vm7, %v5229_v45, %v501_v37  ;;  %v756_v32 = vsel %vm6789_vm9, %v5446_v57, %v755_v20  ;;  %765 = vst [vmem:[#allocation2 + $0x1a0] sm:$0xf] %v757_v39  ;;  %v645_v46 = vsel %vm281_vm0, %v639_v58, %v640_v36  ;;  %4269 = vmatmul.msk.bf16.vlgmr.msra.gmra.mxu3 %vm1805_vm12, %v5567_v49  ;;  %v1307_v37 = vld [vmem:[%s6757_s3] sm:$0xff]  ;;  %vm6816_vm9 = vcmask 441344  }
 0x147   : > { %1883 = vmatpush.bf16.msrb.mxu1 %v4111_v25  ;;  %1898 = vmatpush.bf16.msrb.mxu3 %v1817_v61  ;;  %511 = vst [vmem:[#allocation2 + $0xcc] sm:$0xff] %v502_v29  ;;  %v646_v45 = vsel %vm643_vm15, %v5321_v55, %v645_v46  ;;  %v4939_v25 = vmov 0   ;;  %v4712_v61 = vld [vmem:[#allocation2 + $0x124] sm:$0xf] }
 0x148   : > { %4268 = vmatmul.msk.bf16.vlgmr.msra.gmra.mxu1 %vm1805_vm12, %v5567_v49  ;;  %764 = vst [vmem:[#allocation2 + $0x198] sm:$0xff] %v756_v32  ;;  %v4764_v57 = vld [vmem:[#allocation2 + $0x2c0] sm:$0xf0]  ;;  %v4252_v60 = vld [vmem:[#allocation2 + $0x2c4] sm:$0xf0]  ;;  %4903 = vset.pattern.permute.xlu2 %v4939_v25 }
 0x149   : > { %655 = vst [vmem:[#allocation2 + $0x13c] sm:$0xff] %v646_v45  ;;  %v4250_v6 = vld [vmem:[#allocation2 + $0x2a8] sm:$0xf]  ;;  %v4761_v7 = vld [vmem:[#allocation2 + $0x2ac] sm:$0xf]  ;;  %4904 = vset.pattern.permute.xlu0 %v4939_v25  ;;  %1310 = vperm.xlu2 %4903, %v1307_v37  }
 0x14a   : > { %v4251_v26 = vor.u32 %v4764_v57, %v4250_v6  ;;  %v4255_v4 = vor.u32 %v4761_v7, %v4252_v60  ;;  %v5598_v58 = vpop.permute.xlu2 %886  ;;  %v5600_v12 = vpop.permute.xlu1 %1066  ;;  %2050 = vst [vmem:[#allocation2 + $0x30c] sm:$0xf] %v2046_v15 }
 0x14b   : > { %1884 = vmatpush.bf16.msrb.mxu1 %v4083_v41  ;;  %v892_v11 = vrot.slane %v5598_v58, 4  ;;  %v1072_v1 = vrot.slane %v5600_v12, 4  ;;  %v5604_v5 = vpop.permute.xlu0 %1030 }
 0x14c   : > { %1899 = vmatpush.bf16.msrb.mxu3 %v4251_v26  ;;  %1925 = vmatpush.bf16.msrb.mxu2 %v4255_v4  ;;  %v1036_v55 = vrot.slane %v5604_v5, 4 }
 0x14d   : > { %v897_v0 = vsel %vm281_vm0, %v891_v35, %v892_v11  ;;  %v1077_v31 = vsel %vm281_vm0, %v1071_v3, %v1072_v1 }
 0x14e   : > { %v898_v59 = vsel %vm895_vm11, %v5478_v30, %v897_v0  ;;  %v1078_v18 = vsel %vm1075_vm3, %v5408_v40, %v1077_v31  ;;  %v1041_v35 = vsel %vm281_vm0, %v1035_v52, %v1036_v55 }
 0x14f   : > { %907 = vst [vmem:[#allocation2 + $0x200] sm:$0xff] %v898_v59  ;;  %v1042_v3 = vsel %vm1039_vm1, %v5383_v51, %v1041_v35 }
 0x150   : > { %1087 = vst [vmem:[#allocation2 + $0x28c] sm:$0xff] %v1078_v18  ;;  %v4715_v30 = vld [vmem:[#allocation2 + $0x138] sm:$0xf0]  ;;  %v4056_v20 = vld [vmem:[#allocation2 + $0x13c] sm:$0xf0] }
 0x151   : > { %1051 = vst [vmem:[#allocation2 + $0x270] sm:$0xff] %v1042_v3  ;;  %v4055_v40 = vor.u32 %v4715_v30, %v4054_v54  ;;  %v4059_v39 = vor.u32 %v4712_v61, %v4056_v20 }
 0x152   : > { %v565_v41 = vpop.permute.xlu2 %564  ;;  %v673_v29 = vpop.permute.xlu1 %672 }
 0x153   : > { %1885 = vmatpush.bf16.msrb.mxu1 %v4055_v40  ;;  %1911 = vmatpush.bf16.msrb.mxu0 %v4059_v39  ;;  %v569_v52 = vrot.slane %v565_v41, 4  ;;  %v677_v32 = vrot.slane %v673_v29, 4  ;;  %v563_v51 = vpop.permute.xlu0 %562 }
 0x154   : > { %v568_v46 = vrot.slane %v563_v51, 4 }
 0x155   : > { %v577_v45 = vsel %vm6787_vm4, %v565_v41, %v569_v52  ;;  %v683_v57 = vsel %vm281_vm0, %v676_v14, %v677_v32  ;;  %v685_v60 = vsel %vm6788_vm10, %v673_v29, %v677_v32  ;;  %v4026_v41 = vld [vmem:[#allocation2 + $0xe8] sm:$0xf]  ;;  %v4705_v29 = vld [vmem:[#allocation2 + $0xec] sm:$0xf] }
 0x156   : > { %585 = vst [vmem:[#allocation2 + $0x114] sm:$0xf] %v577_v45  ;;  %v684_v6 = vsel %vm6788_vm10, %v5498_v2, %v683_v57  ;;  %v573_v7 = vsel %vm281_vm0, %v567_v10, %v568_v46  ;;  %v575_v26 = vsel %vm281_vm0, %v568_v46, %v569_v52  ;;  %vm6815_vm10 = vcmask 375808   ;;  %v4701_v46 = vld [vmem:[#allocation2 + $0xc8] sm:$0xf0] }
 0x157   : > { %692 = vst [vmem:[#allocation2 + $0x160] sm:$0xff] %v684_v6  ;;  %v574_v4 = vsel %vm6787_vm4, %v5342_v9, %v573_v7  ;;  %v576_v15 = vsel %vm6787_vm4, %v563_v51, %v575_v26  ;;  %v4757_v0 = vld [vmem:[#allocation2 + $0x288] sm:$0xf0]  ;;  %v4224_v14 = vld [vmem:[#allocation2 + $0x28c] sm:$0xf0]  ;;  %vm6814_vm4 = vcmask 277504  }
 0x158   : > { %693 = vst [vmem:[#allocation2 + $0x168] sm:$0xf] %v685_v60  ;;  %v4222_v31 = vld [vmem:[#allocation2 + $0x270] sm:$0xf]  ;;  %v4754_v59 = vld [vmem:[#allocation2 + $0x274] sm:$0xf] }
 0x159   : > { %583 = vst [vmem:[#allocation2 + $0x104] sm:$0xff] %v574_v4  ;;  %v4223_v18 = vor.u32 %v4757_v0, %v4222_v31  ;;  %v4227_v2 = vor.u32 %v4754_v59, %v4224_v14  ;;  %v4000_v45 = vld [vmem:[#allocation2 + $0xcc] sm:$0xf0]  ;;  %v4698_v26 = vld [vmem:[#allocation2 + $0xb4] sm:$0xf] }
 0x15a   : > { %584 = vst [vmem:[#allocation2 + $0x10c] sm:$0xff] %v576_v15  ;;  %v1177_v35 = vpop.permute.xlu2 %1176  ;;  %v5647_v3 = vpop.permute.xlu1 %994  ;;  %v3998_v7 = vld [vmem:[#allocation2 + $0xb0] sm:$0xf]  ;;  %v4003_v15 = vor.u32 %v4698_v26, %v4000_v45  ;;  %v4684_v26 = vld [vmem:[#allocation2 + $0x44] sm:$0xf] }
 0x15b   : > { %1900 = vmatpush.bf16.msrb.mxu3 %v4223_v18  ;;  %1926 = vmatpush.bf16.msrb.mxu2 %v4227_v2  ;;  %v1181_v10 = vrot.slane %v1177_v35, 4  ;;  %v1000_v54 = vrot.slane %v5647_v3, 4  ;;  %v5650_v9 = vpop.permute.xlu0 %958  ;;  %v4694_v18 = vld [vmem:[#allocation2 + $0x90] sm:$0xf0]  ;;  %v3972_v2 = vld [vmem:[#allocation2 + $0x94] sm:$0xf0] }
 0x15c   : > { %v964_v61 = vrot.slane %v5650_v9, 4 }
 0x15d   : > { %v1189_v37 = vsel %vm6814_vm4, %v1177_v35, %v1181_v10  ;;  %v1005_v30 = vsel %vm281_vm0, %v999_v50, %v1000_v54  ;;  %v1187_v0 = vsel %vm281_vm0, %v1180_v43, %v1181_v10 }
 0x15e   : > { %1197 = vst [vmem:[#allocation2 + $0x2f0] sm:$0xf] %v1189_v37  ;;  %v1006_v20 = vsel %vm6815_vm10, %v5430_v21, %v1005_v30  ;;  %v969_v40 = vsel %vm281_vm0, %v963_v53, %v964_v61  ;;  %vm6817_vm10 = vmmov %vm6816_vm9 }
 0x15f   : > { %1015 = vst [vmem:[#allocation2 + $0x254] sm:$0xff] %v1006_v20  ;;  %v970_v39 = vsel %vm6816_vm9, %v5340_v8, %v969_v40  ;;  %v3999_v8 = vor.u32 %v4701_v46, %v3998_v7  ;;  %v1188_v40 = vsel %vm6814_vm4, %v5356_v27, %v1187_v0  ;;  %v3944_v46 = vld [vmem:[#allocation2 + $0x5c] sm:$0xf0]  ;;  %vm6818_vm4 = vcmask 449536  }
 0x160   : > { %979 = vst [vmem:[#allocation2 + $0x238] sm:$0xff] %v970_v39  ;;  %v4708_v52 = vld [vmem:[#allocation2 + $0x100] sm:$0xf0]  ;;  %v4028_v32 = vld [vmem:[#allocation2 + $0x104] sm:$0xf0]  ;;  %v3947_v0 = vor.u32 %v4684_v26, %v3944_v46 }
 0x161   : > { %v4027_v50 = vor.u32 %v4708_v52, %v4026_v41  ;;  %v4031_v51 = vor.u32 %v4705_v29, %v4028_v32  ;;  %v3970_v39 = vld [vmem:[#allocation2 + $0x78] sm:$0xf]  ;;  %v4691_v29 = vld [vmem:[#allocation2 + $0x7c] sm:$0xf] }
 0x162   : > { %v1141_v21 = vpop.permute.xlu2 %1140  ;;  %v637_v57 = vpop.permute.xlu1 %636  ;;  %v3971_v52 = vor.u32 %v4694_v18, %v3970_v39  ;;  %v3975_v32 = vor.u32 %v4691_v29, %v3972_v2  ;;  %v4727_v26 = vld [vmem:[#allocation2 + $0x19c] sm:$0xf] }
 0x163   : > { %1886 = vmatpush.bf16.msrb.mxu1 %v4027_v50  ;;  %1912 = vmatpush.bf16.msrb.mxu0 %v4031_v51  ;;  %v1145_v60 = vrot.slane %v1141_v21, 4  ;;  %v641_v6 = vrot.slane %v637_v57, 4  ;;  %v601_v53 = vpop.permute.xlu0 %600  ;;  %v4687_v50 = vld [vmem:[#allocation2 + $0x58] sm:$0xf0] }
 0x164   : > { %v605_v4 = vrot.slane %v601_v53, 4 }
 0x165   : > { %v1151_v14 = vsel %vm281_vm0, %v1144_v16, %v1145_v60  ;;  %v1153_v31 = vsel %vm1147_vm6, %v1141_v21, %v1145_v60  ;;  %v647_v59 = vsel %vm281_vm0, %v640_v36, %v641_v6  ;;  %v649_v43 = vsel %vm643_vm15, %v637_v57, %v641_v6  ;;  %v3942_v57 = vld [vmem:[#allocation2 + $0x40] sm:$0xf] }
 0x166   : > { %v1152_v35 = vsel %vm1147_vm6, %v5540_v48, %v1151_v14  ;;  %1161 = vst [vmem:[#allocation2 + $0x2d4] sm:$0xf] %v1153_v31  ;;  %v648_v37 = vsel %vm643_vm15, %v5571_v23, %v647_v59  ;;  %v611_v16 = vsel %vm281_vm0, %v604_v28, %v605_v4  ;;  %v4750_v10 = vld [vmem:[#allocation2 + $0x250] sm:$0xf0]  ;;  %v4196_v30 = vld [vmem:[#allocation2 + $0x254] sm:$0xf0]  ;;  %v613_v23 = vsel %vm607_vm13, %v601_v53, %v605_v4 }
 0x167   : > { %1160 = vst [vmem:[#allocation2 + $0x2cc] sm:$0xff] %v1152_v35  ;;  %v612_v36 = vsel %vm607_vm13, %v5475_v56, %v611_v16  ;;  %1887 = vmatpush.bf16.msrb.mxu1 %v3999_v8  ;;  %1913 = vmatpush.bf16.msrb.mxu0 %v4003_v15  ;;  %v4194_v20 = vld [vmem:[#allocation2 + $0x238] sm:$0xf]  ;;  %v4747_v48 = vld [vmem:[#allocation2 + $0x23c] sm:$0xf]  ;;  %v1613_v60 = vunpack.c.l.b16 %v1188_v40  ;;  %v1614_v6 = vunpack.c.h.b16 %v1188_v40  ;;  %v3943_v7 = vor.u32 %v4687_v50, %v3942_v57 }
 0x168   : > { %656 = vst [vmem:[#allocation2 + $0x144] sm:$0xff] %v648_v37  ;;  %v4195_v41 = vor.u32 %v4750_v10, %v4194_v20  ;;  %v4199_v28 = vor.u32 %v4747_v48, %v4196_v30  ;;  %v3914_v14 = vld [vmem:[#allocation2 + $0x8] sm:$0xf]  ;;  %v4677_v31 = vld [vmem:[#allocation2 + $0xc] sm:$0xf] }
 0x169   : > { %657 = vst [vmem:[#allocation2 + $0x14c] sm:$0xf] %v649_v43  ;;  %v4680_v35 = vld [vmem:[#allocation2 + $0x20] sm:$0xf0]  ;;  %v3916_v37 = vld [vmem:[#allocation2 + $0x24] sm:$0xf0]  ;;  %v1711_v43 = vpack.c.b16 %v1613_v60, %v1613_v60 }
 0x16a   : > { %620 = vst [vmem:[#allocation2 + $0x128] sm:$0xff] %v612_v36  ;;  %1901 = vmatpush.bf16.msrb.mxu3 %v4195_v41  ;;  %1927 = vmatpush.bf16.msrb.mxu2 %v4199_v28  ;;  %v961_v56 = vpop.permute.xlu2 %960  ;;  %v529_v51 = vpop.permute.xlu1 %528  ;;  %v3915_v16 = vor.u32 %v4680_v35, %v3914_v14  ;;  %v4740_v50 = vld [vmem:[#allocation2 + $0x204] sm:$0xf] }
 0x16b   : > { %621 = vst [vmem:[#allocation2 + $0x130] sm:$0xf] %v613_v23  ;;  %1888 = vmatpush.bf16.msrb.mxu1 %v3971_v52  ;;  %1914 = vmatpush.bf16.msrb.mxu0 %v3975_v32  ;;  %v965_v27 = vrot.slane %v961_v56, 4  ;;  %v533_v45 = vrot.slane %v529_v51, 4  ;;  %v923_v21 = vpop.permute.xlu0 %922  ;;  %v4166_v32 = vld [vmem:[#allocation2 + $0x200] sm:$0xf] }
 0x16c   : > { %v928_v53 = vrot.slane %v923_v21, 4  ;;  %v4720_v35 = vld [vmem:[#allocation2 + $0x164] sm:$0xf] }
 0x16d   : > { %v971_v4 = vsel %vm281_vm0, %v964_v61, %v965_v27  ;;  %v973_v8 = vsel %vm6816_vm9, %v961_v56, %v965_v27  ;;  %v539_v15 = vsel %vm281_vm0, %v532_v63, %v533_v45  ;;  %v541_v2 = vsel %vm535_vm14, %v529_v51, %v533_v45  ;;  %vm6819_vm9 = vmmov %vm6818_vm4 }
 0x16e   : > { %v972_v59 = vsel %vm6817_vm10, %v5650_v9, %v971_v4  ;;  %981 = vst [vmem:[#allocation2 + $0x248] sm:$0xf] %v973_v8  ;;  %v540_v18 = vsel %vm535_vm14, %v5517_v38, %v539_v15  ;;  %v933_v61 = vsel %vm281_vm0, %v927_v24, %v928_v53  ;;  %v1712_v9 = vpack.c.b16 %v1614_v6, %v1614_v6  ;;  %vm6820_vm10 = vmmov %vm6818_vm4 }
 0x16f   : > { %980 = vst [vmem:[#allocation2 + $0x240] sm:$0xff] %v972_v59  ;;  %v934_v63 = vsel %vm6818_vm4, %v5406_v44, %v933_v61  ;;  %1889 = vmatpush.bf16.msrb.mxu1 %v3943_v7  ;;  %1915 = vmatpush.bf16.msrb.mxu0 %v3947_v0  ;;  %v3919_v38 = vor.u32 %v4677_v31, %v3916_v37  ;;  %v1823_v44 = vsel %vm281_vm0, %v1711_v43, 0  ;;  %v4118_v7 = vld [vmem:[#allocation2 + $0x198] sm:$0xf]  ;;  %v4730_v31 = vld [vmem:[#allocation2 + $0x1b0] sm:$0xf0] }
 0x170   : > { %548 = vst [vmem:[#allocation2 + $0xf0] sm:$0xff] %v540_v18  ;;  %v1826_v48 = vsel %vm281_vm0, %v1712_v9, 0  ;;  %v4120_v59 = vld [vmem:[#allocation2 + $0x1b4] sm:$0xf0]  ;;  %v4090_v61 = vld [vmem:[#allocation2 + $0x160] sm:$0xf] }
 0x171   : > { %549 = vst [vmem:[#allocation2 + $0xf8] sm:$0xf] %v541_v2  ;;  %v4123_v2 = vor.u32 %v4727_v26, %v4120_v59  ;;  %v4092_v9 = vld [vmem:[#allocation2 + $0x17c] sm:$0xf0]  ;;  %vm6821_vm4 = vcmask 375808  }
 0x172   : > { %943 = vst [vmem:[#allocation2 + $0x21c] sm:$0xff] %v934_v63  ;;  %v925_v10 = vpop.permute.xlu2 %924  ;;  %v5708_v30 = vpop.permute.xlu1 %850  ;;  %v4006_v59 = vld [vmem:[#allocation2 + $0xb8] sm:$0xf] }
 0x173   : > { %1890 = vmatpush.bf16.msrb.mxu1 %v3915_v16  ;;  %1916 = vmatpush.bf16.msrb.mxu0 %v3919_v38  ;;  %v929_v24 = vrot.slane %v925_v10, 4  ;;  %v856_v36 = vrot.slane %v5708_v30, 4  ;;  %v5711_v20 = vpop.permute.xlu0 %814  ;;  %v4765_v16 = vld [vmem:[#allocation2 + $0x2c8] sm:$0xf0] }
 0x174   : > { %v820_v40 = vrot.slane %v5711_v20, 4 }
 0x175   : > { %v935_v23 = vsel %vm281_vm0, %v928_v53, %v929_v24  ;;  %v937_v39 = vsel %vm6819_vm9, %v925_v10, %v929_v24  ;;  %v861_v41 = vsel %vm281_vm0, %v855_v47, %v856_v36  ;;  %vm6822_vm9 = vmmov %vm6821_vm4 }
 0x176   : > { %v936_v29 = vsel %vm6820_vm10, %v923_v21, %v935_v23  ;;  %945 = vst [vmem:[#allocation2 + $0x22c] sm:$0xf] %v937_v39  ;;  %v862_v28 = vsel %vm859_vm8, %v5444_v42, %v861_v41  ;;  %v825_v52 = vsel %vm281_vm0, %v819_v34, %v820_v40  ;;  %1891 = vmatmul.bf16.vlgmr.msrb.gmra.mxu1 %v5466_v13  ;;  %v4716_v23 = vld [vmem:[#allocation2 + $0x140] sm:$0xf0]  ;;  %v4064_v39 = vld [vmem:[#allocation2 + $0x144] sm:$0xf0] }
 0x177   : > { %1950 = vmatpush.bf16.msra.mxu1 %v1823_v44  ;;  %1976 = vmatpush.bf16.msra.mxu0 %v1826_v48  ;;  %944 = vst [vmem:[#allocation2 + $0x224] sm:$0xff] %v936_v29  ;;  %v826_v47 = vsel %vm823_vm5, %v5520_v62, %v825_v52  ;;  %v4095_v44 = vor.u32 %v4720_v35, %v4092_v9  ;;  %v4260_v48 = vld [vmem:[#allocation2 + $0x2cc] sm:$0xf0]  ;;  %vm2053_vm10 = vcmask 1044344  }
 0x178   : > { %1917 = vmatmul.bf16.vlgmr.msrb.gmra.mxu0 %v5466_v13  ;;  %871 = vst [vmem:[#allocation2 + $0x1e4] sm:$0xff] %v862_v28 }
 0x179   : > { %835 = vst [vmem:[#allocation2 + $0x1c8] sm:$0xff] %v826_v47  ;;  %v4743_v56 = vld [vmem:[#allocation2 + $0x218] sm:$0xf0]  ;;  %v4168_v42 = vld [vmem:[#allocation2 + $0x21c] sm:$0xf0] }
 0x17a   : > { %v4167_v51 = vor.u32 %v4743_v56, %v4166_v32  ;;  %v4171_v46 = vor.u32 %v4740_v50, %v4168_v42  ;;  %v1105_v27 = vpop.permute.xlu1 %1104  ;;  %v4062_v50 = vld [vmem:[#allocation2 + $0x128] sm:$0xf]  ;;  %v4713_v56 = vld [vmem:[#allocation2 + $0x12c] sm:$0xf] }
 0x17b   : > { %v1109_v45 = vrot.slane %v1105_v27, 4  ;;  %v493_v21 = vpop.permute.xlu0 %492  ;;  %v4063_v42 = vor.u32 %v4716_v23, %v4062_v50 }
 0x17c   : > { %1902 = vmatpush.bf16.msrb.mxu3 %v4167_v51  ;;  %1928 = vmatpush.bf16.msrb.mxu2 %v4171_v46  ;;  %v497_v34 = vrot.slane %v493_v21, 4  ;;  %v4067_v51 = vor.u32 %v4713_v56, %v4064_v39  ;;  %v4034_v46 = vld [vmem:[#allocation2 + $0xf0] sm:$0xf] }
 0x17d   : > { %v1115_v57 = vsel %vm281_vm0, %v1108_v19, %v1109_v45  ;;  %v1117_v62 = vsel %vm1111_vm2, %v1105_v27, %v1109_v45 }
 0x17e   : > { %v1116_v60 = vsel %vm1111_vm2, %v5543_v33, %v1115_v57  ;;  %1125 = vst [vmem:[#allocation2 + $0x2b8] sm:$0xf] %v1117_v62  ;;  %v503_v6 = vsel %vm281_vm0, %v496_v22, %v497_v34  ;;  %v505_v53 = vsel %vm6812_vm7, %v493_v21, %v497_v34  ;;  %v4119_v22 = vor.u32 %v4730_v31, %v4118_v7  ;;  %v4706_v21 = vld [vmem:[#allocation2 + $0xf4] sm:$0xf] }
 0x17f   : > { %1124 = vst [vmem:[#allocation2 + $0x2b0] sm:$0xff] %v1116_v60  ;;  %v504_v4 = vsel %vm6812_vm7, %v5565_v17, %v503_v6  ;;  %v4736_v8 = vld [vmem:[#allocation2 + $0x1e0] sm:$0xf0]  ;;  %v4140_v19 = vld [vmem:[#allocation2 + $0x1e4] sm:$0xf0] }
 0x180   : > { %512 = vst [vmem:[#allocation2 + $0xd4] sm:$0xff] %v504_v4  ;;  %v4138_v15 = vld [vmem:[#allocation2 + $0x1c8] sm:$0xf]  ;;  %v4733_v0 = vld [vmem:[#allocation2 + $0x1cc] sm:$0xf] }
 0x181   : > { %513 = vst [vmem:[#allocation2 + $0xdc] sm:$0xf] %v505_v53  ;;  %v4139_v33 = vor.u32 %v4736_v8, %v4138_v15  ;;  %v4143_v14 = vor.u32 %v4733_v0, %v4140_v19  ;;  %v4723_v17 = vld [vmem:[#allocation2 + $0x178] sm:$0xf0]  ;;  %v4036_v6 = vld [vmem:[#allocation2 + $0x10c] sm:$0xf0] }
 0x182   : > { %v1069_v18 = vpop.permute.xlu1 %1068  ;;  %v4091_v24 = vor.u32 %v4723_v17, %v4090_v61  ;;  %v4039_v19 = vor.u32 %v4706_v21, %v4036_v6  ;;  %v4695_v61 = vld [vmem:[#allocation2 + $0x98] sm:$0xf0]  ;;  %v3978_v17 = vld [vmem:[#allocation2 + $0x80] sm:$0xf]  ;;  %v3924_v21 = vld [vmem:[#allocation2 + $0x2c] sm:$0xf0] }
 0x183   : > { %1903 = vmatpush.bf16.msrb.mxu3 %v4139_v33  ;;  %1929 = vmatpush.bf16.msrb.mxu2 %v4143_v14  ;;  %v1073_v37 = vrot.slane %v1069_v18, 4  ;;  %v1033_v63 = vpop.permute.xlu0 %1032 }
 0x184   : > { %v1037_v43 = vrot.slane %v1033_v63, 4 }
 0x185   : > { %v1079_v38 = vsel %vm281_vm0, %v1072_v1, %v1073_v37  ;;  %v1081_v10 = vsel %vm1075_vm3, %v1069_v18, %v1073_v37  ;;  %v4699_v18 = vld [vmem:[#allocation2 + $0xbc] sm:$0xf] }
 0x186   : > { %v1080_v41 = vsel %vm1075_vm3, %v5600_v12, %v1079_v38  ;;  %1089 = vst [vmem:[#allocation2 + $0x29c] sm:$0xf] %v1081_v10  ;;  %v1043_v29 = vsel %vm281_vm0, %v1036_v55, %v1037_v43  ;;  %v1045_v28 = vsel %vm1039_vm1, %v1033_v63, %v1037_v43  ;;  %4270 = vmatmul.msk.bf16.vlgmr.msrb.gmra.mxu3 %vm1805_vm12, %v5567_v49  ;;  %v4258_v1 = vld [vmem:[#allocation2 + $0x2b0] sm:$0xf]  ;;  %v4762_v52 = vld [vmem:[#allocation2 + $0x2b4] sm:$0xf] }
 0x187   : > { %1935 = vmatpush.bf16.msra.mxu3 %v4119_v22  ;;  %1961 = vmatpush.bf16.msra.mxu2 %v4123_v2  ;;  %1088 = vst [vmem:[#allocation2 + $0x294] sm:$0xff] %v1080_v41  ;;  %v1044_v47 = vsel %vm1039_vm1, %v5604_v5, %v1043_v29  ;;  %v4259_v12 = vor.u32 %v4765_v16, %v4258_v1  ;;  %v4709_v5 = vld [vmem:[#allocation2 + $0x108] sm:$0xf0]  ;;  %v4702_v53 = vld [vmem:[#allocation2 + $0xd0] sm:$0xf0] }
 0x188   : > { %4271 = vmatmul.msk.bf16.vlgmr.msrb.gmra.mxu2 %vm1805_vm12, %v5567_v49  ;;  %v4263_v32 = vor.u32 %v4762_v52, %v4260_v48  ;;  %1052 = vst [vmem:[#allocation2 + $0x278] sm:$0xff] %v1044_v47  ;;  %v4035_v60 = vor.u32 %v4709_v5, %v4034_v46  ;;  %v4008_v7 = vld [vmem:[#allocation2 + $0xd4] sm:$0xf0]  ;;  %v4007_v22 = vor.u32 %v4702_v53, %v4006_v59  ;;  %v3980_v63 = vld [vmem:[#allocation2 + $0x9c] sm:$0xf0] }
 0x189   : > { %1053 = vst [vmem:[#allocation2 + $0x280] sm:$0xf] %v1045_v28  ;;  %1951 = vmatpush.bf16.msra.mxu1 %v4259_v12  ;;  %v4011_v2 = vor.u32 %v4699_v18, %v4008_v7  ;;  %v3979_v16 = vor.u32 %v4695_v61, %v3978_v17  ;;  %v4692_v38 = vld [vmem:[#allocation2 + $0x84] sm:$0xf]  ;;  %v4202_v29 = vld [vmem:[#allocation2 + $0x240] sm:$0xf] }
 0x18a   : > { %1977 = vmatpush.bf16.msra.mxu0 %v4263_v32  ;;  %v889_v55 = vpop.permute.xlu1 %888  ;;  %v4688_v10 = vld [vmem:[#allocation2 + $0x60] sm:$0xf0]  ;;  %v3983_v41 = vor.u32 %v4692_v38, %v3980_v63  ;;  %v3950_v12 = vld [vmem:[#allocation2 + $0x48] sm:$0xf]  ;;  %v4685_v32 = vld [vmem:[#allocation2 + $0x4c] sm:$0xf] }
 0x18b   : > { %1936 = vmatpush.bf16.msra.mxu3 %v4091_v24  ;;  %1962 = vmatpush.bf16.msra.mxu2 %v4095_v44  ;;  %v893_v27 = vrot.slane %v889_v55, 4  ;;  %v997_v45 = vpop.permute.xlu0 %996  ;;  %v3952_v24 = vld [vmem:[#allocation2 + $0x64] sm:$0xf0]  ;;  %v1306_v44 = vld [vmem:[#allocation2 + $0x2f0] sm:$0xf] }
 0x18c   : > { %v1001_v34 = vrot.slane %v997_v45, 4  ;;  %v1615_v50 = vunpack.c.l.b16 %v1306_v44  ;;  %v4681_v46 = vld [vmem:[#allocation2 + $0x28] sm:$0xf0]  ;;  %v4731_v7 = vld [vmem:[#allocation2 + $0x1b8] sm:$0xf0] }
 0x18d   : > { %v899_v57 = vsel %vm281_vm0, %v892_v11, %v893_v27  ;;  %v901_v62 = vsel %vm895_vm11, %v889_v55, %v893_v27  ;;  %v3951_v55 = vor.u32 %v4688_v10, %v3950_v12  ;;  %v4744_v27 = vld [vmem:[#allocation2 + $0x220] sm:$0xf0]  ;;  %v4717_v63 = vld [vmem:[#allocation2 + $0x148] sm:$0xf0]  ;;  %v4710_v38 = vld [vmem:[#allocation2 + $0x110] sm:$0xf0] }
 0x18e   : > { %v900_v26 = vsel %vm895_vm11, %v5598_v58, %v899_v57  ;;  %909 = vst [vmem:[#allocation2 + $0x210] sm:$0xf] %v901_v62  ;;  %v1007_v4 = vsel %vm281_vm0, %v1000_v54, %v1001_v34  ;;  %v1009_v8 = vsel %vm6821_vm4, %v997_v45, %v1001_v34  ;;  %v4758_v15 = vld [vmem:[#allocation2 + $0x290] sm:$0xf0]  ;;  %v4232_v0 = vld [vmem:[#allocation2 + $0x294] sm:$0xf0]  ;;  %v1713_v57 = vpack.c.b16 %v1615_v50, %v1615_v50 }
 0x18f   : > { %1937 = vmatpush.bf16.msra.mxu3 %v4063_v42  ;;  %1963 = vmatpush.bf16.msra.mxu2 %v4067_v51  ;;  %908 = vst [vmem:[#allocation2 + $0x208] sm:$0xff] %v900_v26  ;;  %v1008_v11 = vsel %vm6822_vm9, %v5647_v3, %v1007_v4  ;;  %v4230_v33 = vld [vmem:[#allocation2 + $0x278] sm:$0xf]  ;;  %v4755_v14 = vld [vmem:[#allocation2 + $0x27c] sm:$0xf]  ;;  %v3955_v42 = vor.u32 %v4685_v32, %v3952_v24  ;;  %vm2054_vm4 = vcmask 1047556  }
 0x190   : > { %1016 = vst [vmem:[#allocation2 + $0x25c] sm:$0xff] %v1008_v11  ;;  %v4231_v58 = vor.u32 %v4758_v15, %v4230_v33  ;;  %v4235_v31 = vor.u32 %v4755_v14, %v4232_v0  ;;  %v3922_v51 = vld [vmem:[#allocation2 + $0x10] sm:$0xf]  ;;  %v4176_v45 = vld [vmem:[#allocation2 + $0x224] sm:$0xf0]  ;;  %vm5819_vm9 = vmor %vm2054_vm4, %vm2053_vm10  ;;  %vm2092_vm10 = vcmask 908292  }
 0x191   : > { %1017 = vst [vmem:[#allocation2 + $0x264] sm:$0xf] %v1009_v8  ;;  %v3923_v62 = vor.u32 %v4681_v46, %v3922_v51  ;;  %v4126_v8 = vld [vmem:[#allocation2 + $0x1a0] sm:$0xf]  ;;  %v4266_v11 = vld [vmem:[#allocation2 + $0x2b8] sm:$0xf]  ;;  %vm2093_vm4 = vmor %vm2092_vm10, %vm281_vm0 }
 0x192   : > { %1952 = vmatpush.bf16.msra.mxu1 %v4231_v58  ;;  %1978 = vmatpush.bf16.msra.mxu0 %v4235_v31  ;;  %v853_v54 = vpop.permute.xlu1 %852  ;;  %v4766_v33 = vld [vmem:[#allocation2 + $0x2d0] sm:$0xf0]  ;;  %v4127_v14 = vor.u32 %v4731_v7, %v4126_v8  ;;  %v4098_v31 = vld [vmem:[#allocation2 + $0x168] sm:$0xf]  ;;  %v4724_v59 = vld [vmem:[#allocation2 + $0x180] sm:$0xf0]  ;;  %v1840_v18 = vpop.f32.mrf.mxu0 }
 0x193   : > { %1938 = vmatpush.bf16.msra.mxu3 %v4035_v60  ;;  %1964 = vmatpush.bf16.msra.mxu2 %v4039_v19  ;;  %v857_v35 = vrot.slane %v853_v54, 4  ;;  %v817_v37 = vpop.permute.xlu0 %816  ;;  %v1829_v19 = vsel %vm281_vm0, %v1713_v57, 0  ;;  %v4267_v58 = vor.u32 %v4766_v33, %v4266_v11  ;;  %v4099_v61 = vor.u32 %v4724_v59, %v4098_v31  ;;  %v3958_v32 = vld [vmem:[#allocation2 + $0x50] sm:$0xf]  ;;  %v4689_v50 = vld [vmem:[#allocation2 + $0x68] sm:$0xf0] }
 0x194   : > { %v821_v3 = vrot.slane %v817_v37, 4  ;;  %2056 = vst.msk [vmem:[#allocation3 + $0x1c] sm:$0xff] %vm5819_vm9, %v4939_v25  ;;  %vm6838_vm10 = vcmask 130048  }
 0x195   : > { %v863_v43 = vsel %vm281_vm0, %v856_v36, %v857_v35  ;;  %v865_v9 = vsel %vm859_vm8, %v853_v54, %v857_v35  ;;  %v4748_v36 = vld [vmem:[#allocation2 + $0x244] sm:$0xf]  ;;  %v4182_v44 = vld [vmem:[#allocation2 + $0x210] sm:$0xf] }
 0x196   : > { %v864_v48 = vsel %vm859_vm8, %v5708_v30, %v863_v43  ;;  %873 = vst [vmem:[#allocation2 + $0x1f4] sm:$0xf] %v865_v9  ;;  %v827_v23 = vsel %vm281_vm0, %v820_v40, %v821_v3  ;;  %v829_v39 = vsel %vm823_vm5, %v817_v37, %v821_v3  ;;  %v4174_v40 = vld [vmem:[#allocation2 + $0x208] sm:$0xf]  ;;  %v4741_v56 = vld [vmem:[#allocation2 + $0x20c] sm:$0xf] }
 0x197   : > { %1939 = vmatpush.bf16.msra.mxu3 %v4007_v22  ;;  %1965 = vmatpush.bf16.msra.mxu2 %v4011_v2  ;;  %872 = vst [vmem:[#allocation2 + $0x1ec] sm:$0xff] %v864_v48  ;;  %v828_v28 = vsel %vm823_vm5, %v5711_v20, %v827_v23  ;;  %v4751_v1 = vld [vmem:[#allocation2 + $0x258] sm:$0xf0]  ;;  %v4204_v52 = vld [vmem:[#allocation2 + $0x25c] sm:$0xf0]  ;;  %v4175_v34 = vor.u32 %v4744_v27, %v4174_v40 }
 0x198   : > { %836 = vst [vmem:[#allocation2 + $0x1d0] sm:$0xff] %v828_v28  ;;  %v4203_v30 = vor.u32 %v4751_v1, %v4202_v29  ;;  %v4207_v47 = vor.u32 %v4748_v36, %v4204_v52  ;;  %v4678_v20 = vld [vmem:[#allocation2 + $0x14] sm:$0xf]  ;;  %v4179_v5 = vor.u32 %v4741_v56, %v4176_v45  ;;  %v4238_v22 = vld [vmem:[#allocation2 + $0x280] sm:$0xf]  ;;  %v3959_v40 = vor.u32 %v4689_v50, %v3958_v32 }
 0x199   : > { %837 = vst [vmem:[#allocation2 + $0x1d8] sm:$0xf] %v829_v39  ;;  %v3927_v60 = vor.u32 %v4678_v20, %v3924_v21  ;;  %v1866_v54 = vpop.f32.mrf.mxu2  ;;  %v4759_v2 = vld [vmem:[#allocation2 + $0x298] sm:$0xf0]  ;;  %v4070_v37 = vld [vmem:[#allocation2 + $0x130] sm:$0xf] }
 0x19a   : > { %1953 = vmatpush.bf16.msra.mxu1 %v4203_v30  ;;  %1979 = vmatpush.bf16.msra.mxu0 %v4207_v47  ;;  %v4239_v35 = vor.u32 %v4759_v2, %v4238_v22  ;;  %v4210_v3 = vld [vmem:[#allocation2 + $0x248] sm:$0xf]  ;;  %v4752_v17 = vld [vmem:[#allocation2 + $0x260] sm:$0xf0]  ;;  %v4071_v43 = vor.u32 %v4717_v63, %v4070_v37  ;;  %v1842_v10 = vpop.f32.mrf.mxu0  ;;  %v4745_v48 = vld [vmem:[#allocation2 + $0x228] sm:$0xf0] }
 0x19b   : > { %1940 = vmatpush.bf16.msra.mxu3 %v3979_v16  ;;  %1966 = vmatpush.bf16.msra.mxu2 %v3983_v41  ;;  %v4211_v9 = vor.u32 %v4752_v17, %v4210_v3  ;;  %v4042_v16 = vld [vmem:[#allocation2 + $0xf8] sm:$0xf]  ;;  %v4183_v39 = vor.u32 %v4745_v48, %v4182_v44  ;;  %v4703_v41 = vld [vmem:[#allocation2 + $0xd8] sm:$0xf0]  ;;  %v4014_v28 = vld [vmem:[#allocation2 + $0xc0] sm:$0xf] }
 0x19c   : > { %v4043_v23 = vor.u32 %v4710_v38, %v4042_v16  ;;  %v4015_v1 = vor.u32 %v4703_v41, %v4014_v28  ;;  %v4696_v30 = vld [vmem:[#allocation2 + $0xa0] sm:$0xf0]  ;;  %v3986_v47 = vld [vmem:[#allocation2 + $0x88] sm:$0xf]  ;;  %v3930_v56 = vld [vmem:[#allocation2 + $0x18] sm:$0xf] }
 0x19d   : > { %v4738_v36 = vld [vmem:[#allocation2 + $0x1f0] sm:$0xf0]  ;;  %v3987_v12 = vor.u32 %v4696_v30, %v3986_v47  ;;  %v5803_v45 = vld [vmem:[%s6755_s1] sm:$0xff] }
 0x19e   : > { %1954 = vmatpush.bf16.msra.mxu1 %v4175_v34  ;;  %1980 = vmatpush.bf16.msra.mxu0 %v4179_v5  ;;  %v4737_v6 = vld [vmem:[#allocation2 + $0x1e8] sm:$0xf0]  ;;  %v4148_v53 = vld [vmem:[#allocation2 + $0x1ec] sm:$0xf0]  ;;  %v2022_v34 = vperm.slane %v5803_v45, 0  ;;  %v2024_v31 = vperm.slane %v5803_v45, 2 }
 0x19f   : > { %1941 = vmatpush.bf16.msra.mxu3 %v3951_v55  ;;  %1967 = vmatpush.bf16.msra.mxu2 %v3955_v42  ;;  %v4146_v26 = vld [vmem:[#allocation2 + $0x1d0] sm:$0xf]  ;;  %v4734_v4 = vld [vmem:[#allocation2 + $0x1d4] sm:$0xf]  ;;  %v2026_v10 = vperm.slane %v5803_v45, 4 }
 0x1a0   : > { %v4147_v15 = vor.u32 %v4737_v6, %v4146_v26  ;;  %v4151_v0 = vor.u32 %v4734_v4, %v4148_v53  ;;  %v4154_v29 = vld [vmem:[#allocation2 + $0x1d8] sm:$0xf]  ;;  %v4682_v55 = vld [vmem:[#allocation2 + $0x30] sm:$0xf0] }
 0x1a1   : > { %v1868_v24 = vpop.f32.mrf.mxu2  ;;  %v4155_v52 = vor.u32 %v4738_v36, %v4154_v29  ;;  %v3931_v51 = vor.u32 %v4682_v55, %v3930_v56  ;;  %v2028_v56 = vperm.slane %v5803_v45, 6 }
 0x1a2   : > { %1955 = vmatpush.bf16.msra.mxu1 %v4147_v15  ;;  %1981 = vmatpush.bf16.msra.mxu0 %v4151_v0  ;;  %v2027_v24 = vperm.slane %v5803_v45, 5 }
 0x1a3   : > { %1942 = vmatpush.bf16.msra.mxu3 %v3923_v62  ;;  %1968 = vmatpush.bf16.msra.mxu2 %v3927_v60  ;;  %v5796_v42 = vpop.permute.xlu2 %1310  ;;  %v2023_v62 = vperm.slane %v5803_v45, 1 }
 0x1a4   : > { %v1841_v46 = vadd.f32 %v1840_v18, %v5796_v42  ;;  %v2025_v18 = vperm.slane %v5803_v45, 3 }
 0x1a5   : > { %4272 = vmatmul.msk.bf16.vlgmr.msra.gmra.mxu1 %vm1805_vm12, %v5567_v49  ;;  %4273 = vmatmul.msk.bf16.vlgmr.msra.gmra.mxu0 %vm1805_vm12, %v5567_v49 }
 0x1a6   : > { %1943 = vmatmul.bf16.vlgmr.msra.gmra.mxu3 %v5466_v13  ;;  %1969 = vmatmul.bf16.vlgmr.msra.gmra.mxu2 %v5466_v13 }
 0x1a7   : > { %2002 = vmatpush.bf16.msrb.mxu3 %v1829_v19  ;;  %1987 = vmatpush.bf16.msrb.mxu1 %v4127_v14 }
 0x1ab   : > { %2003 = vmatpush.bf16.msrb.mxu3 %v4267_v58  ;;  %1988 = vmatpush.bf16.msrb.mxu1 %v4099_v61 }
 0x1af   : > { %2004 = vmatpush.bf16.msrb.mxu3 %v4239_v35  ;;  %1989 = vmatpush.bf16.msrb.mxu1 %v4071_v43 }
 0x1b3   : > { %2005 = vmatpush.bf16.msrb.mxu3 %v4211_v9  ;;  %1990 = vmatpush.bf16.msrb.mxu1 %v4043_v23 }
 0x1b7   : > { %2006 = vmatpush.bf16.msrb.mxu3 %v4183_v39  ;;  %1991 = vmatpush.bf16.msrb.mxu1 %v4015_v1 }
 0x1bb   : > { %2007 = vmatpush.bf16.msrb.mxu3 %v4155_v52  ;;  %1992 = vmatpush.bf16.msrb.mxu1 %v3987_v12 }
 0x1be   : > { %4274 = vmatmul.msk.bf16.vlgmr.msrb.gmra.mxu3 %vm1805_vm12, %v5567_v49  ;;  %v1867_v49 = vadd.f32 %v1866_v54, %v5796_v42  ;;  %vm2051_vm12 = vcmask 904192  }
 0x1bf   : > { %1993 = vmatpush.bf16.msrb.mxu1 %v3959_v40  ;;  %2052 = vst.msk [vmem:[#allocation3] sm:$0xf] %vm2051_vm12, %v4939_v25  ;;  %vm2077_vm12 = vcmask 908288  }
 0x1c3   : > { %1994 = vmatpush.bf16.msrb.mxu1 %v3931_v51 }
 0x1c5   : > { %v1853_v20 = vpop.f32.mrf.mxu1 }
 0x1c6   : > { %1995 = vmatmul.bf16.vlgmr.msrb.gmra.mxu1 %v5466_v13  ;;  %v1854_v27 = vadd.f32 %v1853_v20, %v1841_v46 }
 0x1c8   : > { %v2013_v21 = vmax.f32 %v1854_v27, 0.0 }
 0x1c9   : > { %v1879_v5 = vpop.f32.mrf.mxu3 }
 0x1ca   : > { %v1880_v57 = vadd.f32 %v1879_v5, %v1867_v49  ;;  %v2036_v6 = vmul.f32 %v2022_v34, %v2013_v21 }
 0x1cc   : > { %v2014_v53 = vmax.f32 %v1880_v57, 0.0 }
 0x1cd   : > { %v1855_v60 = vpop.f32.mrf.mxu1 }
 0x1ce   : > { %v2037_v13 = vmul.f32 %v2023_v62, %v2014_v53 }
 0x1d0   : > { %v2057_v7 = vpack.c.bf16 %v2037_v13, %v2036_v6 }
 0x1d1   : > { %v1881_v26 = vpop.f32.mrf.mxu3 }
 0x1d2   : > { %2065 = vrot.lane.b32.xlu0 %v2057_v7, %s4940_s23 }
 0x1f3   : > { %v1892_v4 = vpop.f32.mrf.mxu1 }
 0x1f4   : > { %v1893_v0 = vadd.f32 %v1892_v4, %v5796_v42 }
 0x1f5   : > { %v1918_v8 = vpop.f32.mrf.mxu0 }
 0x1f6   : > { %v1919_v11 = vadd.f32 %v1918_v8, %v5796_v42 }
 0x1fb   : > { %v1894_v19 = vpop.f32.mrf.mxu1 }
 0x1fd   : > { %v1920_v15 = vpop.f32.mrf.mxu0 }
 0x209   : > { %v1905_v33 = vpop.f32.mrf.mxu3 }
 0x20a   : > { %v1906_v58 = vadd.f32 %v1905_v33, %v1893_v0 }
 0x20b   : > { %v1931_v14 = vpop.f32.mrf.mxu2 }
 0x20c   : > { %v1932_v59 = vadd.f32 %v1931_v14, %v1919_v11  ;;  %v2015_v54 = vmax.f32 %v1906_v58, 0.0 }
 0x20e   : > { %v2016_v22 = vmax.f32 %v1932_v59, 0.0  ;;  %v2038_v2 = vmul.f32 %v2024_v31, %v2015_v54 }
 0x210   : > { %v2039_v61 = vmul.f32 %v2025_v18, %v2016_v22 }
 0x211   : > { %v1907_v37 = vpop.f32.mrf.mxu3 }
 0x212   : > { %v2058_v35 = vpack.c.bf16 %v2039_v61, %v2038_v2 }
 0x213   : > { %v1933_v63 = vpop.f32.mrf.mxu2 }
 0x214   : > { %2067 = vrot.lane.b32.xlu1 %v2058_v35, %s4940_s23 }
 0x222   : > { %v1957_v3 = vpop.f32.mrf.mxu1  ;;  %v1983_v17 = vpop.f32.mrf.mxu0 }
 0x229   : > { %v1944_v43 = vpop.f32.mrf.mxu3  ;;  %v1970_v9 = vpop.f32.mrf.mxu2 }
 0x22a   : > { %v1945_v16 = vadd.f32 %v1944_v43, %v5796_v42  ;;  %v1971_v38 = vadd.f32 %v1970_v9, %v5796_v42  ;;  %v1959_v23 = vpop.f32.mrf.mxu1  ;;  %v1985_v36 = vpop.f32.mrf.mxu0 }
 0x22c   : > { %v1958_v44 = vadd.f32 %v1957_v3, %v1945_v16  ;;  %v1984_v48 = vadd.f32 %v1983_v17, %v1971_v38 }
 0x22e   : > { %v2017_v39 = vmax.f32 %v1958_v44, 0.0  ;;  %v2018_v41 = vmax.f32 %v1984_v48, 0.0 }
 0x230   : > { %v2040_v28 = vmul.f32 %v2026_v10, %v2017_v39  ;;  %v2041_v1 = vmul.f32 %v2027_v24, %v2018_v41 }
 0x231   : > { %v1946_v52 = vpop.f32.mrf.mxu3  ;;  %v1972_v30 = vpop.f32.mrf.mxu2 }
 0x232   : > { %v2059_v47 = vpack.c.bf16 %v2041_v1, %v2040_v28 }
 0x234   : > { %2069 = vrot.lane.b32.xlu2 %v2059_v47, %s4940_s23 }
 0x241   : > { %v2009_v12 = vpop.f32.mrf.mxu3 }
 0x243   : > { %v1996_v32 = vpop.f32.mrf.mxu1 }
 0x244   : > { %v1997_v50 = vadd.f32 %v1996_v32, %v5796_v42  ;;  %v2066_v51 = vpop.permute.xlu0 %2065 }
 0x245   : > { %v2073_v20 = vrot.slane %v2066_v51, 4 }
 0x246   : > { %v2010_v40 = vadd.f32 %v2009_v12, %v1997_v50 }
 0x247   : > { %v2078_v27 = vsel %vm2077_vm12, %v2073_v20, %v2066_v51 }
 0x248   : > { %v2019_v46 = vmax.f32 %v2010_v40, 0.0  ;;  %2089 = vst.msk [vmem:[#allocation3] sm:$0xff] %vm5819_vm9, %v2078_v27  ;;  %vm6834_vm9 = vcmask 1039360  }
 0x249   : > { %v2011_v55 = vpop.f32.mrf.mxu3 }
 0x24a   : > { %v2042_v25 = vmul.f32 %v2028_v56, %v2019_v46 }
 0x24b   : > { %v1998_v49 = vpop.f32.mrf.mxu1 }
 0x24c   : > { %v2060_v21 = vpack.c.bf16 %v2042_v25, %v2042_v25 }
 0x24e   : > { %2071 = vrot.lane.b32.xlu0 %v2060_v21, %s4940_s23  ;;  %s6829_s23 = smov 108  }
 0x24f   : > { %v2095_v34 = vld [vmem:[#allocation3] sm:$0xff] }
 0x250   : > { %2099 = vst [vmem:[#allocation2] sm:$0xff] %v2095_v34  ;;  %2146 = vrot.lane.b32.xlu2 %v2095_v34, %s4913_s27  ;;  %2111 = vrot.lane.b32.xlu1 %v2095_v34, %s6825_s25 }
 0x256   : > { %2181 = vrot.lane.b32.xlu0 %v2095_v34, %s6826_s26 }
 0x258   : > { %2251 = vrot.lane.b32.xlu2 %v2095_v34, %s6827_s30  ;;  %2216 = vrot.lane.b32.xlu1 %v2095_v34, %s6828_s7 }
 0x25e   : > { %2601 = vrot.lane.b32.xlu0 %v2095_v34, %s6794_s11 }
 0x260   : > { %2461 = vrot.lane.b32.xlu2 %v2095_v34, %s6796_s15  ;;  %2566 = vrot.lane.b32.xlu1 %v2095_v34, %s4919_s9 }
 0x266   : > { %2531 = vrot.lane.b32.xlu0 %v2095_v34, %s4922_s12 }
 0x268   : > { %2286 = vrot.lane.b32.xlu2 %v2095_v34, %s6829_s23  ;;  %2496 = vrot.lane.b32.xlu1 %v2095_v34, %s4923_s13 }
 0x26e   : > { %2426 = vrot.lane.b32.xlu0 %v2095_v34, %s4926_s16 }
 0x270   : > { %2636 = vrot.lane.b32.xlu2 %v2095_v34, %s6798_s29  ;;  %2356 = vrot.lane.b32.xlu1 %v2095_v34, %s6800_s17 }
 0x276   : > { %2391 = vrot.lane.b32.xlu0 %v2095_v34, %s6806_s19 }
 0x278   : > { %2321 = vrot.lane.b32.xlu1 %v2095_v34, %s4920_s10 }
 0x280   : > { %2671 = vrot.lane.b32.xlu1 %v2095_v34, %s6802_s28 }
 0x286   : > { %v2068_v42 = vpop.permute.xlu1 %2067 }
 0x287   : > { %v2074_v45 = vrot.slane %v2068_v42, 4 }
 0x289   : > { %v2079_v5 = vsel %vm281_vm0, %v2073_v20, %v2074_v45 }
 0x28a   : > { %v2080_v57 = vsel %vm2077_vm12, %v2079_v5, %v2068_v42 }
 0x28b   : > { %2090 = vst [vmem:[#allocation3 + $0x8] sm:$0xff] %v2080_v57  ;;  %2148 = vrot.lane.b32.xlu0 %v2080_v57, %s4913_s27  ;;  %2113 = vrot.lane.b32.xlu2 %v2080_v57, %s6825_s25 }
 0x28c   : > { %2100 = vst [vmem:[#allocation2 + $0x8] sm:$0xff] %v2080_v57  ;;  %2183 = vrot.lane.b32.xlu1 %v2080_v57, %s6826_s26 }
 0x28e   : > { %v2070_v62 = vpop.permute.xlu2 %2069 }
 0x28f   : > { %v2075_v60 = vrot.slane %v2070_v62, 4 }
 0x291   : > { %v2081_v6 = vsel %vm281_vm0, %v2074_v45, %v2075_v60 }
 0x292   : > { %v5857_v53 = vsel %vm2077_vm12, %v2081_v6, %v2070_v62  ;;  %v2838_v13 = vld [vmem:[#allocation3 + $0x4] sm:$0xff] }
 0x293   : > { %2091 = vst [vmem:[#allocation3 + $0x10] sm:$0xff] %v5857_v53  ;;  %2253 = vrot.lane.b32.xlu0 %v2080_v57, %s6827_s30  ;;  %2218 = vrot.lane.b32.xlu2 %v2080_v57, %s6828_s7 }
 0x294   : > { %2101 = vst [vmem:[#allocation2 + $0x10] sm:$0xff] %v5857_v53  ;;  %2603 = vrot.lane.b32.xlu1 %v2080_v57, %s6794_s11  ;;  %s6830_s11 = smov 44  }
 0x29a   : > { %v5897_v31 = vld [vmem:[#allocation3 + $0xc] sm:$0xff] }
 0x29b   : > { %2463 = vrot.lane.b32.xlu0 %v2080_v57, %s6796_s15  ;;  %2568 = vrot.lane.b32.xlu2 %v2080_v57, %s4919_s9  ;;  %s6831_s15 = smov 54  }
 0x29c   : > { %2533 = vrot.lane.b32.xlu1 %v2080_v57, %s4922_s12 }
 0x2a3   : > { %2846 = vrot.lane.b32.xlu0 %v2838_v13, %s4932_s24  ;;  %2986 = vrot.lane.b32.xlu2 %v2838_v13, %s4924_s14 }
 0x2a4   : > { %2951 = vrot.lane.b32.xlu1 %v2838_v13, %s4930_s20 }
 0x2aa   : > { %v5876_v7 = vpop.permute.xlu2 %2146 }
 0x2ab   : > { %2811 = vrot.lane.b32.xlu0 %v2838_v13, %s6804_s8  ;;  %2498 = vrot.lane.b32.xlu2 %v2080_v57, %s4923_s13  ;;  %v2154_v47 = vrot.slane %v5876_v7, 4 }
 0x2ac   : > { %2428 = vrot.lane.b32.xlu1 %v2080_v57, %s4926_s16 }
 0x2b2   : > { %v5881_v26 = vpop.permute.xlu2 %2251 }
 0x2b3   : > { %2288 = vrot.lane.b32.xlu0 %v2080_v57, %s6829_s23  ;;  %2916 = vrot.lane.b32.xlu2 %v2838_v13, %s4928_s18  ;;  %v2259_v49 = vrot.slane %v5881_v26, 4 }
 0x2b4   : > { %2393 = vrot.lane.b32.xlu1 %v2080_v57, %s6806_s19 }
 0x2ba   : > { %v5890_v11 = vpop.permute.xlu2 %2461 }
 0x2bb   : > { %2638 = vrot.lane.b32.xlu0 %v2080_v57, %s6798_s29  ;;  %2881 = vrot.lane.b32.xlu2 %v2838_v13, %s6830_s11  ;;  %s6832_s29 = smov 55  }
 0x2bc   : > { %2776 = vrot.lane.b32.xlu1 %v2838_v13, %s6831_s15 }
 0x2c0   : > { %v2072_v4 = vpop.permute.xlu0 %2071 }
 0x2c1   : > { %v2076_v8 = vrot.slane %v2072_v4, 4 }
 0x2c2   : > { %v2112_v0 = vpop.permute.xlu1 %2111  ;;  %v5899_v59 = vpop.permute.xlu2 %2286 }
 0x2c3   : > { %v2083_v19 = vsel %vm281_vm0, %v2075_v60, %v2076_v8  ;;  %2115 = vrot.lane.b32.xlu0 %v5857_v53, %s6825_s25  ;;  %2358 = vrot.lane.b32.xlu2 %v2080_v57, %s6800_s17  ;;  %s6833_s17 = smov 56   ;;  %v2119_v63 = vrot.slane %v2112_v0, 4 }
 0x2c4   : > { %v2084_v15 = vsel %vm2077_vm12, %v2083_v19, %v2072_v4  ;;  %2741 = vrot.lane.b32.xlu1 %v2838_v13, %s6832_s29  ;;  %vm6836_vm12 = vcmask 957440  }
 0x2c5   : > { %2094 = vst.msk [vmem:[#allocation3 + $0x18] sm:$0xff] %vm2093_vm4, %v2084_v15  ;;  %vm6839_vm4 = vcmask 1031168  }
 0x2c8   : > { %v2182_v58 = vpop.permute.xlu0 %2181 }
 0x2c9   : > { %v2189_v50 = vrot.slane %v2182_v58, 4 }
 0x2ca   : > { %v2217_v14 = vpop.permute.xlu1 %2216  ;;  %v5915_v2 = vpop.permute.xlu2 %2636 }
 0x2cb   : > { %2220 = vrot.lane.b32.xlu0 %v5857_v53, %s6828_s7  ;;  %2323 = vrot.lane.b32.xlu2 %v2080_v57, %s4920_s10  ;;  %v2224_v10 = vrot.slane %v2217_v14, 4 }
 0x2cc   : > { %v2098_v33 = vld [vmem:[#allocation3 + $0x18] sm:$0xf]  ;;  %2150 = vrot.lane.b32.xlu1 %v5857_v53, %s4913_s27 }
 0x2cd   : > { %2102 = vst [vmem:[#allocation2 + $0x18] sm:$0xf] %v2098_v33  ;;  %v5996_v20 = vld [vmem:[#allocation3 + $0x18] sm:$0xff] }
 0x2d0   : > { %v5906_v54 = vpop.permute.xlu0 %2601 }
 0x2d1   : > { %v2609_v5 = vrot.slane %v5906_v54, 4 }
 0x2d2   : > { %v2567_v18 = vpop.permute.xlu1 %2566 }
 0x2d3   : > { %2988 = vrot.lane.b32.xlu0 %v5897_v31, %s4924_s14  ;;  %2706 = vrot.lane.b32.xlu2 %v2838_v13, %s6833_s17  ;;  %v2574_v29 = vrot.slane %v2567_v18, 4 }
 0x2d4   : > { %2570 = vrot.lane.b32.xlu1 %v5857_v53, %s4919_s9 }
 0x2d8   : > { %v5917_v61 = vpop.permute.xlu0 %2531 }
 0x2d9   : > { %v2539_v33 = vrot.slane %v5917_v61, 4 }
 0x2da   : > { %v5911_v22 = vpop.permute.xlu1 %2496 }
 0x2db   : > { %2918 = vrot.lane.b32.xlu0 %v5897_v31, %s4928_s18  ;;  %2673 = vrot.lane.b32.xlu2 %v2080_v57, %s6802_s28  ;;  %s6835_s28 = smov 26   ;;  %v2504_v21 = vrot.slane %v5911_v22, 4 }
 0x2dc   : > { %2848 = vrot.lane.b32.xlu1 %v5897_v31, %s4932_s24 }
 0x2e0   : > { %v5934_v9 = vpop.permute.xlu0 %2426 }
 0x2e2   : > { %v5923_v35 = vpop.permute.xlu1 %2356 }
 0x2e3   : > { %2883 = vrot.lane.b32.xlu0 %v5897_v31, %s6830_s11  ;;  %2185 = vrot.lane.b32.xlu2 %v5857_v53, %s6826_s26 }
 0x2e4   : > { %2813 = vrot.lane.b32.xlu1 %v5897_v31, %s6804_s8  ;;  %s6837_s8 = smov 8  }
 0x2e5   : > { %v5927_v37 = vpop.permute.xlu2 %2113 }
 0x2e6   : > { %v2120_v3 = vrot.slane %v5927_v37, 4 }
 0x2e8   : > { %v2123_v17 = vsel %vm281_vm0, %v2119_v63, %v2120_v3  ;;  %v5959_v39 = vpop.permute.xlu0 %2391 }
 0x2e9   : > { %v2124_v43 = vsel %vm6834_vm9, %v2112_v0, %v2123_v17  ;;  %vm6840_vm9 = vcmask 965632   ;;  %v6053_v17 = vld [vmem:[#allocation3 + $0x14] sm:$0xff] }
 0x2ea   : > { %2134 = vst [vmem:[#allocation2 + $0x1c] sm:$0xff] %v2124_v43  ;;  %v5940_v16 = vpop.permute.xlu1 %2321 }
 0x2eb   : > { %2535 = vrot.lane.b32.xlu0 %v5857_v53, %s4922_s12  ;;  %2953 = vrot.lane.b32.xlu2 %v5897_v31, %s4930_s20 }
 0x2ec   : > { %2465 = vrot.lane.b32.xlu1 %v5857_v53, %s6835_s28 }
 0x2ed   : > { %v5944_v38 = vpop.permute.xlu2 %2218 }
 0x2ee   : > { %v2225_v24 = vrot.slane %v5944_v38, 4 }
 0x2f0   : > { %v2228_v44 = vsel %vm281_vm0, %v2224_v10, %v2225_v24 }
 0x2f1   : > { %v2229_v48 = vsel %vm6836_vm12, %v2217_v14, %v2228_v44  ;;  %vm6842_vm12 = vcmask 146432  }
 0x2f2   : > { %2239 = vst [vmem:[#allocation2 + $0x70] sm:$0xff] %v2229_v48  ;;  %v5955_v23 = vpop.permute.xlu1 %2671 }
 0x2f3   : > { %2430 = vrot.lane.b32.xlu0 %v5857_v53, %s4926_s16  ;;  %2605 = vrot.lane.b32.xlu2 %v5857_v53, %s6837_s8 }
 0x2f4   : > { %2395 = vrot.lane.b32.xlu1 %v5857_v53, %s6806_s19  ;;  %s6841_s19 = smov 106  }
 0x2f5   : > { %v5961_v41 = vpop.permute.xlu2 %2568 }
 0x2f6   : > { %v2575_v36 = vrot.slane %v5961_v41, 4 }
 0x2f8   : > { %v2578_v28 = vsel %vm281_vm0, %v2574_v29, %v2575_v36 }
 0x2f9   : > { %v2579_v1 = vsel %vm6838_vm10, %v2567_v18, %v2578_v28  ;;  %vm6843_vm10 = vcmask 949248  }
 0x2fa   : > { %2589 = vst [vmem:[#allocation2 + $0x188] sm:$0xff] %v2579_v1 }
 0x2fb   : > { %2708 = vrot.lane.b32.xlu0 %v5897_v31, %s6833_s17  ;;  %2500 = vrot.lane.b32.xlu2 %v5857_v53, %s4923_s13 }
 0x2fc   : > { %2290 = vrot.lane.b32.xlu1 %v5857_v53, %s6829_s23 }
 0x2fd   : > { %v5974_v52 = vpop.permute.xlu2 %2986  ;;  %v5976_v30 = vpop.permute.xlu0 %2148 }
 0x2fe   : > { %v5979_v12 = vpop.permute.xlu1 %2183  ;;  %v2155_v32 = vrot.slane %v5976_v30, 4 }
 0x2ff   : > { %v2190_v40 = vrot.slane %v5979_v12, 4 }
 0x300   : > { %v2158_v56 = vsel %vm281_vm0, %v2154_v47, %v2155_v32 }
 0x301   : > { %v2193_v55 = vsel %vm281_vm0, %v2189_v50, %v2190_v40  ;;  %v2159_v51 = vsel %vm6839_vm4, %v5876_v7, %v2158_v56  ;;  %vm6844_vm4 = vcmask 64512  }
 0x302   : > { %v2194_v46 = vsel %vm6840_vm9, %v2182_v58, %v2193_v55  ;;  %2169 = vst [vmem:[#allocation2 + $0x38] sm:$0xff] %v2159_v51  ;;  %vm6845_vm9 = vcmask 138240  }
 0x303   : > { %2204 = vst [vmem:[#allocation2 + $0x54] sm:$0xff] %v2194_v46  ;;  %2360 = vrot.lane.b32.xlu0 %v5857_v53, %s6841_s19  ;;  %2778 = vrot.lane.b32.xlu2 %v5897_v31, %s6831_s15 }
 0x304   : > { %2117 = vrot.lane.b32.xlu1 %v5996_v20, %s6825_s25 }
 0x305   : > { %v6000_v25 = vpop.permute.xlu2 %2498  ;;  %v6002_v27 = vpop.permute.xlu0 %2253 }
 0x306   : > { %v2505_v34 = vrot.slane %v6000_v25, 4  ;;  %v6007_v42 = vpop.permute.xlu1 %2603  ;;  %v2260_v45 = vrot.slane %v6002_v27, 4 }
 0x307   : > { %v2610_v57 = vrot.slane %v6007_v42, 4 }
 0x308   : > { %v2508_v62 = vsel %vm281_vm0, %v2504_v21, %v2505_v34  ;;  %v2263_v60 = vsel %vm281_vm0, %v2259_v49, %v2260_v45  ;;  %v2364_v49 = vrot.slane %v5923_v35, 4 }
 0x309   : > { %v2509_v6 = vsel %vm6842_vm12, %v5911_v22, %v2508_v62  ;;  %v2613_v13 = vsel %vm281_vm0, %v2609_v5, %v2610_v57  ;;  %v2264_v7 = vsel %vm6843_vm10, %v5881_v26, %v2263_v60  ;;  %v2469_v26 = vrot.slane %v5890_v11, 4  ;;  %v4816_v22 = vld [vmem:[#allocation2 + $0x18c] sm:$0xf] }
 0x30a   : > { %2519 = vst [vmem:[#allocation2 + $0x150] sm:$0xff] %v2509_v6  ;;  %v2614_v4 = vsel %vm6844_vm4, %v5906_v54, %v2613_v13  ;;  %v4473_v54 = vld [vmem:[#allocation2 + $0x188] sm:$0xf]  ;;  %v2434_v62 = vrot.slane %v5934_v9, 4  ;;  %vm6846_vm12 = vcmask 883712   ;;  %vm6847_vm10 = vcmask 228352  }
 0x30b   : > { %2624 = vst [vmem:[#allocation2 + $0x1a4] sm:$0xff] %v2614_v4  ;;  %2743 = vrot.lane.b32.xlu2 %v5897_v31, %s6832_s29  ;;  %2187 = vrot.lane.b32.xlu0 %v5996_v20, %s6826_s26  ;;  %vm6848_vm4 = vcmask 1039360  }
 0x30c   : > { %2274 = vst [vmem:[#allocation2 + $0x8c] sm:$0xff] %v2264_v7  ;;  %2222 = vrot.lane.b32.xlu1 %v5996_v20, %s6828_s7  ;;  %s6857_s7 = smov 28  }
 0x30d   : > { %v6033_v8 = vpop.permute.xlu2 %2916  ;;  %v6035_v19 = vpop.permute.xlu0 %2463 }
 0x30e   : > { %v6038_v15 = vpop.permute.xlu1 %2533  ;;  %v2470_v0 = vrot.slane %v6035_v19, 4 }
 0x30f   : > { %v2540_v14 = vrot.slane %v6038_v15, 4 }
 0x310   : > { %v2473_v58 = vsel %vm281_vm0, %v2469_v26, %v2470_v0  ;;  %v6097_v26 = vld [vmem:[#allocation3 + $0x1c] sm:$0xff] }
 0x311   : > { %v2543_v31 = vsel %vm281_vm0, %v2539_v33, %v2540_v14  ;;  %v2474_v18 = vsel %vm643_vm15, %v5890_v11, %v2473_v58  ;;  %v4445_v28 = vld [vmem:[#allocation2 + $0x150] sm:$0xf]  ;;  %v4809_v47 = vld [vmem:[#allocation2 + $0x154] sm:$0xf]  ;;  %v2294_v58 = vrot.slane %v5899_v59, 4 }
 0x312   : > { %v2544_v63 = vsel %vm6845_vm9, %v5917_v61, %v2543_v31  ;;  %2484 = vst [vmem:[#allocation2 + $0x134] sm:$0xff] %v2474_v18  ;;  %v4819_v43 = vld [vmem:[#allocation2 + $0x1a0] sm:$0xf0]  ;;  %v4475_v10 = vld [vmem:[#allocation2 + $0x1a4] sm:$0xf0]  ;;  %vm6850_vm9 = vcmask 965632  }
 0x313   : > { %2554 = vst [vmem:[#allocation2 + $0x16c] sm:$0xff] %v2544_v63  ;;  %2325 = vrot.lane.b32.xlu2 %v5857_v53, %s4920_s10  ;;  %2990 = vrot.lane.b32.xlu0 %v6053_v17, %s4924_s14  ;;  %v4474_v44 = vor.u32 %v4819_v43, %v4473_v54  ;;  %v4478_v48 = vor.u32 %v4816_v22, %v4475_v10  ;;  %v2399_v22 = vrot.slane %v5959_v39, 4 }
 0x314   : > { %2955 = vrot.lane.b32.xlu1 %v6053_v17, %s4930_s20 }
 0x315   : > { %3646 = vmatpush.bf16.msrb.mxu0 %v4474_v44  ;;  %3672 = vmatpush.bf16.msra.mxu3 %v4478_v48  ;;  %v6061_v11 = vpop.permute.xlu2 %2881  ;;  %v6063_v61 = vpop.permute.xlu0 %2846 }
 0x316   : > { %v6065_v29 = vpop.permute.xlu1 %2951 }
 0x31a   : > { %v4812_v1 = vld [vmem:[#allocation2 + $0x168] sm:$0xf0]  ;;  %v4447_v50 = vld [vmem:[#allocation2 + $0x16c] sm:$0xf0] }
 0x31b   : > { %2920 = vrot.lane.b32.xlu0 %v6053_v17, %s4928_s18  ;;  %2152 = vrot.lane.b32.xlu2 %v5996_v20, %s4913_s27  ;;  %v4446_v56 = vor.u32 %v4812_v1, %v4445_v28  ;;  %v4450_v55 = vor.u32 %v4809_v47, %v4447_v50  ;;  %v4805_v1 = vld [vmem:[#allocation2 + $0x130] sm:$0xf0]  ;;  %v4419_v47 = vld [vmem:[#allocation2 + $0x134] sm:$0xf0]  ;;  %s6849_s27 = smov 46  }
 0x31c   : > { %2607 = vrot.lane.b32.xlu1 %v5996_v20, %s6837_s8  ;;  %s6860_s8 = smov 6  }
 0x31d   : > { %3647 = vmatpush.bf16.msrb.mxu0 %v4446_v56  ;;  %3673 = vmatpush.bf16.msra.mxu3 %v4450_v55  ;;  %v6073_v51 = vpop.permute.xlu2 %2358  ;;  %v6075_v46 = vpop.permute.xlu0 %2811 }
 0x31e   : > { %v2365_v21 = vrot.slane %v6073_v51, 4  ;;  %v6079_v5 = vpop.permute.xlu1 %2428 }
 0x31f   : > { %v2435_v60 = vrot.slane %v6079_v5, 4 }
 0x320   : > { %v2368_v6 = vsel %vm281_vm0, %v2364_v49, %v2365_v21 }
 0x321   : > { %v2369_v13 = vsel %vm535_vm14, %v5923_v35, %v2368_v6  ;;  %v2438_v7 = vsel %vm281_vm0, %v2434_v62, %v2435_v60  ;;  %v2644_v62 = vrot.slane %v5915_v2, 4 }
 0x322   : > { %2379 = vst [vmem:[#allocation2 + $0xe0] sm:$0xff] %v2369_v13  ;;  %v2439_v4 = vsel %vm607_vm13, %v5934_v9, %v2438_v7  ;;  %v2329_v9 = vrot.slane %v5940_v16, 4 }
 0x323   : > { %2449 = vst [vmem:[#allocation2 + $0x118] sm:$0xff] %v2439_v4  ;;  %2572 = vrot.lane.b32.xlu0 %v5996_v20, %s4919_s9  ;;  %2255 = vrot.lane.b32.xlu2 %v5857_v53, %s6827_s30 }
 0x324   : > { %2992 = vrot.lane.b32.xlu1 %v6097_v26, %s4924_s14 }
 0x325   : > { %v6101_v35 = vpop.permute.xlu2 %2323  ;;  %v6103_v33 = vpop.permute.xlu0 %2288 }
 0x326   : > { %v2330_v31 = vrot.slane %v6101_v35, 4  ;;  %v6108_v18 = vpop.permute.xlu1 %2393  ;;  %v2295_v54 = vrot.slane %v6103_v33, 4 }
 0x327   : > { %v2400_v63 = vrot.slane %v6108_v18, 4 }
 0x328   : > { %v2333_v43 = vsel %vm281_vm0, %v2329_v9, %v2330_v31  ;;  %v2298_v10 = vsel %vm281_vm0, %v2294_v58, %v2295_v54 }
 0x329   : > { %v2334_v44 = vsel %vm6812_vm7, %v5940_v16, %v2333_v43  ;;  %v2403_v48 = vsel %vm281_vm0, %v2399_v22, %v2400_v63  ;;  %v2299_v28 = vsel %vm6846_vm12, %v5899_v59, %v2298_v10  ;;  %v4389_v58 = vld [vmem:[#allocation2 + $0xe0] sm:$0xf]  ;;  %v4795_v9 = vld [vmem:[#allocation2 + $0xe4] sm:$0xf]  ;;  %vm6851_vm12 = vcmask 957440  }
 0x32a   : > { %2344 = vst [vmem:[#allocation2 + $0xc4] sm:$0xff] %v2334_v44  ;;  %v2404_v50 = vsel %vm6847_vm10, %v5959_v39, %v2403_v48  ;;  %v4417_v56 = vld [vmem:[#allocation2 + $0x118] sm:$0xf]  ;;  %v4802_v55 = vld [vmem:[#allocation2 + $0x11c] sm:$0xf]  ;;  %vm6852_vm10 = vcmask 1031168  }
 0x32b   : > { %2414 = vst [vmem:[#allocation2 + $0xfc] sm:$0xff] %v2404_v50  ;;  %2885 = vrot.lane.b32.xlu0 %v6053_v17, %s6830_s11  ;;  %2850 = vrot.lane.b32.xlu2 %v6053_v17, %s4932_s24  ;;  %v4418_v16 = vor.u32 %v4805_v1, %v4417_v56  ;;  %v4422_v49 = vor.u32 %v4802_v55, %v4419_v47  ;;  %v2679_v56 = vrot.slane %v5955_v23, 4 }
 0x32c   : > { %2309 = vst [vmem:[#allocation2 + $0xa8] sm:$0xff] %v2299_v28  ;;  %2780 = vrot.lane.b32.xlu1 %v6053_v17, %s6831_s15 }
 0x32d   : > { %3648 = vmatpush.bf16.msrb.mxu0 %v4418_v16  ;;  %3674 = vmatpush.bf16.msra.mxu3 %v4422_v49  ;;  %v6134_v59 = vpop.permute.xlu2 %2706  ;;  %v6136_v39 = vpop.permute.xlu0 %2638 }
 0x32e   : > { %v6139_v6 = vpop.permute.xlu1 %2776  ;;  %v6807_v13 = vrot.slane %v6136_v39, 4 }
 0x330   : > { %v2648_v7 = vsel %vm281_vm0, %v2644_v62, %v6807_v13 }
 0x331   : > { %v2649_v4 = vsel %vm823_vm5, %v5915_v2, %v2648_v7  ;;  %v4791_v48 = vld [vmem:[#allocation2 + $0xc0] sm:$0xf0]  ;;  %v4363_v2 = vld [vmem:[#allocation2 + $0xc4] sm:$0xf0] }
 0x332   : > { %2659 = vst [vmem:[#allocation2 + $0x1c0] sm:$0xff] %v2649_v4  ;;  %v4798_v22 = vld [vmem:[#allocation2 + $0xf8] sm:$0xf0]  ;;  %v4391_v43 = vld [vmem:[#allocation2 + $0xfc] sm:$0xf0] }
 0x333   : > { %2537 = vrot.lane.b32.xlu0 %v5996_v20, %s4922_s12  ;;  %2502 = vrot.lane.b32.xlu2 %v5996_v20, %s4923_s13  ;;  %v4390_v10 = vor.u32 %v4798_v22, %v4389_v58  ;;  %v4394_v44 = vor.u32 %v4795_v9, %v4391_v43  ;;  %v4361_v28 = vld [vmem:[#allocation2 + $0xa8] sm:$0xf]  ;;  %v4788_v1 = vld [vmem:[#allocation2 + $0xac] sm:$0xf]  ;;  %v4335_v22 = vld [vmem:[#allocation2 + $0x8c] sm:$0xf0] }
 0x334   : > { %2957 = vrot.lane.b32.xlu1 %v6097_v26, %s4930_s20  ;;  %v4362_v62 = vor.u32 %v4791_v48, %v4361_v28  ;;  %v4366_v7 = vor.u32 %v4788_v1, %v4363_v2  ;;  %v4784_v9 = vld [vmem:[#allocation2 + $0x88] sm:$0xf0]  ;;  %v4781_v48 = vld [vmem:[#allocation2 + $0x74] sm:$0xf]  ;;  %v4305_v1 = vld [vmem:[#allocation2 + $0x38] sm:$0xf] }
 0x335   : > { %3649 = vmatpush.bf16.msrb.mxu0 %v4390_v10  ;;  %3675 = vmatpush.bf16.msra.mxu3 %v4394_v44  ;;  %v6153_v47 = vpop.permute.xlu2 %2673  ;;  %v6155_v50 = vpop.permute.xlu0 %2115  ;;  %v4333_v44 = vld [vmem:[#allocation2 + $0x70] sm:$0xf]  ;;  %v4338_v28 = vor.u32 %v4781_v48, %v4335_v22  ;;  %v4307_v2 = vld [vmem:[#allocation2 + $0x54] sm:$0xf0]  ;;  %v4770_v48 = vld [vmem:[#allocation2 + $0x18] sm:$0xf0] }
 0x336   : > { %v6809_v55 = vrot.slane %v6153_v47, 4  ;;  %v6159_v16 = vpop.permute.xlu1 %2741  ;;  %v2121_v49 = vrot.slane %v6155_v50, 4 }
 0x338   : > { %v2683_v4 = vsel %vm281_vm0, %v2679_v56, %v6809_v55  ;;  %v2125_v58 = vsel %vm281_vm0, %v2120_v3, %v2121_v49  ;;  %v4334_v3 = vor.u32 %v4784_v9, %v4333_v44 }
 0x339   : > { %v2684_v43 = vsel %vm859_vm8, %v5955_v23, %v2683_v4  ;;  %v2126_v10 = vsel %vm6848_vm4, %v5927_v37, %v2125_v58  ;;  %3650 = vmatpush.bf16.msrb.mxu0 %v4362_v62  ;;  %3676 = vmatpush.bf16.msra.mxu3 %v4366_v7  ;;  %v4777_v23 = vld [vmem:[#allocation2 + $0x50] sm:$0xf0]  ;;  %v4774_v37 = vld [vmem:[#allocation2 + $0x3c] sm:$0xf]  ;;  %vm6853_vm4 = vcmask 277504  }
 0x33a   : > { %2694 = vst [vmem:[#allocation2 + $0x1dc] sm:$0xff] %v2684_v43  ;;  %v4306_v22 = vor.u32 %v4777_v23, %v4305_v1  ;;  %v4310_v43 = vor.u32 %v4774_v37, %v4307_v2  ;;  %v4277_v23 = vld [vmem:[#allocation2] sm:$0xf]  ;;  %v4767_v37 = vld [vmem:[#allocation2 + $0x4] sm:$0xf]  ;;  %v2994_v2 = vrot.slane %v5974_v52, 4 }
 0x33b   : > { %2135 = vst [vmem:[#allocation2 + $0x24] sm:$0xff] %v2126_v10  ;;  %2922 = vrot.lane.b32.xlu0 %v6097_v26, %s4928_s18  ;;  %2815 = vrot.lane.b32.xlu2 %v6053_v17, %s6849_s27 }
 0x33c   : > { %2710 = vrot.lane.b32.xlu1 %v6053_v17, %s6833_s17 }
 0x33d   : > { %3651 = vmatpush.bf16.msrb.mxu0 %v4334_v3  ;;  %3677 = vmatpush.bf16.msra.mxu3 %v4338_v28  ;;  %v6180_v56 = vpop.permute.xlu2 %2185  ;;  %v6182_v62 = vpop.permute.xlu0 %2220  ;;  %v4279_v3 = vld [vmem:[#allocation2 + $0x1c] sm:$0xf0] }
 0x33e   : > { %v2191_v7 = vrot.slane %v6180_v56, 4  ;;  %v6185_v4 = vpop.permute.xlu1 %2150  ;;  %v2226_v58 = vrot.slane %v6182_v62, 4 }
 0x33f   : > { %v2156_v9 = vrot.slane %v6185_v4, 4 }
 0x340   : > { %v2195_v10 = vsel %vm281_vm0, %v2190_v40, %v2191_v7  ;;  %v2230_v44 = vsel %vm281_vm0, %v2225_v24, %v2226_v58 }
 0x341   : > { %v2196_v28 = vsel %vm6850_vm9, %v5979_v12, %v2195_v10  ;;  %v2160_v1 = vsel %vm281_vm0, %v2155_v32, %v2156_v9  ;;  %v2231_v40 = vsel %vm6851_vm12, %v5944_v38, %v2230_v44  ;;  %3652 = vmatpush.bf16.msrb.mxu0 %v4306_v22  ;;  %3678 = vmatpush.bf16.msra.mxu3 %v4310_v43  ;;  %v2959_v22 = vrot.slane %v6065_v29, 4 }
 0x342   : > { %2205 = vst [vmem:[#allocation2 + $0x5c] sm:$0xff] %v2196_v28  ;;  %v2161_v24 = vsel %vm6852_vm10, %v5976_v30, %v2160_v1  ;;  %v4278_v12 = vor.u32 %v4770_v48, %v4277_v23  ;;  %v4282_v32 = vor.u32 %v4767_v37, %v4279_v3  ;;  %vm6854_vm9 = vcmask 130048  }
 0x343   : > { %2170 = vst [vmem:[#allocation2 + $0x40] sm:$0xff] %v2161_v24  ;;  %2467 = vrot.lane.b32.xlu0 %v5996_v20, %s6835_s28  ;;  %2432 = vrot.lane.b32.xlu2 %v5996_v20, %s4926_s16  ;;  %s6855_s28 = smov 7   ;;  %vm6856_vm12 = vcmask 64512   ;;  %vm6858_vm10 = vcmask 146432  }
 0x344   : > { %2240 = vst [vmem:[#allocation2 + $0x78] sm:$0xff] %v2231_v40  ;;  %2887 = vrot.lane.b32.xlu1 %v6097_v26, %s6830_s11  ;;  %s4866_s11 = smul.u32 56, %s6914_s22 }
 0x345   : > { %3653 = vmatpush.bf16.msrb.mxu0 %v4278_v12  ;;  %3679 = vmatpush.bf16.msra.mxu3 %v4282_v32  ;;  %v6216_v38 = vpop.permute.xlu2 %2953  ;;  %v6218_v30 = vpop.permute.xlu0 %2988  ;;  %v2854_v32 = vrot.slane %v6063_v61, 4 }
 0x346   : > { %v2960_v43 = vrot.slane %v6216_v38, 4  ;;  %v6223_v10 = vpop.permute.xlu1 %2570  ;;  %v2995_v44 = vrot.slane %v6218_v30, 4  ;;  %s6742_s14 = scalar_lea.vmem %s6760_s6, %s4866_s11 }
 0x347   : > { %v2576_v48 = vrot.slane %v6223_v10, 4 }
 0x348   : > { %v2963_v3 = vsel %vm281_vm0, %v2959_v22, %v2960_v43  ;;  %v2998_v28 = vsel %vm281_vm0, %v2994_v2, %v2995_v44 }
 0x349   : > { %v2964_v1 = vsel %vm1147_vm6, %v6065_v29, %v2963_v3  ;;  %v2580_v40 = vsel %vm281_vm0, %v2575_v36, %v2576_v48  ;;  %v2999_v24 = vsel %vm6853_vm4, %v5974_v52, %v2998_v28  ;;  %v2924_v52 = vrot.slane %v6033_v8, 4 }
 0x34a   : > { %2974 = vst [vmem:[#allocation2 + $0x2bc] sm:$0xff] %v2964_v1  ;;  %v2581_v23 = vsel %vm6854_vm9, %v5961_v41, %v2580_v40  ;;  %vm6859_vm4 = vcmask 375808   ;;  %vm6861_vm9 = vcmask 441344  }
 0x34b   : > { %2590 = vst [vmem:[#allocation2 + $0x190] sm:$0xff] %v2581_v23  ;;  %2852 = vrot.lane.b32.xlu0 %v6097_v26, %s4932_s24  ;;  %2745 = vrot.lane.b32.xlu2 %v6053_v17, %s6832_s29 }
 0x34c   : > { %3009 = vst [vmem:[#allocation2 + $0x2d8] sm:$0xff] %v2999_v24  ;;  %2640 = vrot.lane.b32.xlu1 %v5857_v53, %s6855_s28  ;;  %v4861_v24 = vld [vmem:[#allocation2 + $0x2f0] sm:$0xf0] }
 0x34d   : > { %v6250_v29 = vpop.permute.xlu2 %2605  ;;  %v6252_v36 = vpop.permute.xlu0 %2918 }
 0x34e   : > { %v2611_v37 = vrot.slane %v6250_v29, 4  ;;  %v6256_v41 = vpop.permute.xlu1 %2848  ;;  %v2925_v12 = vrot.slane %v6252_v36, 4 }
 0x34f   : > { %v2855_v17 = vrot.slane %v6256_v41, 4 }
 0x350   : > { %v2615_v2 = vsel %vm281_vm0, %v2610_v57, %v2611_v37  ;;  %v2928_v22 = vsel %vm281_vm0, %v2924_v52, %v2925_v12  ;;  %v4643_v57 = vld [vmem:[#allocation2 + $0x2f4] sm:$0xf0] }
 0x351   : > { %v2616_v3 = vsel %vm6856_vm12, %v6007_v42, %v2615_v2  ;;  %v2858_v28 = vsel %vm281_vm0, %v2854_v32, %v2855_v17  ;;  %v2929_v1 = vsel %vm1111_vm2, %v6033_v8, %v2928_v22  ;;  %v2889_v2 = vrot.slane %v6061_v11, 4  ;;  %v4854_v13 = vld [vmem:[#allocation2 + $0x2b8] sm:$0xf0] }
 0x352   : > { %2625 = vst [vmem:[#allocation2 + $0x1ac] sm:$0xff] %v2616_v3  ;;  %v2859_v40 = vsel %vm1039_vm1, %v6063_v61, %v2858_v28  ;;  %vm6862_vm12 = vcmask 138240  }
 0x353   : > { %2869 = vst [vmem:[#allocation2 + $0x268] sm:$0xff] %v2859_v40  ;;  %2397 = vrot.lane.b32.xlu0 %v5996_v20, %s6857_s7  ;;  %2362 = vrot.lane.b32.xlu2 %v5996_v20, %s6841_s19  ;;  %v4641_v42 = vld [vmem:[#allocation2 + $0x2d8] sm:$0xf]  ;;  %v4858_v23 = vld [vmem:[#allocation2 + $0x2dc] sm:$0xf] }
 0x354   : > { %2939 = vst [vmem:[#allocation2 + $0x2a0] sm:$0xff] %v2929_v1  ;;  %2817 = vrot.lane.b32.xlu1 %v6097_v26, %s6849_s27  ;;  %v4642_v8 = vor.u32 %v4861_v24, %v4641_v42  ;;  %v4646_v52 = vor.u32 %v4858_v23, %v4643_v57  ;;  %v2819_v1 = vrot.slane %v6075_v46, 4 }
 0x355   : > { %v6284_v32 = vpop.permute.xlu2 %2500  ;;  %v6286_v61 = vpop.permute.xlu0 %2883 }
 0x356   : > { %3661 = vmatpush.bf16.msrb.mxu2 %v4642_v8  ;;  %3687 = vmatpush.bf16.msra.mxu1 %v4646_v52  ;;  %v2506_v22 = vrot.slane %v6284_v32, 4  ;;  %v6290_v3 = vpop.permute.xlu1 %2813  ;;  %v2890_v28 = vrot.slane %v6286_v61, 4 }
 0x357   : > { %v2820_v40 = vrot.slane %v6290_v3, 4 }
 0x358   : > { %v2510_v24 = vsel %vm281_vm0, %v2505_v34, %v2506_v22  ;;  %v2893_v57 = vsel %vm281_vm0, %v2889_v2, %v2890_v28  ;;  %v4615_v34 = vld [vmem:[#allocation2 + $0x2bc] sm:$0xf0] }
 0x359   : > { %v2511_v42 = vsel %vm6858_vm10, %v6000_v25, %v2510_v24  ;;  %v2823_v23 = vsel %vm281_vm0, %v2819_v1, %v2820_v40  ;;  %v2894_v8 = vsel %vm1075_vm3, %v6061_v11, %v2893_v57  ;;  %v2784_v57 = vrot.slane %v6139_v6, 4 }
 0x35a   : > { %2520 = vst [vmem:[#allocation2 + $0x158] sm:$0xff] %v2511_v42  ;;  %v2824_v52 = vsel %vm6859_vm4, %v6075_v46, %v2823_v23  ;;  %vm6863_vm10 = vcmask 449536   ;;  %vm6864_vm4 = vcmask 228352  }
 0x35b   : > { %2834 = vst [vmem:[#allocation2 + $0x24c] sm:$0xff] %v2824_v52  ;;  %2782 = vrot.lane.b32.xlu0 %v6097_v26, %s6831_s15  ;;  %2675 = vrot.lane.b32.xlu2 %v5857_v53, %s6860_s8  ;;  %v4613_v25 = vld [vmem:[#allocation2 + $0x2a0] sm:$0xf]  ;;  %v4851_v2 = vld [vmem:[#allocation2 + $0x2a4] sm:$0xf] }
 0x35c   : > { %2904 = vst [vmem:[#allocation2 + $0x284] sm:$0xff] %v2894_v8  ;;  %2712 = vrot.lane.b32.xlu1 %v6097_v26, %s6833_s17  ;;  %v4614_v11 = vor.u32 %v4854_v13, %v4613_v25  ;;  %v4618_v1 = vor.u32 %v4851_v2, %v4615_v34 }
 0x35d   : > { %v6318_v24 = vpop.permute.xlu2 %2778  ;;  %v6320_v46 = vpop.permute.xlu0 %2535 }
 0x35e   : > { %3662 = vmatpush.bf16.msrb.mxu2 %v4614_v11  ;;  %3688 = vmatpush.bf16.msra.mxu1 %v4618_v1  ;;  %v2785_v42 = vrot.slane %v6318_v24, 4  ;;  %v6324_v23 = vpop.permute.xlu1 %2465  ;;  %v6810_v53 = vrot.slane %v6320_v46, 4  ;;  %v4585_v1 = vld [vmem:[#allocation2 + $0x268] sm:$0xf] }
 0x35f   : > { %v6808_v8 = vrot.slane %v6324_v23, 4 }
 0x360   : > { %v2788_v13 = vsel %vm281_vm0, %v2784_v57, %v2785_v42  ;;  %v2545_v52 = vsel %vm281_vm0, %v2540_v14, %v6810_v53  ;;  %v4844_v57 = vld [vmem:[#allocation2 + $0x26c] sm:$0xf] }
 0x361   : > { %v2789_v34 = vsel %vm6861_vm9, %v6139_v6, %v2788_v13  ;;  %v2475_v25 = vsel %vm281_vm0, %v2470_v0, %v6808_v8  ;;  %v2546_v2 = vsel %vm6862_vm12, %v6038_v15, %v2545_v52  ;;  %v2749_v52 = vrot.slane %v6159_v16, 4 }
 0x362   : > { %2799 = vst [vmem:[#allocation2 + $0x230] sm:$0xff] %v2789_v34  ;;  %v2476_v11 = vsel %vm643_vm15, %v6035_v19, %v2475_v25  ;;  %v4559_v55 = vld [vmem:[#allocation2 + $0x24c] sm:$0xf0]  ;;  %vm6865_vm9 = vcmask 883712   ;;  %vm6866_vm12 = vcmask 1031168  }
 0x363   : > { %2485 = vst [vmem:[#allocation2 + $0x13c] sm:$0xff] %v2476_v11  ;;  %2327 = vrot.lane.b32.xlu0 %v5996_v20, %s4920_s10  ;;  %2292 = vrot.lane.b32.xlu2 %v5996_v20, %s6829_s23  ;;  %v4847_v14 = vld [vmem:[#allocation2 + $0x280] sm:$0xf0]  ;;  %v4587_v6 = vld [vmem:[#allocation2 + $0x284] sm:$0xf0] }
 0x364   : > { %2555 = vst [vmem:[#allocation2 + $0x174] sm:$0xff] %v2546_v2  ;;  %2642 = vrot.lane.b32.xlu1 %v5996_v20, %s6855_s28  ;;  %v4586_v15 = vor.u32 %v4847_v14, %v4585_v1  ;;  %v4590_v0 = vor.u32 %v4844_v57, %v4587_v6  ;;  %v4840_v14 = vld [vmem:[#allocation2 + $0x248] sm:$0xf0] }
 0x365   : > { %v6353_v13 = vpop.permute.xlu2 %2743  ;;  %v6355_v19 = vpop.permute.xlu0 %2430 }
 0x366   : > { %3663 = vmatpush.bf16.msrb.mxu2 %v4586_v15  ;;  %3689 = vmatpush.bf16.msra.mxu1 %v4590_v0  ;;  %v6811_v34 = vrot.slane %v6353_v13, 4  ;;  %v6359_v25 = vpop.permute.xlu1 %2395  ;;  %v2436_v11 = vrot.slane %v6355_v19, 4 }
 0x367   : > { %v2401_v2 = vrot.slane %v6359_v25, 4 }
 0x368   : > { %v2753_v1 = vsel %vm281_vm0, %v2749_v52, %v6811_v34  ;;  %v2440_v57 = vsel %vm281_vm0, %v2435_v60, %v2436_v11 }
 0x369   : > { %v2754_v6 = vsel %vm6863_vm10, %v6159_v16, %v2753_v1  ;;  %v2405_v15 = vsel %vm281_vm0, %v2400_v63, %v2401_v2  ;;  %v2441_v0 = vsel %vm607_vm13, %v6079_v5, %v2440_v57  ;;  %v4557_v52 = vld [vmem:[#allocation2 + $0x230] sm:$0xf]  ;;  %v4837_v8 = vld [vmem:[#allocation2 + $0x234] sm:$0xf]  ;;  %v2714_v16 = vrot.slane %v6134_v59, 4  ;;  %vm6867_vm10 = vmmov %vm6866_vm12 }
 0x36a   : > { %2764 = vst [vmem:[#allocation2 + $0x214] sm:$0xff] %v2754_v6  ;;  %v2406_v60 = vsel %vm6864_vm4, %v6108_v18, %v2405_v15  ;;  %v4558_v53 = vor.u32 %v4840_v14, %v4557_v52  ;;  %v4562_v34 = vor.u32 %v4837_v8, %v4559_v55  ;;  %vm6868_vm4 = vcmask 1039360  }
 0x36b   : > { %2415 = vst [vmem:[#allocation2 + $0x104] sm:$0xff] %v2406_v60  ;;  %2257 = vrot.lane.b32.xlu0 %v5996_v20, %s6827_s30  ;;  %2747 = vrot.lane.b32.xlu2 %v6097_v26, %s6832_s29 }
 0x36c   : > { %2450 = vst [vmem:[#allocation2 + $0x120] sm:$0xff] %v2441_v0  ;;  %3664 = vmatpush.bf16.msrb.mxu2 %v4558_v53  ;;  %3690 = vmatpush.bf16.msra.mxu1 %v4562_v34 }
 0x36d   : > { %v6386_v5 = vpop.permute.xlu2 %2325  ;;  %v6388_v63 = vpop.permute.xlu0 %2708 }
 0x36e   : > { %v2331_v18 = vrot.slane %v6386_v5, 4  ;;  %v6392_v1 = vpop.permute.xlu1 %2290  ;;  %v2715_v55 = vrot.slane %v6388_v63, 4 }
 0x36f   : > { %v2296_v8 = vrot.slane %v6392_v1, 4 }
 0x370   : > { %v2335_v26 = vsel %vm281_vm0, %v2330_v31, %v2331_v18  ;;  %v2718_v53 = vsel %vm281_vm0, %v2714_v16, %v2715_v55 }
 0x371   : > { %v2336_v34 = vsel %vm6812_vm7, %v6101_v35, %v2335_v26  ;;  %v2300_v57 = vsel %vm281_vm0, %v2295_v54, %v2296_v8  ;;  %v2719_v14 = vsel %vm895_vm11, %v6134_v59, %v2718_v53 }
 0x372   : > { %2345 = vst [vmem:[#allocation2 + $0xcc] sm:$0xff] %v2336_v34  ;;  %v2301_v31 = vsel %vm6865_vm9, %v6103_v33, %v2300_v57  ;;  %vm6869_vm9 = vmmov %vm6868_vm4  ;;  %v4833_v34 = vld [vmem:[#allocation2 + $0x210] sm:$0xf0]  ;;  %v4531_v57 = vld [vmem:[#allocation2 + $0x214] sm:$0xf0] }
 0x373   : > { %2310 = vst [vmem:[#allocation2 + $0xb0] sm:$0xff] %v2301_v31  ;;  %2677 = vrot.lane.b32.xlu2 %v5996_v20, %s6860_s8 }
 0x374   : > { %2729 = vst [vmem:[#allocation2 + $0x1f8] sm:$0xff] %v2719_v14 }
 0x375   : > { %v2153_v6 = vpop.permute.xlu2 %2152  ;;  %v6417_v35 = vpop.permute.xlu0 %2360 }
 0x376   : > { %v2157_v15 = vrot.slane %v2153_v6, 4  ;;  %v2118_v0 = vpop.permute.xlu1 %2117  ;;  %v2366_v52 = vrot.slane %v6417_v35, 4 }
 0x377   : > { %v2122_v54 = vrot.slane %v2118_v0, 4 }
 0x378   : > { %v2162_v59 = vsel %vm281_vm0, %v2156_v9, %v2157_v15  ;;  %v2164_v60 = vsel %vm6866_vm12, %v2153_v6, %v2157_v15  ;;  %v2370_v20 = vsel %vm281_vm0, %v2365_v21, %v2366_v52  ;;  %v4826_v6 = vld [vmem:[#allocation2 + $0x1d8] sm:$0xf0]  ;;  %v4503_v15 = vld [vmem:[#allocation2 + $0x1dc] sm:$0xf0]  ;;  %vm6870_vm12 = vcmask 965632  }
 0x379   : > { %v2163_v33 = vsel %vm6867_vm10, %v6185_v4, %v2162_v59  ;;  %2172 = vst [vmem:[#allocation2 + $0x50] sm:$0xf] %v2164_v60  ;;  %v2127_v16 = vsel %vm281_vm0, %v2121_v49, %v2122_v54  ;;  %v2129_v26 = vsel %vm6868_vm4, %v2118_v0, %v2122_v54  ;;  %v2371_v53 = vsel %vm535_vm14, %v6073_v51, %v2370_v20  ;;  %v4501_v54 = vld [vmem:[#allocation2 + $0x1c0] sm:$0xf]  ;;  %v4820_v59 = vld [vmem:[#allocation2 + $0x1a8] sm:$0xf0]  ;;  %vm6874_vm7 = vmmov %vm6870_vm12 }
 0x37a   : > { %2171 = vst [vmem:[#allocation2 + $0x48] sm:$0xff] %v2163_v33  ;;  %v2128_v9 = vsel %vm6869_vm9, %v6155_v50, %v2127_v16  ;;  %v4823_v20 = vld [vmem:[#allocation2 + $0x1c4] sm:$0xf]  ;;  %v4483_v33 = vld [vmem:[#allocation2 + $0x1ac] sm:$0xf0]  ;;  %vm6871_vm10 = vcmask 949248  }
 0x37b   : > { %2136 = vst [vmem:[#allocation2 + $0x2c] sm:$0xff] %v2128_v9  ;;  %v4529_v21 = vld [vmem:[#allocation2 + $0x1f8] sm:$0xf]  ;;  %v4830_v14 = vld [vmem:[#allocation2 + $0x1fc] sm:$0xf]  ;;  %v4506_v9 = vor.u32 %v4823_v20, %v4503_v15  ;;  %vm6872_vm4 = vcmask 957440  }
 0x37c   : > { %2137 = vst [vmem:[#allocation2 + $0x34] sm:$0xf] %v2129_v26  ;;  %v4530_v4 = vor.u32 %v4833_v34, %v4529_v21  ;;  %v4534_v31 = vor.u32 %v4830_v14, %v4531_v57  ;;  %v4502_v26 = vor.u32 %v4826_v6, %v4501_v54  ;;  %v4481_v34 = vld [vmem:[#allocation2 + $0x190] sm:$0xf]  ;;  %vm6873_vm9 = vmmov %vm6872_vm4 }
 0x37d   : > { %2380 = vst [vmem:[#allocation2 + $0xe8] sm:$0xff] %v2371_v53  ;;  %v6439_v49 = vpop.permute.xlu2 %2255  ;;  %v2188_v0 = vpop.permute.xlu0 %2187  ;;  %v4482_v14 = vor.u32 %v4820_v59, %v4481_v34  ;;  %v4455_v59 = vld [vmem:[#allocation2 + $0x174] sm:$0xf0] }
 0x37e   : > { %3665 = vmatpush.bf16.msrb.mxu2 %v4530_v4  ;;  %3691 = vmatpush.bf16.msra.mxu1 %v4534_v31  ;;  %v2261_v51 = vrot.slane %v6439_v49, 4  ;;  %v2223_v50 = vpop.permute.xlu1 %2222  ;;  %v2192_v60 = vrot.slane %v2188_v0, 4  ;;  %v4817_v4 = vld [vmem:[#allocation2 + $0x194] sm:$0xf] }
 0x37f   : > { %v2227_v16 = vrot.slane %v2223_v50, 4  ;;  %v4486_v54 = vor.u32 %v4817_v4, %v4483_v33 }
 0x380   : > { %v2265_v53 = vsel %vm281_vm0, %v2260_v45, %v2261_v51  ;;  %v2197_v57 = vsel %vm281_vm0, %v2191_v7, %v2192_v60  ;;  %v2199_v21 = vsel %vm6870_vm12, %v2188_v0, %v2192_v60  ;;  %v4813_v0 = vld [vmem:[#allocation2 + $0x170] sm:$0xf0]  ;;  %vm6875_vm12 = vcmask 277504  }
 0x381   : > { %v2266_v31 = vsel %vm6871_vm10, %v6002_v27, %v2265_v53  ;;  %v2232_v6 = vsel %vm281_vm0, %v2226_v58, %v2227_v16  ;;  %v2234_v15 = vsel %vm6872_vm4, %v2223_v50, %v2227_v16  ;;  %2207 = vst [vmem:[#allocation2 + $0x6c] sm:$0xf] %v2199_v21  ;;  %v2198_v7 = vsel %vm6874_vm7, %v6180_v56, %v2197_v57  ;;  %v6464_v27 = vld [vmem:[%s6758_s4] sm:$0xff]  ;;  %v4453_v50 = vld [vmem:[#allocation2 + $0x158] sm:$0xf] }
 0x382   : > { %2275 = vst [vmem:[#allocation2 + $0x94] sm:$0xff] %v2266_v31  ;;  %v2233_v45 = vsel %vm6873_vm9, %v6182_v62, %v2232_v6  ;;  %3666 = vmatpush.bf16.msrb.mxu2 %v4502_v26  ;;  %3692 = vmatpush.bf16.msra.mxu1 %v4506_v9  ;;  %v3134_v58 = vunpack.c.h.b16 %v6464_v27  ;;  %v4810_v62 = vld [vmem:[#allocation2 + $0x15c] sm:$0xf]  ;;  %v4454_v56 = vor.u32 %v4813_v0, %v4453_v50  ;;  %v4425_v16 = vld [vmem:[#allocation2 + $0x120] sm:$0xf]  ;;  %vm6813_vm7 = vcmask 785408  }
 0x383   : > { %2241 = vst [vmem:[#allocation2 + $0x80] sm:$0xff] %v2233_v45  ;;  %v4458_v20 = vor.u32 %v4810_v62, %v4455_v59  ;;  %v4803_v57 = vld [vmem:[#allocation2 + $0x124] sm:$0xf]  ;;  %vm6876_vm10 = vcmask 146432   ;;  %vm6878_vm9 = vcmask 64512  }
 0x384   : > { %2242 = vst [vmem:[#allocation2 + $0x88] sm:$0xf] %v2234_v15  ;;  %v6471_v26 = vpack.c.b16 %v3134_v58, %v3134_v58  ;;  %v4427_v15 = vld [vmem:[#allocation2 + $0x13c] sm:$0xf0]  ;;  %v4397_v0 = vld [vmem:[#allocation2 + $0xe8] sm:$0xf]  ;;  %vm6877_vm4 = vmmov %vm6876_vm10 }
 0x385   : > { %2206 = vst [vmem:[#allocation2 + $0x64] sm:$0xff] %v2198_v7  ;;  %v6467_v60 = vpop.permute.xlu2 %2850  ;;  %v6469_v33 = vpop.permute.xlu0 %2990  ;;  %v4430_v45 = vor.u32 %v4803_v57, %v4427_v15  ;;  %v4796_v59 = vld [vmem:[#allocation2 + $0xec] sm:$0xf]  ;;  %v4399_v58 = vld [vmem:[#allocation2 + $0x104] sm:$0xf0] }
 0x386   : > { %3698 = vmatpush.bf16.msra.mxu2 %v4482_v14  ;;  %3724 = vmatpush.bf16.msrb.mxu1 %v4486_v54  ;;  %v2856_v9 = vrot.slane %v6467_v60, 4  ;;  %v6474_v34 = vpop.permute.xlu1 %2955  ;;  %v2996_v53 = vrot.slane %v6469_v33, 4  ;;  %v4806_v14 = vld [vmem:[#allocation2 + $0x138] sm:$0xf0] }
 0x387   : > { %v2961_v21 = vrot.slane %v6474_v34, 4  ;;  %v4426_v6 = vor.u32 %v4806_v14, %v4425_v16  ;;  %4667 = vmatmul.msk.bf16.vlgmr.msrb.gmra.mxu2 %vm6813_vm7, %v6471_v26  ;;  %4668 = vmatmul.msk.bf16.vlgmr.msra.gmra.mxu1 %vm6813_vm7, %v6471_v26 }
 0x388   : > { %v2860_v4 = vsel %vm281_vm0, %v2855_v17, %v2856_v9  ;;  %v3000_v31 = vsel %vm281_vm0, %v2995_v44, %v2996_v53 }
 0x389   : > { %v2861_v54 = vsel %vm1039_vm1, %v6256_v41, %v2860_v4  ;;  %v2965_v17 = vsel %vm281_vm0, %v2960_v43, %v2961_v21  ;;  %v3001_v44 = vsel %vm6875_vm12, %v6218_v30, %v3000_v31  ;;  %v4799_v41 = vld [vmem:[#allocation2 + $0x100] sm:$0xf0]  ;;  %v4792_v30 = vld [vmem:[#allocation2 + $0xc8] sm:$0xf0]  ;;  %v4371_v4 = vld [vmem:[#allocation2 + $0xcc] sm:$0xf0] }
 0x38a   : > { %3699 = vmatpush.bf16.msra.mxu2 %v4454_v56  ;;  %3725 = vmatpush.bf16.msrb.mxu1 %v4458_v20  ;;  %2870 = vst [vmem:[#allocation2 + $0x270] sm:$0xff] %v2861_v54  ;;  %v2966_v7 = vsel %vm1147_vm6, %v6216_v38, %v2965_v17  ;;  %v4398_v62 = vor.u32 %v4799_v41, %v4397_v0  ;;  %v4369_v20 = vld [vmem:[#allocation2 + $0xb0] sm:$0xf]  ;;  %v4789_v38 = vld [vmem:[#allocation2 + $0xb4] sm:$0xf]  ;;  %vm6879_vm12 = vmmov %vm6878_vm9 }
 0x38b   : > { %2975 = vst [vmem:[#allocation2 + $0x2c4] sm:$0xff] %v2966_v7  ;;  %v4402_v56 = vor.u32 %v4796_v59, %v4399_v58  ;;  %v4370_v17 = vor.u32 %v4792_v30, %v4369_v20  ;;  %v4862_v0 = vld [vmem:[#allocation2 + $0x2f8] sm:$0xf0]  ;;  %v4651_v59 = vld [vmem:[#allocation2 + $0x2fc] sm:$0xf0] }
 0x38c   : > { %3010 = vst [vmem:[#allocation2 + $0x2e0] sm:$0xff] %v3001_v44  ;;  %v4785_v58 = vld [vmem:[#allocation2 + $0x90] sm:$0xf0]  ;;  %v4341_v20 = vld [vmem:[#allocation2 + $0x78] sm:$0xf] }
 0x38d   : > { %v2503_v50 = vpop.permute.xlu2 %2502  ;;  %v6503_v43 = vpop.permute.xlu0 %2920  ;;  %v4782_v30 = vld [vmem:[#allocation2 + $0x7c] sm:$0xf] }
 0x38e   : > { %3700 = vmatpush.bf16.msra.mxu2 %v4426_v6  ;;  %3726 = vmatpush.bf16.msrb.mxu1 %v4430_v45  ;;  %v2507_v16 = vrot.slane %v2503_v50, 4  ;;  %v2608_v57 = vpop.permute.xlu1 %2607  ;;  %v2926_v14 = vrot.slane %v6503_v43, 4 }
 0x38f   : > { %v2612_v31 = vrot.slane %v2608_v57, 4 }
 0x390   : > { %v2512_v6 = vsel %vm281_vm0, %v2506_v22, %v2507_v16  ;;  %v2514_v15 = vsel %vm6876_vm10, %v2503_v50, %v2507_v16  ;;  %v2930_v54 = vsel %vm281_vm0, %v2925_v12, %v2926_v14  ;;  %v4374_v22 = vor.u32 %v4789_v38, %v4371_v4  ;;  %v4343_v50 = vld [vmem:[#allocation2 + $0x94] sm:$0xf0]  ;;  %v4313_v4 = vld [vmem:[#allocation2 + $0x40] sm:$0xf] }
 0x391   : > { %v2513_v44 = vsel %vm6877_vm4, %v6284_v32, %v2512_v6  ;;  %2522 = vst [vmem:[#allocation2 + $0x168] sm:$0xf] %v2514_v15  ;;  %v2617_v45 = vsel %vm281_vm0, %v2611_v37, %v2612_v31  ;;  %v2619_v7 = vsel %vm6878_vm9, %v2608_v57, %v2612_v31  ;;  %v2931_v12 = vsel %vm1111_vm2, %v6252_v36, %v2930_v54  ;;  %v4778_v36 = vld [vmem:[#allocation2 + $0x58] sm:$0xf0]  ;;  %v4775_v54 = vld [vmem:[#allocation2 + $0x44] sm:$0xf] }
 0x392   : > { %3701 = vmatpush.bf16.msra.mxu2 %v4398_v62  ;;  %3727 = vmatpush.bf16.msrb.mxu1 %v4402_v56  ;;  %2521 = vst [vmem:[#allocation2 + $0x160] sm:$0xff] %v2513_v44  ;;  %v2618_v41 = vsel %vm6879_vm12, %v6250_v29, %v2617_v45  ;;  %v4342_v57 = vor.u32 %v4785_v58, %v4341_v20  ;;  %vm6880_vm10 = vcmask 130048   ;;  %vm6881_vm4 = vcmask 375808  }
 0x393   : > { %2626 = vst [vmem:[#allocation2 + $0x1b4] sm:$0xff] %v2618_v41  ;;  %v4649_v32 = vld [vmem:[#allocation2 + $0x2e0] sm:$0xf]  ;;  %v4859_v62 = vld [vmem:[#allocation2 + $0x2e4] sm:$0xf]  ;;  %v4346_v29 = vor.u32 %v4782_v30, %v4343_v50  ;;  %vm6882_vm9 = vcmask 277504   ;;  %vm6884_vm7 = vmmov %vm6880_vm10 }
 0x394   : > { %2627 = vst [vmem:[#allocation2 + $0x1bc] sm:$0xf] %v2619_v7  ;;  %v4650_v37 = vor.u32 %v4862_v0, %v4649_v32  ;;  %v4654_v56 = vor.u32 %v4859_v62, %v4651_v59  ;;  %v4314_v0 = vor.u32 %v4778_v36, %v4313_v4  ;;  %vm6883_vm12 = vmmov %vm6882_vm9  ;;  %v4771_v50 = vld [vmem:[#allocation2 + $0x20] sm:$0xf0]  ;;  %v4287_v32 = vld [vmem:[#allocation2 + $0x24] sm:$0xf0] }
 0x395   : > { %2940 = vst [vmem:[#allocation2 + $0x2a8] sm:$0xff] %v2931_v12  ;;  %v6525_v16 = vpop.permute.xlu2 %2815  ;;  %v2573_v38 = vpop.permute.xlu0 %2572  ;;  %v4623_v62 = vld [vmem:[#allocation2 + $0x2c4] sm:$0xf0] }
 0x396   : > { %3702 = vmatpush.bf16.msra.mxu2 %v4370_v17  ;;  %3728 = vmatpush.bf16.msrb.mxu1 %v4374_v22  ;;  %v2821_v31 = vrot.slane %v6525_v16, 4  ;;  %v2993_v6 = vpop.permute.xlu1 %2992  ;;  %v2577_v15 = vrot.slane %v2573_v38, 4  ;;  %v4315_v17 = vld [vmem:[#allocation2 + $0x5c] sm:$0xf0] }
 0x397   : > { %3713 = vmatpush.bf16.msra.mxu0 %v4650_v37  ;;  %3739 = vmatpush.bf16.msrb.mxu3 %v4654_v56  ;;  %v2997_v44 = vrot.slane %v2993_v6, 4  ;;  %v4318_v58 = vor.u32 %v4775_v54, %v4315_v17 }
 0x398   : > { %v2825_v45 = vsel %vm281_vm0, %v2820_v40, %v2821_v31  ;;  %v2582_v7 = vsel %vm281_vm0, %v2576_v48, %v2577_v15  ;;  %v2584_v22 = vsel %vm6880_vm10, %v2573_v38, %v2577_v15  ;;  %vm6889_vm10 = vcmask 449536  }
 0x399   : > { %v2826_v59 = vsel %vm6881_vm4, %v6290_v3, %v2825_v45  ;;  %v3002_v41 = vsel %vm281_vm0, %v2996_v53, %v2997_v44  ;;  %v3004_v12 = vsel %vm6882_vm9, %v2993_v6, %v2997_v44  ;;  %2592 = vst [vmem:[#allocation2 + $0x1a0] sm:$0xf] %v2584_v22  ;;  %v2583_v48 = vsel %vm6884_vm7, %v6223_v10, %v2582_v7  ;;  %v4855_v3 = vld [vmem:[#allocation2 + $0x2c0] sm:$0xf0] }
 0x39a   : > { %3703 = vmatpush.bf16.msra.mxu2 %v4342_v57  ;;  %3729 = vmatpush.bf16.msrb.mxu1 %v4346_v29  ;;  %2835 = vst [vmem:[#allocation2 + $0x254] sm:$0xff] %v2826_v59  ;;  %v3003_v40 = vsel %vm6883_vm12, %v6469_v33, %v3002_v41  ;;  %v4285_v57 = vld [vmem:[#allocation2 + $0x8] sm:$0xf]  ;;  %v4768_v29 = vld [vmem:[#allocation2 + $0xc] sm:$0xf]  ;;  %vm6885_vm7 = vcmask 441344  }
 0x39b   : > { %3011 = vst [vmem:[#allocation2 + $0x2e8] sm:$0xff] %v3003_v40  ;;  %v4286_v4 = vor.u32 %v4771_v50, %v4285_v57  ;;  %v4290_v36 = vor.u32 %v4768_v29, %v4287_v32  ;;  %v4863_v22 = vld [vmem:[#allocation2 + $0x300] sm:$0xf0]  ;;  %v4593_v29 = vld [vmem:[#allocation2 + $0x270] sm:$0xf]  ;;  %vm6900_vm9 = vcmask 228352  }
 0x39c   : > { %3012 = vst [vmem:[#allocation2 + $0x2f0] sm:$0xf] %v3004_v12  ;;  %v4621_v53 = vld [vmem:[#allocation2 + $0x2a8] sm:$0xf]  ;;  %v4852_v37 = vld [vmem:[#allocation2 + $0x2ac] sm:$0xf]  ;;  %vm6901_vm12 = vmmov %vm6900_vm9 }
 0x39d   : > { %2591 = vst [vmem:[#allocation2 + $0x198] sm:$0xff] %v2583_v48  ;;  %v4622_v56 = vor.u32 %v4855_v3, %v4621_v53  ;;  %v4626_v20 = vor.u32 %v4852_v37, %v4623_v62  ;;  %v2433_v30 = vpop.permute.xlu2 %2432  ;;  %v6547_v33 = vpop.permute.xlu0 %2885  ;;  %v6887_v3 = vrot.slane %v6320_v46, 4 }
 0x39e   : > { %3704 = vmatpush.bf16.msra.mxu2 %v4314_v0  ;;  %3730 = vmatpush.bf16.msrb.mxu1 %v4318_v58  ;;  %v2437_v38 = vrot.slane %v2433_v30, 4  ;;  %v6549_v10 = vpop.permute.xlu1 %2780  ;;  %v2891_v6 = vrot.slane %v6547_v33, 4  ;;  %v4659_v0 = vld [vmem:[#allocation2 + $0x304] sm:$0xf0] }
 0x39f   : > { %3714 = vmatpush.bf16.msra.mxu0 %v4622_v56  ;;  %3740 = vmatpush.bf16.msrb.mxu3 %v4626_v20  ;;  %v2786_v15 = vrot.slane %v6549_v10, 4 }
 0x3a0   : > { %v2442_v54 = vsel %vm281_vm0, %v2436_v11, %v2437_v38  ;;  %v2444_v17 = vsel %vm607_vm13, %v2433_v30, %v2437_v38  ;;  %v2895_v44 = vsel %vm281_vm0, %v2890_v28, %v2891_v6  ;;  %v4845_v38 = vld [vmem:[#allocation2 + $0x274] sm:$0xf] }
 0x3a1   : > { %v2443_v45 = vsel %vm607_vm13, %v6355_v19, %v2442_v54  ;;  %2452 = vst [vmem:[#allocation2 + $0x130] sm:$0xf] %v2444_v17  ;;  %v2790_v11 = vsel %vm281_vm0, %v2785_v42, %v2786_v15  ;;  %v2896_v7 = vsel %vm1075_vm3, %v6286_v61, %v2895_v44  ;;  %vm6888_vm13 = vcmask 138240  }
 0x3a2   : > { %3705 = vmatpush.bf16.msra.mxu2 %v4286_v4  ;;  %3731 = vmatpush.bf16.msrb.mxu1 %v4290_v36  ;;  %2451 = vst [vmem:[#allocation2 + $0x128] sm:$0xff] %v2443_v45  ;;  %v2791_v59 = vsel %vm6885_vm7, %v6318_v24, %v2790_v11  ;;  %v4657_v28 = vld [vmem:[#allocation2 + $0x2e8] sm:$0xf]  ;;  %v4860_v41 = vld [vmem:[#allocation2 + $0x2ec] sm:$0xf]  ;;  %v6886_v24 = vrot.slane %v6353_v13, 4  ;;  %vm6890_vm4 = vmmov %vm6888_vm13 }
 0x3a3   : > { %2800 = vst [vmem:[#allocation2 + $0x238] sm:$0xff] %v2791_v59  ;;  %v4658_v19 = vor.u32 %v4863_v22, %v4657_v28  ;;  %v4662_v12 = vor.u32 %v4860_v41, %v4659_v0  ;;  %v3133_v22 = vunpack.c.l.b16 %v6464_v27  ;;  %v4567_v28 = vld [vmem:[#allocation2 + $0x254] sm:$0xf0]  ;;  %vm6902_vm7 = vcmask 785408  }
 0x3a4   : > { %2905 = vst [vmem:[#allocation2 + $0x28c] sm:$0xff] %v2896_v7 }
 0x3a5   : > { %v6573_v58 = vpop.permute.xlu2 %2745  ;;  %v2538_v42 = vpop.permute.xlu0 %2537 }
 0x3a6   : > { %3765 = vmatpush.bf16.msrb.mxu2 %v4658_v19  ;;  %3791 = vmatpush.bf16.msra.mxu1 %v4662_v12  ;;  %v2751_v40 = vrot.slane %v6573_v58, 4  ;;  %v2958_v61 = vpop.permute.xlu1 %2957  ;;  %v2542_v48 = vrot.slane %v2538_v42, 4 }
 0x3a7   : > { %v2962_v50 = vrot.slane %v2958_v61, 4 }
 0x3a8   : > { %v2755_v32 = vsel %vm281_vm0, %v6886_v24, %v2751_v40  ;;  %v2547_v62 = vsel %vm281_vm0, %v6887_v3, %v2542_v48  ;;  %v2549_v53 = vsel %vm6888_vm13, %v2538_v42, %v2542_v48  ;;  %v6615_v48 = vpack.c.b16 %v3133_v22, %v3133_v22 }
 0x3a9   : > { %v2756_v37 = vsel %vm6889_vm10, %v6353_v13, %v2755_v32  ;;  %v2967_v56 = vsel %vm281_vm0, %v2961_v21, %v2962_v50  ;;  %v2969_v20 = vsel %vm1147_vm6, %v2958_v61, %v2962_v50  ;;  %2557 = vst [vmem:[#allocation2 + $0x184] sm:$0xf] %v2549_v53  ;;  %v2548_v57 = vsel %vm6890_vm4, %v6320_v46, %v2547_v62  ;;  %v4841_v46 = vld [vmem:[#allocation2 + $0x250] sm:$0xf0] }
 0x3aa   : > { %2765 = vst [vmem:[#allocation2 + $0x21c] sm:$0xff] %v2756_v37  ;;  %v2968_v30 = vsel %vm1147_vm6, %v6474_v34, %v2967_v56  ;;  %v4565_v17 = vld [vmem:[#allocation2 + $0x238] sm:$0xf]  ;;  %v4838_v45 = vld [vmem:[#allocation2 + $0x23c] sm:$0xf]  ;;  %3654 = vmatmul.bf16.vlgmr.msrb.gmra.mxu0 %v6615_v48  ;;  %3680 = vmatmul.bf16.vlgmr.msra.gmra.mxu3 %v6615_v48  ;;  %v6891_v3 = vrot.slane %v6153_v47, 4  ;;  %vm6896_vm6 = vmmov %vm6889_vm10 }
 0x3ab   : > { %2976 = vst [vmem:[#allocation2 + $0x2cc] sm:$0xff] %v2968_v30  ;;  %v4848_v4 = vld [vmem:[#allocation2 + $0x288] sm:$0xf0]  ;;  %v4595_v36 = vld [vmem:[#allocation2 + $0x28c] sm:$0xf0]  ;;  %v4566_v59 = vor.u32 %v4841_v46, %v4565_v17  ;;  %v4570_v42 = vor.u32 %v4838_v45, %v4567_v28  ;;  %3706 = vmatmul.bf16.vlgmr.msra.gmra.mxu2 %v6615_v48  ;;  %3732 = vmatmul.bf16.vlgmr.msrb.gmra.mxu1 %v6615_v48  ;;  %v6892_v53 = vrot.slane %v6324_v23, 4  ;;  %vm6904_vm10 = vmmov %vm6902_vm7 }
 0x3ac   : > { %2977 = vst [vmem:[#allocation2 + $0x2d4] sm:$0xf] %v2969_v20  ;;  %v4594_v13 = vor.u32 %v4848_v4, %v4593_v29  ;;  %v4598_v54 = vor.u32 %v4845_v38, %v4595_v36  ;;  %vm6903_vm13 = vcmask 441344  }
 0x3ad   : > { %2556 = vst [vmem:[#allocation2 + $0x17c] sm:$0xff] %v2548_v57  ;;  %v2363_v21 = vpop.permute.xlu2 %2362  ;;  %v2923_v44 = vpop.permute.xlu0 %2922 }
 0x3ae   : > { %3715 = vmatpush.bf16.msra.mxu0 %v4594_v13  ;;  %3741 = vmatpush.bf16.msrb.mxu3 %v4598_v54  ;;  %v2367_v11 = vrot.slane %v2363_v21, 4  ;;  %v6595_v34 = vpop.permute.xlu1 %2710  ;;  %v2927_v7 = vrot.slane %v2923_v44, 4 }
 0x3af   : > { %v2716_v0 = vrot.slane %v6595_v34, 4 }
 0x3b0   : > { %v2372_v41 = vsel %vm281_vm0, %v2366_v52, %v2367_v11  ;;  %v2374_v19 = vsel %vm535_vm14, %v2363_v21, %v2367_v11  ;;  %v2932_v12 = vsel %vm281_vm0, %v2926_v14, %v2927_v7  ;;  %v2934_v50 = vsel %vm1111_vm2, %v2923_v44, %v2927_v7 }
 0x3b1   : > { %v2373_v61 = vsel %vm535_vm14, %v6417_v35, %v2372_v41  ;;  %2382 = vst [vmem:[#allocation2 + $0xf8] sm:$0xf] %v2374_v19  ;;  %v2720_v27 = vsel %vm281_vm0, %v2715_v55, %v2716_v0  ;;  %v2933_v52 = vsel %vm1111_vm2, %v6503_v43, %v2932_v12  ;;  %v4834_v20 = vld [vmem:[#allocation2 + $0x218] sm:$0xf0]  ;;  %v4539_v30 = vld [vmem:[#allocation2 + $0x21c] sm:$0xf0] }
 0x3b2   : > { %2381 = vst [vmem:[#allocation2 + $0xf0] sm:$0xff] %v2373_v61  ;;  %v2721_v14 = vsel %vm895_vm11, %v6388_v63, %v2720_v27  ;;  %3716 = vmatpush.bf16.msra.mxu0 %v4566_v59  ;;  %3742 = vmatpush.bf16.msrb.mxu3 %v4570_v42  ;;  %v4856_v4 = vld [vmem:[#allocation2 + $0x2c8] sm:$0xf0]  ;;  %v4631_v36 = vld [vmem:[#allocation2 + $0x2cc] sm:$0xf0]  ;;  %vm6893_vm2 = vcmask 883712  }
 0x3b3   : > { %2730 = vst [vmem:[#allocation2 + $0x200] sm:$0xff] %v2721_v14  ;;  %v6895_v61 = vrot.slane %v6136_v39, 4  ;;  %vm6898_vm14 = vcmask 375808  }
 0x3b4   : > { %2941 = vst [vmem:[#allocation2 + $0x2b0] sm:$0xff] %v2933_v52 }
 0x3b5   : > { %2942 = vst [vmem:[#allocation2 + $0x2b8] sm:$0xf] %v2934_v50  ;;  %v6624_v55 = vpop.permute.xlu2 %2675  ;;  %v2468_v35 = vpop.permute.xlu0 %2467 }
 0x3b6   : > { %v2681_v63 = vrot.slane %v6624_v55, 4  ;;  %v2888_v43 = vpop.permute.xlu1 %2887  ;;  %v2472_v24 = vrot.slane %v2468_v35, 4 }
 0x3b7   : > { %v2892_v32 = vrot.slane %v2888_v43, 4 }
 0x3b8   : > { %v2685_v62 = vsel %vm281_vm0, %v6891_v3, %v2681_v63  ;;  %v2477_v37 = vsel %vm281_vm0, %v6892_v53, %v2472_v24  ;;  %v2479_v56 = vsel %vm643_vm15, %v2468_v35, %v2472_v24 }
 0x3b9   : > { %v2686_v57 = vsel %vm859_vm8, %v6153_v47, %v2685_v62  ;;  %v2897_v29 = vsel %vm281_vm0, %v2891_v6, %v2892_v32  ;;  %v2899_v38 = vsel %vm1075_vm3, %v2888_v43, %v2892_v32  ;;  %2487 = vst [vmem:[#allocation2 + $0x14c] sm:$0xf] %v2479_v56  ;;  %v2478_v54 = vsel %vm643_vm15, %v6324_v23, %v2477_v37  ;;  %v4489_v37 = vld [vmem:[#allocation2 + $0x198] sm:$0xf]  ;;  %v4818_v56 = vld [vmem:[#allocation2 + $0x19c] sm:$0xf]  ;;  %vm6899_vm15 = vmmov %vm6898_vm14 }
 0x3ba   : > { %2695 = vst [vmem:[#allocation2 + $0x1e4] sm:$0xff] %v2686_v57  ;;  %v2898_v13 = vsel %vm1075_vm3, %v6547_v33, %v2897_v29  ;;  %v4537_v17 = vld [vmem:[#allocation2 + $0x200] sm:$0xf]  ;;  %v4831_v21 = vld [vmem:[#allocation2 + $0x204] sm:$0xf]  ;;  %vm6894_vm3 = vmmov %vm6893_vm2 }
 0x3bb   : > { %2906 = vst [vmem:[#allocation2 + $0x294] sm:$0xff] %v2898_v13  ;;  %v4538_v47 = vor.u32 %v4834_v20, %v4537_v17  ;;  %v4542_v44 = vor.u32 %v4831_v21, %v4539_v30  ;;  %v4629_v45 = vld [vmem:[#allocation2 + $0x2b0] sm:$0xf]  ;;  %v4853_v11 = vld [vmem:[#allocation2 + $0x2b4] sm:$0xf] }
 0x3bc   : > { %2907 = vst [vmem:[#allocation2 + $0x29c] sm:$0xf] %v2899_v38  ;;  %v4630_v6 = vor.u32 %v4856_v4, %v4629_v45  ;;  %v4634_v7 = vor.u32 %v4853_v11, %v4631_v36  ;;  %v4491_v45 = vld [vmem:[#allocation2 + $0x1b4] sm:$0xf0] }
 0x3bd   : > { %2486 = vst [vmem:[#allocation2 + $0x144] sm:$0xff] %v2478_v54  ;;  %3717 = vmatpush.bf16.msra.mxu0 %v4538_v47  ;;  %3743 = vmatpush.bf16.msrb.mxu3 %v4542_v44  ;;  %v2293_v46 = vpop.permute.xlu2 %2292  ;;  %v2853_v22 = vpop.permute.xlu0 %2852  ;;  %v4821_v44 = vld [vmem:[#allocation2 + $0x1b0] sm:$0xf0] }
 0x3be   : > { %3766 = vmatpush.bf16.msrb.mxu2 %v4630_v6  ;;  %3792 = vmatpush.bf16.msra.mxu1 %v4634_v7  ;;  %v2297_v33 = vrot.slane %v2293_v46, 4  ;;  %v6646_v59 = vpop.permute.xlu1 %2640  ;;  %v2857_v23 = vrot.slane %v2853_v22, 4  ;;  %v4490_v11 = vor.u32 %v4821_v44, %v4489_v37  ;;  %v4814_v7 = vld [vmem:[#allocation2 + $0x178] sm:$0xf0] }
 0x3bf   : > { %v2646_v28 = vrot.slane %v6646_v59, 4 }
 0x3c0   : > { %v2302_v41 = vsel %vm281_vm0, %v2296_v8, %v2297_v33  ;;  %v2304_v19 = vsel %vm6893_vm2, %v2293_v46, %v2297_v33  ;;  %v2862_v12 = vsel %vm281_vm0, %v2856_v9, %v2857_v23  ;;  %v2864_v14 = vsel %vm1039_vm1, %v2853_v22, %v2857_v23  ;;  %v4463_v23 = vld [vmem:[#allocation2 + $0x17c] sm:$0xf0] }
 0x3c1   : > { %v2303_v42 = vsel %vm6894_vm3, %v6392_v1, %v2302_v41  ;;  %2312 = vst [vmem:[#allocation2 + $0xc0] sm:$0xf] %v2304_v19  ;;  %v2650_v27 = vsel %vm281_vm0, %v6895_v61, %v2646_v28  ;;  %v2863_v52 = vsel %vm1039_vm1, %v6467_v60, %v2862_v12  ;;  %v3126_v1 = vld [vmem:[%s6759_s5] sm:$0xff]  ;;  %v4511_v53 = vld [vmem:[#allocation2 + $0x1e4] sm:$0xf0]  ;;  %vm6897_vm1 = vmmov %vm6896_vm6 }
 0x3c2   : > { %2311 = vst [vmem:[#allocation2 + $0xb8] sm:$0xff] %v2303_v42  ;;  %v2651_v8 = vsel %vm823_vm5, %v6136_v39, %v2650_v27  ;;  %3129 = vperm.xlu0 %4904, %v3126_v1   ;;  %v4827_v62 = vld [vmem:[#allocation2 + $0x1e0] sm:$0xf0]  ;;  %v4849_v57 = vld [vmem:[#allocation2 + $0x290] sm:$0xf0] }
 0x3c3   : > { %2660 = vst [vmem:[#allocation2 + $0x1c8] sm:$0xff] %v2651_v8  ;;  %v4603_v29 = vld [vmem:[#allocation2 + $0x294] sm:$0xf0]  ;;  %v4461_v19 = vld [vmem:[#allocation2 + $0x160] sm:$0xf] }
 0x3c4   : > { %2871 = vst [vmem:[#allocation2 + $0x278] sm:$0xff] %v2863_v52  ;;  %v4462_v27 = vor.u32 %v4814_v7, %v4461_v19  ;;  %v4811_v52 = vld [vmem:[#allocation2 + $0x164] sm:$0xf] }
 0x3c5   : > { %2872 = vst [vmem:[#allocation2 + $0x280] sm:$0xf] %v2864_v14  ;;  %v2748_v9 = vpop.permute.xlu2 %2747  ;;  %v2398_v50 = vpop.permute.xlu0 %2397  ;;  %v4466_v1 = vor.u32 %v4811_v52, %v4463_v23  ;;  %v4815_v52 = vld [vmem:[#allocation2 + $0x180] sm:$0xf0] }
 0x3c6   : > { %v2752_v35 = vrot.slane %v2748_v9, 4  ;;  %v2818_v43 = vpop.permute.xlu1 %2817  ;;  %v2402_v24 = vrot.slane %v2398_v50, 4 }
 0x3c7   : > { %v2822_v60 = vrot.slane %v2818_v43, 4 }
 0x3c8   : > { %v2757_v39 = vsel %vm281_vm0, %v2751_v40, %v2752_v35  ;;  %v2759_v32 = vsel %vm6896_vm6, %v2748_v9, %v2752_v35  ;;  %v2407_v3 = vsel %vm281_vm0, %v2401_v2, %v2402_v24  ;;  %v4435_v35 = vld [vmem:[#allocation2 + $0x144] sm:$0xf0] }
 0x3c9   : > { %v2758_v20 = vsel %vm6897_vm1, %v6573_v58, %v2757_v39  ;;  %2767 = vst [vmem:[#allocation2 + $0x22c] sm:$0xf] %v2759_v32  ;;  %v2827_v30 = vsel %vm281_vm0, %v2821_v31, %v2822_v60  ;;  %v2829_v40 = vsel %vm6898_vm14, %v2818_v43, %v2822_v60  ;;  %v2408_v38 = vsel %vm6900_vm9, %v6359_v25, %v2407_v3  ;;  %v4804_v43 = vld [vmem:[#allocation2 + $0x12c] sm:$0xf] }
 0x3ca   : > { %2766 = vst [vmem:[#allocation2 + $0x224] sm:$0xff] %v2758_v20  ;;  %v2828_v2 = vsel %vm6899_vm15, %v6525_v16, %v2827_v30  ;;  %v4509_v4 = vld [vmem:[#allocation2 + $0x1c8] sm:$0xf]  ;;  %v4824_v36 = vld [vmem:[#allocation2 + $0x1cc] sm:$0xf]  ;;  %v2409_v58 = vsel %vm6901_vm12, %v2398_v50, %v2402_v24  ;;  %v4494_v25 = vor.u32 %v4818_v56, %v4491_v45  ;;  %v4438_v60 = vor.u32 %v4804_v43, %v4435_v35 }
 0x3cb   : > { %2836 = vst [vmem:[#allocation2 + $0x25c] sm:$0xff] %v2828_v2  ;;  %v4510_v13 = vor.u32 %v4827_v62, %v4509_v4  ;;  %v4514_v54 = vor.u32 %v4824_v36, %v4511_v53  ;;  %v4601_v17 = vld [vmem:[#allocation2 + $0x278] sm:$0xf]  ;;  %v4846_v31 = vld [vmem:[#allocation2 + $0x27c] sm:$0xf] }
 0x3cc   : > { %2837 = vst [vmem:[#allocation2 + $0x264] sm:$0xf] %v2829_v40  ;;  %v4602_v21 = vor.u32 %v4849_v57, %v4601_v17  ;;  %v4606_v47 = vor.u32 %v4846_v31, %v4603_v29  ;;  %v4807_v50 = vld [vmem:[#allocation2 + $0x140] sm:$0xf0]  ;;  %v4405_v53 = vld [vmem:[#allocation2 + $0xf0] sm:$0xf] }
 0x3cd   : > { %2416 = vst [vmem:[#allocation2 + $0x10c] sm:$0xff] %v2408_v38  ;;  %3718 = vmatpush.bf16.msra.mxu0 %v4510_v13  ;;  %3744 = vmatpush.bf16.msrb.mxu3 %v4514_v54  ;;  %v2678_v16 = vpop.permute.xlu2 %2677  ;;  %v2783_v6 = vpop.permute.xlu0 %2782  ;;  %v4797_v30 = vld [vmem:[#allocation2 + $0xf4] sm:$0xf]  ;;  %v4323_v43 = vld [vmem:[#allocation2 + $0x64] sm:$0xf0] }
 0x3ce   : > { %2417 = vst [vmem:[#allocation2 + $0x114] sm:$0xf] %v2409_v58  ;;  %3767 = vmatpush.bf16.msrb.mxu2 %v4602_v21  ;;  %3793 = vmatpush.bf16.msra.mxu1 %v4606_v47  ;;  %v2682_v46 = vrot.slane %v2678_v16, 4  ;;  %v2713_v22 = vpop.permute.xlu1 %2712  ;;  %v2787_v33 = vrot.slane %v2783_v6, 4 }
 0x3cf   : > { %v2717_v41 = vrot.slane %v2713_v22, 4 }
 0x3d0   : > { %v2687_v12 = vsel %vm281_vm0, %v2681_v63, %v2682_v46  ;;  %v2689_v42 = vsel %vm859_vm8, %v2678_v16, %v2682_v46  ;;  %v2792_v61 = vsel %vm281_vm0, %v2786_v15, %v2787_v33  ;;  %4669 = vmatmul.msk.bf16.vlgmr.msra.gmra.mxu0 %vm6902_vm7, %v6471_v26  ;;  %4670 = vmatmul.msk.bf16.vlgmr.msrb.gmra.mxu3 %vm6904_vm10, %v6471_v26  ;;  %v4497_v46 = vld [vmem:[#allocation2 + $0x1a0] sm:$0xf] }
 0x3d1   : > { %3750 = vmatpush.bf16.msrb.mxu0 %v4490_v11  ;;  %3776 = vmatpush.bf16.msra.mxu3 %v4494_v25  ;;  %v2688_v8 = vsel %vm859_vm8, %v6624_v55, %v2687_v12  ;;  %2697 = vst [vmem:[#allocation2 + $0x1f4] sm:$0xf] %v2689_v42  ;;  %v2722_v14 = vsel %vm281_vm0, %v2716_v0, %v2717_v41  ;;  %vm6905_vm8 = vmmov %vm6903_vm13  ;;  %v4433_v0 = vld [vmem:[#allocation2 + $0x128] sm:$0xf]  ;;  %v4835_v47 = vld [vmem:[#allocation2 + $0x220] sm:$0xf0] }
 0x3d2   : > { %v2724_v63 = vsel %vm895_vm11, %v2713_v22, %v2717_v41  ;;  %2696 = vst [vmem:[#allocation2 + $0x1ec] sm:$0xff] %v2688_v8  ;;  %v2723_v15 = vsel %vm895_vm11, %v6595_v34, %v2722_v14  ;;  %v2793_v9 = vsel %vm6903_vm13, %v6549_v10, %v2792_v61  ;;  %v2794_v55 = vsel %vm6905_vm8, %v2783_v6, %v2787_v33  ;;  %v4575_v4 = vld [vmem:[#allocation2 + $0x25c] sm:$0xf0]  ;;  %v4547_v44 = vld [vmem:[#allocation2 + $0x224] sm:$0xf0] }
 0x3d3   : > { %2731 = vst [vmem:[#allocation2 + $0x208] sm:$0xff] %v2723_v15  ;;  %v4434_v24 = vor.u32 %v4807_v50, %v4433_v0  ;;  %vm6906_vm11 = vcmask 875520   ;;  %v4377_v25 = vld [vmem:[#allocation2 + $0xb8] sm:$0xf]  ;;  %v4790_v41 = vld [vmem:[#allocation2 + $0xbc] sm:$0xf] }
 0x3d4   : > { %2732 = vst [vmem:[#allocation2 + $0x210] sm:$0xf] %v2724_v63  ;;  %v4800_v39 = vld [vmem:[#allocation2 + $0x108] sm:$0xf0]  ;;  %v4407_v3 = vld [vmem:[#allocation2 + $0x10c] sm:$0xf0]  ;;  %vm6907_vm4 = vmmov %vm6906_vm11 }
 0x3d5   : > { %3751 = vmatpush.bf16.msrb.mxu0 %v4462_v27  ;;  %3777 = vmatpush.bf16.msra.mxu3 %v4466_v1  ;;  %2801 = vst [vmem:[#allocation2 + $0x240] sm:$0xff] %v2793_v9  ;;  %v2328_v34 = vpop.permute.xlu0 %2327  ;;  %v4406_v20 = vor.u32 %v4800_v39, %v4405_v53  ;;  %v4410_v2 = vor.u32 %v4797_v30, %v4407_v3  ;;  %v4349_v8 = vld [vmem:[#allocation2 + $0x80] sm:$0xf]  ;;  %v4783_v14 = vld [vmem:[#allocation2 + $0x84] sm:$0xf] }
 0x3d6   : > { %2802 = vst [vmem:[#allocation2 + $0x248] sm:$0xf] %v2794_v55  ;;  %v2643_v10 = vpop.permute.xlu1 %2642  ;;  %v2332_v32 = vrot.slane %v2328_v34, 4  ;;  %v4469_v63 = vld [vmem:[#allocation2 + $0x168] sm:$0xf] }
 0x3d7   : > { %v2647_v62 = vrot.slane %v2643_v10, 4  ;;  %v4470_v9 = vor.u32 %v4815_v52, %v4469_v63  ;;  %v4808_v55 = vld [vmem:[#allocation2 + $0x148] sm:$0xf0]  ;;  %v4779_v0 = vld [vmem:[#allocation2 + $0x60] sm:$0xf0] }
 0x3d8   : > { %v2337_v37 = vsel %vm281_vm0, %v2331_v18, %v2332_v32  ;;  %v2339_v56 = vsel %vm6906_vm11, %v2328_v34, %v2332_v32  ;;  %v4842_v18 = vld [vmem:[#allocation2 + $0x258] sm:$0xf0]  ;;  %v4801_v3 = vld [vmem:[#allocation2 + $0x110] sm:$0xf0]  ;;  %v4295_v53 = vld [vmem:[#allocation2 + $0x2c] sm:$0xf0] }
 0x3d9   : > { %3752 = vmatpush.bf16.msrb.mxu0 %v4434_v24  ;;  %3778 = vmatpush.bf16.msra.mxu3 %v4438_v60  ;;  %v2652_v40 = vsel %vm281_vm0, %v2646_v28, %v2647_v62  ;;  %v2654_v57 = vsel %vm823_vm5, %v2643_v10, %v2647_v62  ;;  %v2338_v29 = vsel %vm6907_vm4, %v6386_v5, %v2337_v37  ;;  %v4828_v6 = vld [vmem:[#allocation2 + $0x1e8] sm:$0xf0]  ;;  %v4519_v7 = vld [vmem:[#allocation2 + $0x1ec] sm:$0xf0]  ;;  %v4321_v60 = vld [vmem:[#allocation2 + $0x48] sm:$0xf] }
 0x3da   : > { %2347 = vst [vmem:[#allocation2 + $0xdc] sm:$0xf] %v2339_v56  ;;  %v2653_v38 = vsel %vm823_vm5, %v6646_v59, %v2652_v40  ;;  %v4545_v31 = vld [vmem:[#allocation2 + $0x208] sm:$0xf]  ;;  %v4832_v5 = vld [vmem:[#allocation2 + $0x20c] sm:$0xf]  ;;  %v4322_v39 = vor.u32 %v4779_v0, %v4321_v60 }
 0x3db   : > { %2662 = vst [vmem:[#allocation2 + $0x1d8] sm:$0xf] %v2654_v57  ;;  %vm6908_vm5 = vcmask 949248   ;;  %v4546_v16 = vor.u32 %v4835_v47, %v4545_v31  ;;  %v4550_v11 = vor.u32 %v4832_v5, %v4547_v44  ;;  %v4441_v24 = vld [vmem:[#allocation2 + $0x130] sm:$0xf] }
 0x3dc   : > { %2661 = vst [vmem:[#allocation2 + $0x1d0] sm:$0xff] %v2653_v38  ;;  %v4573_v36 = vld [vmem:[#allocation2 + $0x240] sm:$0xf]  ;;  %v4839_v58 = vld [vmem:[#allocation2 + $0x244] sm:$0xf]  ;;  %vm6909_vm2 = vmmov %vm6908_vm5  ;;  %v4442_v34 = vor.u32 %v4808_v55, %v4441_v24 }
 0x3dd   : > { %3753 = vmatpush.bf16.msrb.mxu0 %v4406_v20  ;;  %3779 = vmatpush.bf16.msra.mxu3 %v4410_v2  ;;  %2346 = vst [vmem:[#allocation2 + $0xd4] sm:$0xff] %v2338_v29  ;;  %v4574_v28 = vor.u32 %v4842_v18, %v4573_v36  ;;  %v4578_v13 = vor.u32 %v4839_v58, %v4575_v4  ;;  %v2258_v54 = vpop.permute.xlu0 %2257  ;;  %v4776_v10 = vld [vmem:[#allocation2 + $0x4c] sm:$0xf]  ;;  %v4665_v37 = vld [vmem:[#allocation2 + $0x2f0] sm:$0xf] }
 0x3de   : > { %v2262_v17 = vrot.slane %v2258_v54, 4  ;;  %v4326_v32 = vor.u32 %v4776_v10, %v4323_v43  ;;  %v4772_v62 = vld [vmem:[#allocation2 + $0x28] sm:$0xf0]  ;;  %v4413_v56 = vld [vmem:[#allocation2 + $0xf8] sm:$0xf] }
 0x3df   : > { %3768 = vmatpush.bf16.msrb.mxu2 %v4574_v28  ;;  %3794 = vmatpush.bf16.msra.mxu1 %v4578_v13  ;;  %v4293_v20 = vld [vmem:[#allocation2 + $0x10] sm:$0xf]  ;;  %v4414_v30 = vor.u32 %v4801_v3, %v4413_v56  ;;  %v4769_v57 = vld [vmem:[#allocation2 + $0x14] sm:$0xf]  ;;  %v4864_v29 = vld [vmem:[#allocation2 + $0x308] sm:$0xf0] }
 0x3e0   : > { %v2267_v59 = vsel %vm281_vm0, %v2261_v51, %v2262_v17  ;;  %v2269_v21 = vsel %vm6908_vm5, %v2258_v54, %v2262_v17  ;;  %vm6910_vm0 = vmmov %vm6902_vm7  ;;  %v4294_v40 = vor.u32 %v4772_v62, %v4293_v20  ;;  %v4298_v2 = vor.u32 %v4769_v57, %v4295_v53  ;;  %v4637_v4 = vld [vmem:[#allocation2 + $0x2b8] sm:$0xf]  ;;  %v4385_v36 = vld [vmem:[#allocation2 + $0xc0] sm:$0xf] }
 0x3e1   : > { %v2268_v45 = vsel %vm6909_vm2, %v6439_v49, %v2267_v59  ;;  %2277 = vst [vmem:[#allocation2 + $0xa4] sm:$0xf] %v2269_v21  ;;  %v4822_v49 = vld [vmem:[#allocation2 + $0x1b8] sm:$0xf0]  ;;  %vm6911_vm3 = vmmov %vm6910_vm0  ;;  %v4666_v18 = vor.u32 %v4864_v29, %v4665_v37  ;;  %v4857_v28 = vld [vmem:[#allocation2 + $0x2d0] sm:$0xf0] }
 0x3e2   : > { %2276 = vst [vmem:[#allocation2 + $0x9c] sm:$0xff] %v2268_v45  ;;  %v4498_v27 = vor.u32 %v4822_v49, %v4497_v46  ;;  %v4794_v38 = vld [vmem:[#allocation2 + $0xd8] sm:$0xf0]  ;;  %v4638_v54 = vor.u32 %v4857_v28, %v4637_v4  ;;  %v4609_v17 = vld [vmem:[#allocation2 + $0x280] sm:$0xf]  ;;  %vm6912_vm6 = vmmov %vm6910_vm0 }
 0x3e3   : > { %v4517_v22 = vld [vmem:[#allocation2 + $0x1d0] sm:$0xf]  ;;  %v4825_v33 = vld [vmem:[#allocation2 + $0x1d4] sm:$0xf]  ;;  %3769 = vmatpush.bf16.msrb.mxu2 %v4546_v16  ;;  %3795 = vmatpush.bf16.msra.mxu1 %v4550_v11  ;;  %v4386_v58 = vor.u32 %v4794_v38, %v4385_v36  ;;  %v4357_v31 = vld [vmem:[#allocation2 + $0x88] sm:$0xf] }
 0x3e4   : > { %v4793_v51 = vld [vmem:[#allocation2 + $0xd0] sm:$0xf0]  ;;  %v4518_v23 = vor.u32 %v4828_v6, %v4517_v22  ;;  %v4379_v19 = vld [vmem:[#allocation2 + $0xd4] sm:$0xf0]  ;;  %v4522_v12 = vor.u32 %v4825_v33, %v4519_v7  ;;  %v4850_v59 = vld [vmem:[#allocation2 + $0x298] sm:$0xf0] }
 0x3e5   : > { %v4378_v42 = vor.u32 %v4793_v51, %v4377_v25  ;;  %v4382_v61 = vor.u32 %v4790_v41, %v4379_v19  ;;  %v4780_v21 = vld [vmem:[#allocation2 + $0x68] sm:$0xf0]  ;;  %v4610_v47 = vor.u32 %v4850_v59, %v4609_v17  ;;  %v4581_v44 = vld [vmem:[#allocation2 + $0x248] sm:$0xf]  ;;  %v4329_v45 = vld [vmem:[#allocation2 + $0x50] sm:$0xf] }
 0x3e6   : > { %v4330_v16 = vor.u32 %v4780_v21, %v4329_v45  ;;  %v4843_v11 = vld [vmem:[#allocation2 + $0x260] sm:$0xf0]  ;;  %v4773_v25 = vld [vmem:[#allocation2 + $0x30] sm:$0xf0]  ;;  %v4553_v7 = vld [vmem:[#allocation2 + $0x210] sm:$0xf] }
 0x3e7   : > { %3754 = vmatpush.bf16.msrb.mxu0 %v4378_v42  ;;  %3780 = vmatpush.bf16.msra.mxu3 %v4382_v61  ;;  %v4582_v6 = vor.u32 %v4843_v11, %v4581_v44  ;;  %v4301_v46 = vld [vmem:[#allocation2 + $0x18] sm:$0xf]  ;;  %v4836_v33 = vld [vmem:[#allocation2 + $0x228] sm:$0xf0]  ;;  %v4829_v41 = vld [vmem:[#allocation2 + $0x1f0] sm:$0xf0] }
 0x3e8   : > { %3770 = vmatpush.bf16.msrb.mxu2 %v4518_v23  ;;  %3796 = vmatpush.bf16.msra.mxu1 %v4522_v12  ;;  %v4787_v13 = vld [vmem:[#allocation2 + $0xa0] sm:$0xf0]  ;;  %v4302_v22 = vor.u32 %v4773_v25, %v4301_v46  ;;  %v4554_v51 = vor.u32 %v4836_v33, %v4553_v7  ;;  %v4525_v23 = vld [vmem:[#allocation2 + $0x1d8] sm:$0xf] }
 0x3e9   : > { %v4786_v1 = vld [vmem:[#allocation2 + $0x98] sm:$0xf0]  ;;  %v4351_v15 = vld [vmem:[#allocation2 + $0x9c] sm:$0xf0]  ;;  %v4358_v5 = vor.u32 %v4787_v13, %v4357_v31  ;;  %v4526_v19 = vor.u32 %v4829_v41, %v4525_v23 }
 0x3ea   : > { %v4350_v50 = vor.u32 %v4786_v1, %v4349_v8  ;;  %v4354_v35 = vor.u32 %v4783_v14, %v4351_v15 }
 0x3eb   : > { %4671 = vmatmul.msk.bf16.vlgmr.msrb.gmra.mxu2 %vm6910_vm0, %v6471_v26  ;;  %4672 = vmatmul.msk.bf16.vlgmr.msra.gmra.mxu1 %vm6911_vm3, %v6471_v26 }
 0x3ec   : > { %3802 = vmatpush.bf16.msra.mxu2 %v4498_v27  ;;  %3755 = vmatpush.bf16.msrb.mxu0 %v4350_v50 }
 0x3ed   : > { %3781 = vmatpush.bf16.msra.mxu3 %v4354_v35 }
 0x3f0   : > { %3803 = vmatpush.bf16.msra.mxu2 %v4470_v9  ;;  %3756 = vmatpush.bf16.msrb.mxu0 %v4322_v39 }
 0x3f1   : > { %3782 = vmatpush.bf16.msra.mxu3 %v4326_v32 }
 0x3f4   : > { %3804 = vmatpush.bf16.msra.mxu2 %v4442_v34  ;;  %3757 = vmatpush.bf16.msrb.mxu0 %v4294_v40 }
 0x3f5   : > { %3783 = vmatpush.bf16.msra.mxu3 %v4298_v2 }
 0x3f7   : > { %3758 = vmatmul.bf16.vlgmr.msrb.gmra.mxu0 %v6615_v48 }
 0x3f8   : > { %3805 = vmatpush.bf16.msra.mxu2 %v4414_v30  ;;  %3817 = vmatpush.bf16.msra.mxu0 %v4666_v18 }
 0x3f9   : > { %3784 = vmatmul.bf16.vlgmr.msra.gmra.mxu3 %v6615_v48 }
 0x3fc   : > { %3806 = vmatpush.bf16.msra.mxu2 %v4386_v58  ;;  %3818 = vmatpush.bf16.msra.mxu0 %v4638_v54 }
 0x400   : > { %3807 = vmatpush.bf16.msra.mxu2 %v4358_v5  ;;  %3819 = vmatpush.bf16.msra.mxu0 %v4610_v47 }
 0x404   : > { %3808 = vmatpush.bf16.msra.mxu2 %v4330_v16  ;;  %3820 = vmatpush.bf16.msra.mxu0 %v4582_v6  ;;  %v3694_v61 = vpop.f32.mrf.mxu1 }
 0x408   : > { %3809 = vmatpush.bf16.msra.mxu2 %v4302_v22  ;;  %3821 = vmatpush.bf16.msra.mxu0 %v4554_v51 }
 0x40a   : > { %v3668_v12 = vpop.f32.mrf.mxu2 }
 0x40b   : > { %3810 = vmatmul.bf16.vlgmr.msra.gmra.mxu2 %v6615_v48 }
 0x40c   : > { %3822 = vmatpush.bf16.msra.mxu0 %v4526_v19  ;;  %v3696_v49 = vpop.f32.mrf.mxu1 }
 0x40f   : > { %4673 = vmatmul.msk.bf16.vlgmr.msra.gmra.mxu0 %vm6912_vm6, %v6471_v26 }
 0x412   : > { %v3670_v42 = vpop.f32.mrf.mxu2 }
 0x427   : > { %v3655_v27 = vpop.f32.mrf.mxu0 }
 0x428   : > { %v3733_v52 = vpop.f32.mrf.mxu1 }
 0x42d   : > { %v3681_v14 = vpop.f32.mrf.mxu3 }
 0x42e   : > { %v3707_v15 = vpop.f32.mrf.mxu2 }
 0x42f   : > { %v3657_v9 = vpop.f32.mrf.mxu0 }
 0x430   : > { %v3735_v55 = vpop.f32.mrf.mxu1 }
 0x434   : > { %v3130_v8 = vpop.permute.xlu0 %3129 }
 0x435   : > { %v3656_v63 = vadd.f32 %v3655_v27, %v3130_v8  ;;  %v3682_v1 = vadd.f32 %v3681_v14, %v3130_v8  ;;  %v3683_v0 = vpop.f32.mrf.mxu3  ;;  %v3708_v24 = vadd.f32 %v3707_v15, %v3130_v8  ;;  %v3734_v10 = vadd.f32 %v3733_v52, %v3130_v8 }
 0x436   : > { %v3709_v43 = vpop.f32.mrf.mxu2 }
 0x437   : > { %v3669_v50 = vadd.f32 %v3668_v12, %v3656_v63  ;;  %v3695_v48 = vadd.f32 %v3694_v61, %v3682_v1 }
 0x439   : > { %v3828_v26 = vmax.f32 %v3669_v50, 0.0  ;;  %v3829_v35 = vmax.f32 %v3695_v48, 0.0 }
 0x43b   : > { %3835 = vst [vmem:[%s6742_s14] sm:$0xff] %v3828_v26 }
 0x43c   : > { %3836 = vst [vmem:[%s6742_s14 + $0x8] sm:$0xff] %v3829_v35 }
 0x44d   : > { %v3720_v60 = vpop.f32.mrf.mxu0 }
 0x44e   : > { %v3721_v34 = vadd.f32 %v3720_v60, %v3708_v24 }
 0x450   : > { %v3830_v39 = vmax.f32 %v3721_v34, 0.0 }
 0x452   : > { %3837 = vst [vmem:[%s6742_s14 + $0x10] sm:$0xff] %v3830_v39 }
 0x453   : > { %v3746_v3 = vpop.f32.mrf.mxu3 }
 0x454   : > { %v3747_v62 = vadd.f32 %v3746_v3, %v3734_v10 }
 0x455   : > { %v3722_v32 = vpop.f32.mrf.mxu0 }
 0x456   : > { %v3831_v53 = vmax.f32 %v3747_v62, 0.0 }
 0x458   : > { %3838 = vst [vmem:[%s6742_s14 + $0x18] sm:$0xff] %v3831_v53 }
 0x45b   : > { %v3748_v37 = vpop.f32.mrf.mxu3 }
 0x468   : > { %v3798_v56 = vpop.f32.mrf.mxu1 }
 0x46e   : > { %v3772_v20 = vpop.f32.mrf.mxu2 }
 0x470   : > { %v3800_v30 = vpop.f32.mrf.mxu1 }
 0x474   : > { %v3759_v40 = vpop.f32.mrf.mxu0 }
 0x475   : > { %v3760_v57 = vadd.f32 %v3759_v40, %v3130_v8 }
 0x476   : > { %v3774_v29 = vpop.f32.mrf.mxu2 }
 0x477   : > { %v3773_v2 = vadd.f32 %v3772_v20, %v3760_v57 }
 0x479   : > { %v3832_v38 = vmax.f32 %v3773_v2, 0.0 }
 0x47b   : > { %3839 = vst [vmem:[%s6742_s14 + $0x20] sm:$0xff] %v3832_v38 }
 0x47c   : > { %v3785_v18 = vpop.f32.mrf.mxu3  ;;  %v3761_v4 = vpop.f32.mrf.mxu0 }
 0x47d   : > { %v3786_v36 = vadd.f32 %v3785_v18, %v3130_v8 }
 0x47f   : > { %v3799_v58 = vadd.f32 %v3798_v56, %v3786_v36 }
 0x481   : > { %v3833_v28 = vmax.f32 %v3799_v58, 0.0 }
 0x483   : > { %3840 = vst [vmem:[%s6742_s14 + $0x28] sm:$0xff] %v3833_v28 }
 0x484   : > { %v3787_v13 = vpop.f32.mrf.mxu3 }
 0x48c   : > { %v3824_v54 = vpop.f32.mrf.mxu0 }
 0x48e   : > { %v3811_v17 = vpop.f32.mrf.mxu2 }
 0x48f   : > { %v3812_v31 = vadd.f32 %v3811_v17, %v3130_v8 }
 0x491   : > { %v3825_v5 = vadd.f32 %v3824_v54, %v3812_v31 }
 0x493   : > { %v3834_v59 = vmax.f32 %v3825_v5, 0.0 }
 0x494   : > { %v3826_v21 = vpop.f32.mrf.mxu0 }
 0x495   : > { %3841 = vst [vmem:[%s6742_s14 + $0x30] sm:$0xff] %v3834_v59 }
 0x496   : > { %v3813_v47 = vpop.f32.mrf.mxu2 }
 0x497 PF: > { %s16_s21 = sadd.s32 1, %s4911_s21  }
 0x498   : > { %p13_p4 = scmp.ge.s32.totalorder %s16_s21, 4  }
 0x49a   :  { %15 = sbr.rel (!%p13_p4) target bundleno = 1 (0x1), region = 74 }

</bundles_post_ra>
